<compile_context>
chip_gen: v6e
topology: v6e:2x2x1
jax: 0.10.0
libtpu: 0.0.40
codegen_flags: <defaults>
</compile_context>

<pallas_src>
import math

import jax
import jax.numpy as jnp
import numpy as np
from jax.experimental import pallas as pl
from jax.experimental.pallas import tpu as pltpu

F32 = jnp.float32
BF16 = jnp.bfloat16


# ----------------------------------------------------------------------------
# small math helpers (shared by the kernels and the pure-JAX reference)
# ----------------------------------------------------------------------------
def _silu(v):
    return v * jax.nn.sigmoid(v)


def _feature_z_normalize(v, eps=1e-5):
    # two-pass variance: avoids catastrophic cancellation of E[x^2]-E[x]^2
    mean = jnp.mean(v, axis=-1, keepdims=True)
    d = v - mean
    var = jnp.mean(d * d, axis=-1, keepdims=True)
    return d * jax.lax.rsqrt(var + eps)


def timestep_embedding(t, dim, max_period=10000.0):
    """Sinusoidal timestep embedding (glue, computed in plain JAX)."""
    half = dim // 2
    freqs = jnp.exp(-math.log(max_period) * jnp.arange(half, dtype=F32) / half)
    args = t.astype(F32)[:, None] * freqs[None, :]
    emb = jnp.concatenate([jnp.cos(args), jnp.sin(args)], axis=-1)
    if dim % 2:
        emb = jnp.concatenate([emb, jnp.zeros_like(emb[:, :1])], axis=-1)
    return emb


# ----------------------------------------------------------------------------
# kernel A: everything resident, one grid step, statically unrolled layers
# ----------------------------------------------------------------------------
def _make_resident_kernel(condition_bias, hid, n_mid, quantized):
    cb = float(condition_bias)

    def body(t_emb_ref, x_ref, tw0_ref, tw1_ref, tbias_ref, w0_ref, cw0_ref,
             b0_ref, mid_w_ref, mid_cw_ref, mid_b_ref, mid_scale_ref, w9_ref,
             out_ref):
        xb = x_ref[...]

        # time_embed: Linear(64, emb) -> Identity -> Linear(emb, emb)
        c0 = (jnp.dot(t_emb_ref[...], tw0_ref[...], preferred_element_type=F32)
              + tbias_ref[0:1, :])
        cond = (jnp.dot(c0.astype(BF16), tw1_ref[...], preferred_element_type=F32)
                + tbias_ref[1:2, :])
        cond_b = _silu(cond).astype(BF16)   # hoisted once, reused by every layer

        # layer 0: Linear(emb, hid) + cond scale + z-norm + silu
        y = (jnp.dot(xb, w0_ref[...], preferred_element_type=F32)
             + b0_ref[0:1, :])
        c = (jnp.dot(cond_b, cw0_ref[...], preferred_element_type=F32)
             + b0_ref[1:2, :])
        h = _silu(_feature_z_normalize(y * (cb + c))).astype(BF16)

        # layers 1..n_mid (skip concat [h, x] expressed as split-K dots)
        for i in range(n_mid):              # static unroll
            w = mid_w_ref[i]
            cw = mid_cw_ref[i]
            if quantized:
                w = w.astype(BF16)
                cw = cw.astype(BF16)
            y = (jnp.dot(h, w[:hid, :], preferred_element_type=F32)
                 + jnp.dot(xb, w[hid:, :], preferred_element_type=F32))
            c = jnp.dot(cond_b, cw, preferred_element_type=F32)
            if quantized:
                s = mid_scale_ref[i]
                y = y * s[0:1, :]
                c = c * s[1:2, :]
            b = mid_b_ref[i]
            y = y + b[0:1, :]
            c = c + b[1:2, :]
            h = _silu(_feature_z_normalize(y * (cb + c))).astype(BF16)

        # final layer: Linear(hid+emb, emb); no cond / norm / act
        w9 = w9_ref[...]
        out_ref[...] = (jnp.dot(h, w9[:hid, :], preferred_element_type=F32)
                        + jnp.dot(xb, w9[hid:, :], preferred_element_type=F32)
                        + tbias_ref[2:3, :])

    if quantized:
        return body

    def kernel(t_emb_ref, x_ref, tw0_ref, tw1_ref, tbias_ref, w0_ref, cw0_ref,
               b0_ref, mid_w_ref, mid_cw_ref, mid_b_ref, w9_ref, out_ref):
        body(t_emb_ref, x_ref, tw0_ref, tw1_ref, tbias_ref, w0_ref, cw0_ref,
             b0_ref, mid_w_ref, mid_cw_ref, mid_b_ref, None, w9_ref, out_ref)

    return kernel


# ----------------------------------------------------------------------------
# kernel B: grid over the mid layers, weight slabs streamed (double buffered)
# ----------------------------------------------------------------------------
def _make_streamed_kernel(condition_bias, hid, quantized):
    cb = float(condition_bias)

    def body(t_emb_ref, x_ref, tw0_ref, tw1_ref, tbias_ref, w0_ref, cw0_ref,
             b0_ref, mid_w_ref, mid_cw_ref, mid_b_ref, mid_scale_ref, w9_ref,
             out_ref, hx_sc, cond_sc):
        l = pl.program_id(0)

        @pl.when(l == 0)
        def _prologue():
            c0 = (jnp.dot(t_emb_ref[...], tw0_ref[...],
                          preferred_element_type=F32) + tbias_ref[0:1, :])
            cond = (jnp.dot(c0.astype(BF16), tw1_ref[...],
                            preferred_element_type=F32) + tbias_ref[1:2, :])
            cond_b = _silu(cond).astype(BF16)
            cond_sc[...] = cond_b

            y = (jnp.dot(x_ref[...], w0_ref[...], preferred_element_type=F32)
                 + b0_ref[0:1, :])
            c = (jnp.dot(cond_b, cw0_ref[...], preferred_element_type=F32)
                 + b0_ref[1:2, :])
            h = _silu(_feature_z_normalize(y * (cb + c)))
            hx_sc[:, :hid] = h.astype(BF16)     # h part, overwritten every step
            hx_sc[:, hid:] = x_ref[...]         # x part, written once

        # --- mid layer l (original layer index l+1): one merged K=HID+EMB dot ---
        w = mid_w_ref[...]
        cw = mid_cw_ref[...]
        if quantized:
            w = w.astype(BF16)
            cw = cw.astype(BF16)
        y = jnp.dot(hx_sc[...], w, preferred_element_type=F32)
        c = jnp.dot(cond_sc[...], cw, preferred_element_type=F32)
        if quantized:
            s = mid_scale_ref[l]                # resident, (2, HID) f32
            y = y * s[0:1, :]
            c = c * s[1:2, :]
        b = mid_b_ref[l]                        # resident, (2, HID) f32
        y = y + b[0:1, :]
        c = c + b[1:2, :]
        h = _silu(_feature_z_normalize(y * (cb + c)))
        hx_sc[:, :hid] = h.astype(BF16)

        @pl.when(l == pl.num_programs(0) - 1)
        def _epilogue():
            out_ref[...] = (jnp.dot(hx_sc[...], w9_ref[...],
                                    preferred_element_type=F32)
                            + tbias_ref[2:3, :])

    if quantized:
        return body

    def kernel(t_emb_ref, x_ref, tw0_ref, tw1_ref, tbias_ref, w0_ref, cw0_ref,
               b0_ref, mid_w_ref, mid_cw_ref, mid_b_ref, w9_ref, out_ref,
               hx_sc, cond_sc):
        body(t_emb_ref, x_ref, tw0_ref, tw1_ref, tbias_ref, w0_ref, cw0_ref,
             b0_ref, mid_w_ref, mid_cw_ref, mid_b_ref, None, w9_ref, out_ref,
             hx_sc, cond_sc)

    return kernel


# ----------------------------------------------------------------------------
# host-side parameter packing / optional int8 quantization
# ----------------------------------------------------------------------------
def _quantize_int8_per_col(w):
    """w: (L, K, N) f32 -> (int8 weights, per-(layer, out-channel) f32 scale)."""
    amax = jnp.max(jnp.abs(w), axis=1, keepdims=True)
    scale = jnp.maximum(amax, 1e-8) / 127.0
    q = jnp.clip(jnp.round(w / scale), -127.0, 127.0).astype(jnp.int8)
    return q, scale[:, 0, :]


def prepare_params(params, weight_dtype="bf16"):
    """Cast / pack / quantize weights into the layout the kernels consume.
    NOTE: in production cache this result across calls (diffusion sampling
    re-uses the same weights every timestep)."""
    assert weight_dtype in ("bf16", "int8")
    prep = dict(
        tw0=params["tw0"].astype(BF16),
        tw1=params["tw1"].astype(BF16),
        tbias=jnp.stack([params["tb0"], params["tb1"], params["b9"]]).astype(F32),
        w0=params["w0"].astype(BF16),
        cw0=params["cw0"].astype(BF16),
        b0=jnp.stack([params["b0"], params["cb0"]]).astype(F32),
        mid_b=jnp.stack([params["mid_b"], params["mid_cb"]], axis=1).astype(F32),
        w9=params["w9"].astype(BF16),
    )
    if weight_dtype == "int8":
        qw, sw = _quantize_int8_per_col(params["mid_w"])
        qcw, scw = _quantize_int8_per_col(params["mid_cw"])
        prep["mid_w"] = qw
        prep["mid_cw"] = qcw
        prep["mid_scale"] = jnp.stack([sw, scw], axis=1)   # (L, 2, HID)
    else:
        prep["mid_w"] = params["mid_w"].astype(BF16)
        prep["mid_cw"] = params["mid_cw"].astype(BF16)
        prep["mid_scale"] = None
    return prep


def _nbytes(a):
    return int(np.prod(a.shape)) * jnp.dtype(a.dtype).itemsize


# ----------------------------------------------------------------------------
# public forward
# ----------------------------------------------------------------------------
def mlp_skipnet_forward(x, t, params, *, condition_bias=1.0,
                        weight_dtype="bf16", force_path=None):
    """MLPSkipNet forward.  x: (B, emb) f32, t: (B,) f32.

    weight_dtype: "bf16" (default) or "int8" (per-output-channel quantized mid
      weights; ~2x fewer HBM bytes on this weight-bandwidth-bound kernel).
    force_path: None (auto), "resident" or "streamed".
    """
    assert force_path in (None, "resident", "streamed")
    B, EMB = x.shape
    prep = prepare_params(params, weight_dtype)
    T_EMB = prep["tw0"].shape[0]
    HID = prep["w0"].shape[1]
    L_MID = prep["mid_w"].shape[0]
    quantized = prep["mid_scale"] is not None

    t_emb = timestep_embedding(t, T_EMB).astype(BF16)
    xb = x.astype(BF16)

    inputs = [t_emb, xb, prep["tw0"], prep["tw1"], prep["tbias"],
              prep["w0"], prep["cw0"], prep["b0"],
              prep["mid_w"], prep["mid_cw"], prep["mid_b"]]
    if quantized:
        inputs.append(prep["mid_scale"])
    inputs.append(prep["w9"])

    out_shape = jax.ShapeDtypeStruct((B, EMB), F32)
    out_bytes = B * EMB * 4
    tmp_bytes = 8 * B * HID * 4          # f32 y / c / z-norm temporaries
    total_in_bytes = sum(_nbytes(a) for a in inputs)

    def resident_spec(a):
        nd = a.ndim
        return pl.BlockSpec(a.shape, lambda l, nd=nd: (0,) * nd)

    if force_path is None:
        path = ("resident"
                if 2 * (total_in_bytes + out_bytes) + tmp_bytes <= (24 << 20)
                else "streamed")
    else:
        path = force_path

    if path == "resident":
        # Small config: keep all weights resident, single grid step, no
        # per-layer pipeline overhead (~0.35 us each avoided).
        kernel = _make_resident_kernel(condition_bias, HID, L_MID, quantized)
        need = 2 * (total_in_bytes + out_bytes) + tmp_bytes
        vmem_limit = int(min(96 << 20, max(16 << 20, need + (4 << 20))))
        return pl.pallas_call(
            kernel,
            out_shape=out_shape,
            grid_spec=pltpu.PrefetchScalarGridSpec(
                num_scalar_prefetch=0,
                grid=(1,),
                in_specs=[resident_spec(a) for a in inputs],
                out_specs=pl.BlockSpec((B, EMB), lambda l: (0, 0)),
            ),
            compiler_params=pltpu.CompilerParams(
                dimension_semantics=("arbitrary",),
                vmem_limit_bytes=vmem_limit,
            ),
        )(*inputs)

    # Streamed path: grid over the mid layers, weight slabs double buffered.
    kernel = _make_streamed_kernel(condition_bias, HID, quantized)

    def streamed_spec(a):
        return pl.BlockSpec((None,) + a.shape[1:], lambda l: (l, 0, 0))

    in_specs = [resident_spec(t_emb), resident_spec(xb),
                resident_spec(prep["tw0"]), resident_spec(prep["tw1"]),
                resident_spec(prep["tbias"]), resident_spec(prep["w0"]),
                resident_spec(prep["cw0"]), resident_spec(prep["b0"]),
                streamed_spec(prep["mid_w"]), streamed_spec(prep["mid_cw"]),
                resident_spec(prep["mid_b"])]
    if quantized:
        in_specs.append(resident_spec(prep["mid_scale"]))
    in_specs.append(resident_spec(prep["w9"]))

    scratch_shapes = [
        pltpu.VMEM((B, HID + EMB), BF16),   # [h | x] carry (bf16 MXU LHS)
        pltpu.VMEM((B, EMB), BF16),         # silu(cond)
    ]

    resident_bytes = (total_in_bytes - _nbytes(prep["mid_w"])
                      - _nbytes(prep["mid_cw"]))
    slab_bytes = (_nbytes(prep["mid_w"]) + _nbytes(prep["mid_cw"])) // L_MID
    scratch_bytes = B * (HID + EMB) * 2 + B * EMB * 2
    need = (2 * resident_bytes + 2 * slab_bytes + 2 * out_bytes
            + scratch_bytes + tmp_bytes)
    vmem_limit = int(min(96 << 20, max(16 << 20, need + (4 << 20))))
    # TODO(synk): if `need` approaches a v7x part's 64 MiB, single-buffer the
    # resident specs (pipeline_mode=pl.Buffered(1)) and/or use fp8 mid weights.

    return pl.pallas_call(
        kernel,
        out_shape=out_shape,
        grid_spec=pltpu.PrefetchScalarGridSpec(
            num_scalar_prefetch=0,
            grid=(L_MID,),
            in_specs=in_specs,
            out_specs=pl.BlockSpec((B, EMB), lambda l: (0, 0)),
            scratch_shapes=scratch_shapes,
        ),
        compiler_params=pltpu.CompilerParams(
            dimension_semantics=("arbitrary",),   # layer axis carries h/cond
            vmem_limit_bytes=vmem_limit,
        ),
    )(*inputs)   # corresponds to Return(pred=out)


# ----------------------------------------------------------------------------
# deterministic parameter initialization (mirrors MLPLNAct.init_weights)
# ----------------------------------------------------------------------------
def init_params(key, emb_channel, num_hid_channels, num_time_emb_channels,
                num_latent_layers):
    EMB, HID, T_EMB = emb_channel, num_hid_channels, num_time_emb_channels
    L_MID = num_latent_layers - 2
    assert L_MID >= 1

    def default_linear(k, fan_in, fan_out):
        k1, k2 = jax.random.split(k)
        bound = 1.0 / math.sqrt(fan_in)
        w = jax.random.uniform(k1, (fan_in, fan_out), F32, -bound, bound)
        b = jax.random.uniform(k2, (fan_out,), F32, -bound, bound)
        return w, b

    def kaiming_linear(k, fan_in, fan_out):  # kaiming_normal_ for silu
        k1, k2 = jax.random.split(k)
        std = math.sqrt(2.0 / fan_in)
        w = std * jax.random.normal(k1, (fan_in, fan_out), F32)
        bound = 1.0 / math.sqrt(fan_in)
        b = jax.random.uniform(k2, (fan_out,), F32, -bound, bound)
        return w, b

    keys = jax.random.split(key, 4 + 2 * L_MID + 1)
    ki = iter(keys)

    tw0, tb0 = default_linear(next(ki), T_EMB, EMB)
    tw1, tb1 = default_linear(next(ki), EMB, EMB)
    w0, b0 = kaiming_linear(next(ki), EMB, HID)       # layer 0
    cw0, cb0 = kaiming_linear(next(ki), EMB, HID)

    mid_w, mid_cw, mid_b, mid_cb = [], [], [], []
    for _ in range(L_MID):                            # layers 1..L-2 (skip-cat)
        w, b = kaiming_linear(next(ki), HID + EMB, HID)
        cw, cbias = kaiming_linear(next(ki), EMB, HID)
        mid_w.append(w); mid_cw.append(cw); mid_b.append(b); mid_cb.append(cbias)

    w9, b9 = default_linear(next(ki), HID + EMB, EMB)  # last layer, act=None

    return dict(tw0=tw0, tb0=tb0, tw1=tw1, tb1=tb1,
                w0=w0, b0=b0, cw0=cw0, cb0=cb0,
                mid_w=jnp.stack(mid_w), mid_cw=jnp.stack(mid_cw),
                mid_b=jnp.stack(mid_b), mid_cb=jnp.stack(mid_cb),
                w9=w9, b9=b9)


# ----------------------------------------------------------------------------
# pure-JAX reference (same casts / same quantization, no Pallas)
# ----------------------------------------------------------------------------
def reference_forward(x, t, params, *, condition_bias, weight_dtype="bf16"):
    prep = prepare_params(params, weight_dtype)
    cb = float(condition_bias)
    HID = prep["w0"].shape[1]
    T_EMB = prep["tw0"].shape[0]

    def dot(a, b):
        return jnp.dot(a.astype(BF16), b.astype(BF16), preferred_element_type=F32)

    t_emb = timestep_embedding(t, T_EMB).astype(BF16)
    xb = x.astype(BF16)

    c0 = dot(t_emb, prep["tw0"]) + prep["tbias"][0:1]
    cond = dot(c0, prep["tw1"]) + prep["tbias"][1:2]
    cond_b = _silu(cond).astype(BF16)

    y = dot(xb, prep["w0"]) + prep["b0"][0:1]
    c = dot(cond_b, prep["cw0"]) + prep["b0"][1:2]
    h = _silu(_feature_z_normalize(y * (cb + c))).astype(BF16)

    for i in range(prep["mid_w"].shape[0]):
        w = prep["mid_w"][i]
        cw = prep["mid_cw"][i]
        y = dot(h, w[:HID]) + dot(xb, w[HID:])
        c = dot(cond_b, cw)
        if prep["mid_scale"] is not None:
            s = prep["mid_scale"][i]
            y = y * s[0:1]
            c = c * s[1:2]
        y = y + prep["mid_b"][i, 0:1]
        c = c + prep["mid_b"][i, 1:2]
        h = _silu(_feature_z_normalize(y * (cb + c))).astype(BF16)

    return dot(h, prep["w9"][:HID]) + dot(xb, prep["w9"][HID:]) + prep["tbias"][2:3]


# ----------------------------------------------------------------------------
if __name__ == "__main__":
    B = 8
    EMB = 128               # emb_channel
    HID = 256               # num_hid_channels (small test size; default is 1024)
    T_EMB = 64              # num_time_emb_channels
    N_LAYERS = 10           # num_latent_layers (skip_layers = 1..9, the default)
    COND_BIAS = 1.0         # latent_condition_bias

    key = jax.random.PRNGKey(0)
    kx, kt, kp = jax.random.split(key, 3)
    x = jax.random.normal(kx, (B, EMB), F32)
    t = jax.random.uniform(kt, (B,), F32, 0.0, 1000.0)
    params = init_params(kp, EMB, HID, T_EMB, N_LAYERS)

    ref = reference_forward(x, t, params, condition_bias=COND_BIAS)
    ref_q = reference_forward(x, t, params, condition_bias=COND_BIAS,
                              weight_dtype="int8")

    # 1) auto dispatch (small config -> fully-resident single-step path)
    out_a = jax.block_until_ready(
        mlp_skipnet_forward(x, t, params, condition_bias=COND_BIAS))
    assert out_a.shape == (B, EMB) and out_a.dtype == F32
    np.testing.assert_allclose(np.asarray(out_a), np.asarray(ref),
                               atol=2e-2, rtol=2e-2)

    # 2) layer-streamed path (the production-size path), bf16 weights
    out_b = jax.block_until_ready(
        mlp_skipnet_forward(x, t, params, condition_bias=COND_BIAS,
                            force_path="streamed"))
    np.testing.assert_allclose(np.asarray(out_b), np.asarray(ref),
                               atol=2e-2, rtol=2e-2)

    # 3) layer-streamed path with int8 mid weights (v5e/v6e bandwidth saver)
    out_c = jax.block_until_ready(
        mlp_skipnet_forward(x, t, params, condition_bias=COND_BIAS,
                            weight_dtype="int8", force_path="streamed"))
    np.testing.assert_allclose(np.asarray(out_c), np.asarray(ref_q),
                               atol=2e-2, rtol=2e-2)

    # 4) resident path with int8 mid weights
    out_d = jax.block_until_ready(
        mlp_skipnet_forward(x, t, params, condition_bias=COND_BIAS,
                            weight_dtype="int8", force_path="resident"))
    np.testing.assert_allclose(np.asarray(out_d), np.asarray(ref_q),
                               atol=2e-2, rtol=2e-2)

    print("KERNEL_OK")
</pallas_src>

<mosaic_0001>
module attributes {stable_mosaic.version = 11 : i64} {
  func.func @kernel(%arg0: i32, %arg1: memref<8x64xbf16, #tpu.memory_space<vmem>>, %arg2: memref<8x128xbf16, #tpu.memory_space<vmem>>, %arg3: memref<64x128xbf16, #tpu.memory_space<vmem>>, %arg4: memref<128x128xbf16, #tpu.memory_space<vmem>>, %arg5: memref<3x128xf32, #tpu.memory_space<vmem>>, %arg6: memref<128x256xbf16, #tpu.memory_space<vmem>>, %arg7: memref<128x256xbf16, #tpu.memory_space<vmem>>, %arg8: memref<2x256xf32, #tpu.memory_space<vmem>>, %arg9: memref<8x384x256xbf16, #tpu.memory_space<vmem>>, %arg10: memref<8x128x256xbf16, #tpu.memory_space<vmem>>, %arg11: memref<8x2x256xf32, #tpu.memory_space<vmem>>, %arg12: memref<384x128xbf16, #tpu.memory_space<vmem>>, %arg13: memref<8x128xf32, #tpu.memory_space<vmem>>) attributes {dimension_semantics = [#tpu.dimension_semantics<arbitrary>], iteration_bounds = array<i64: 1>, scalar_prefetch = 0 : i64, scratch_operands = 0 : i64, tpu.core_type = #tpu.core_type<tc>, window_params = [{pipeline_mode = #tpu.pipeline_mode<synchronous>, transform_indices = @transform_0, window_bounds = array<i64: 8, 64>}, {pipeline_mode = #tpu.pipeline_mode<synchronous>, transform_indices = @transform_1, window_bounds = array<i64: 8, 128>}, {pipeline_mode = #tpu.pipeline_mode<synchronous>, transform_indices = @transform_2, window_bounds = array<i64: 64, 128>}, {pipeline_mode = #tpu.pipeline_mode<synchronous>, transform_indices = @transform_3, window_bounds = array<i64: 128, 128>}, {pipeline_mode = #tpu.pipeline_mode<synchronous>, transform_indices = @transform_4, window_bounds = array<i64: 3, 128>}, {pipeline_mode = #tpu.pipeline_mode<synchronous>, transform_indices = @transform_5, window_bounds = array<i64: 128, 256>}, {pipeline_mode = #tpu.pipeline_mode<synchronous>, transform_indices = @transform_6, window_bounds = array<i64: 128, 256>}, {pipeline_mode = #tpu.pipeline_mode<synchronous>, transform_indices = @transform_7, window_bounds = array<i64: 2, 256>}, {pipeline_mode = #tpu.pipeline_mode<synchronous>, transform_indices = @transform_8, window_bounds = array<i64: 8, 384, 256>}, {pipeline_mode = #tpu.pipeline_mode<synchronous>, transform_indices = @transform_9, window_bounds = array<i64: 8, 128, 256>}, {pipeline_mode = #tpu.pipeline_mode<synchronous>, transform_indices = @transform_10, window_bounds = array<i64: 8, 2, 256>}, {pipeline_mode = #tpu.pipeline_mode<synchronous>, transform_indices = @transform_11, window_bounds = array<i64: 384, 128>}, {pipeline_mode = #tpu.pipeline_mode<synchronous>, transform_indices = @transform_12, window_bounds = array<i64: 8, 128>}]} {
    %c0 = arith.constant 0 : index
    %c0_0 = arith.constant 0 : index
    %0 = vector.load %arg2[%c0, %c0_0] : memref<8x128xbf16, #tpu.memory_space<vmem>>, vector<8x128xbf16>
    %c0_1 = arith.constant 0 : index
    %c0_2 = arith.constant 0 : index
    %1 = vector.load %arg1[%c0_1, %c0_2] : memref<8x64xbf16, #tpu.memory_space<vmem>>, vector<8x64xbf16>
    %c0_3 = arith.constant 0 : index
    %c0_4 = arith.constant 0 : index
    %2 = vector.load %arg3[%c0_3, %c0_4] : memref<64x128xbf16, #tpu.memory_space<vmem>>, vector<64x128xbf16>
    %cst = arith.constant dense<0.000000e+00> : vector<8x128xf32>
    %3 = tpu.matmul %1, %2, %cst {dimension_numbers = #tpu.dot_dimension_numbers<[1], [0], [0], [1], [0, 0, 1, 1], [], []>} : vector<8x64xbf16>, vector<64x128xbf16>, vector<8x128xf32> -> vector<8x128xf32>
    %c0_5 = arith.constant 0 : index
    %c0_6 = arith.constant 0 : index
    %4 = vector.load %arg5[%c0_5, %c0_6] : memref<3x128xf32, #tpu.memory_space<vmem>>, vector<1x128xf32>
    %5 = vector.broadcast %4 : vector<1x128xf32> to vector<8x128xf32>
    %6 = arith.addf %3, %5 : vector<8x128xf32>
    %7 = arith.truncf %6 : vector<8x128xf32> to vector<8x128xbf16>
    %c0_7 = arith.constant 0 : index
    %c0_8 = arith.constant 0 : index
    %8 = vector.load %arg4[%c0_7, %c0_8] : memref<128x128xbf16, #tpu.memory_space<vmem>>, vector<128x128xbf16>
    %cst_9 = arith.constant dense<0.000000e+00> : vector<8x128xf32>
    %9 = tpu.matmul %7, %8, %cst_9 {dimension_numbers = #tpu.dot_dimension_numbers<[1], [0], [0], [1], [0, 0, 1, 1], [], []>} : vector<8x128xbf16>, vector<128x128xbf16>, vector<8x128xf32> -> vector<8x128xf32>
    %c1 = arith.constant 1 : index
    %c0_10 = arith.constant 0 : index
    %10 = vector.load %arg5[%c1, %c0_10] : memref<3x128xf32, #tpu.memory_space<vmem>>, vector<1x128xf32>
    %11 = vector.broadcast %10 : vector<1x128xf32> to vector<8x128xf32>
    %12 = arith.addf %9, %11 : vector<8x128xf32>
    %13 = arith.negf %12 : vector<8x128xf32>
    %14 = math.exp %13 : vector<8x128xf32>
    %cst_11 = arith.constant 1.000000e+00 : f32
    %15 = vector.broadcast %cst_11 : f32 to vector<8x128xf32>
    %16 = arith.addf %15, %14 : vector<8x128xf32>
    %17 = arith.divf %15, %16 : vector<8x128xf32>
    %18 = arith.mulf %12, %17 : vector<8x128xf32>
    %19 = arith.truncf %18 : vector<8x128xf32> to vector<8x128xbf16>
    %c0_12 = arith.constant 0 : index
    %c0_13 = arith.constant 0 : index
    %20 = vector.load %arg6[%c0_12, %c0_13] : memref<128x256xbf16, #tpu.memory_space<vmem>>, vector<128x256xbf16>
    %cst_14 = arith.constant dense<0.000000e+00> : vector<8x256xf32>
    %21 = tpu.matmul %0, %20, %cst_14 {dimension_numbers = #tpu.dot_dimension_numbers<[1], [0], [0], [1], [0, 0, 1, 1], [], []>} : vector<8x128xbf16>, vector<128x256xbf16>, vector<8x256xf32> -> vector<8x256xf32>
    %c0_15 = arith.constant 0 : index
    %c0_16 = arith.constant 0 : index
    %22 = vector.load %arg8[%c0_15, %c0_16] : memref<2x256xf32, #tpu.memory_space<vmem>>, vector<1x256xf32>
    %23 = vector.broadcast %22 : vector<1x256xf32> to vector<8x256xf32>
    %24 = arith.addf %21, %23 : vector<8x256xf32>
    %c0_17 = arith.constant 0 : index
    %c0_18 = arith.constant 0 : index
    %25 = vector.load %arg7[%c0_17, %c0_18] : memref<128x256xbf16, #tpu.memory_space<vmem>>, vector<128x256xbf16>
    %cst_19 = arith.constant dense<0.000000e+00> : vector<8x256xf32>
    %26 = tpu.matmul %19, %25, %cst_19 {dimension_numbers = #tpu.dot_dimension_numbers<[1], [0], [0], [1], [0, 0, 1, 1], [], []>} : vector<8x128xbf16>, vector<128x256xbf16>, vector<8x256xf32> -> vector<8x256xf32>
    %c1_20 = arith.constant 1 : index
    %c0_21 = arith.constant 0 : index
    %27 = vector.load %arg8[%c1_20, %c0_21] : memref<2x256xf32, #tpu.memory_space<vmem>>, vector<1x256xf32>
    %28 = vector.broadcast %27 : vector<1x256xf32> to vector<8x256xf32>
    %29 = arith.addf %26, %28 : vector<8x256xf32>
    %cst_22 = arith.constant 1.000000e+00 : f32
    %30 = vector.broadcast %cst_22 : f32 to vector<8x256xf32>
    %31 = arith.addf %30, %29 : vector<8x256xf32>
    %32 = arith.mulf %24, %31 : vector<8x256xf32>
    %cst_23 = arith.constant dense<0.000000e+00> : vector<8xf32>
    %33 = vector.multi_reduction <add>, %32, %cst_23 [1] : vector<8x256xf32> to vector<8xf32>
    %34 = vector.shape_cast %33 : vector<8xf32> to vector<8x1xf32>
    %cst_24 = arith.constant 2.560000e+02 : f32
    %35 = vector.broadcast %cst_24 : f32 to vector<8x1xf32>
    %36 = arith.divf %34, %35 : vector<8x1xf32>
    %37 = vector.broadcast %36 : vector<8x1xf32> to vector<8x256xf32>
    %38 = arith.subf %32, %37 : vector<8x256xf32>
    %39 = arith.mulf %38, %38 : vector<8x256xf32>
    %cst_25 = arith.constant dense<0.000000e+00> : vector<8xf32>
    %40 = vector.multi_reduction <add>, %39, %cst_25 [1] : vector<8x256xf32> to vector<8xf32>
    %41 = vector.shape_cast %40 : vector<8xf32> to vector<8x1xf32>
    %cst_26 = arith.constant 2.560000e+02 : f32
    %42 = vector.broadcast %cst_26 : f32 to vector<8x1xf32>
    %43 = arith.divf %41, %42 : vector<8x1xf32>
    %cst_27 = arith.constant 9.99999974E-6 : f32
    %44 = vector.broadcast %cst_27 : f32 to vector<8x1xf32>
    %45 = arith.addf %43, %44 : vector<8x1xf32>
    %46 = math.rsqrt %45 : vector<8x1xf32>
    %47 = vector.broadcast %46 : vector<8x1xf32> to vector<8x256xf32>
    %48 = arith.mulf %38, %47 : vector<8x256xf32>
    %49 = arith.negf %48 : vector<8x256xf32>
    %50 = math.exp %49 : vector<8x256xf32>
    %cst_28 = arith.constant 1.000000e+00 : f32
    %51 = vector.broadcast %cst_28 : f32 to vector<8x256xf32>
    %52 = arith.addf %51, %50 : vector<8x256xf32>
    %53 = arith.divf %51, %52 : vector<8x256xf32>
    %54 = arith.mulf %48, %53 : vector<8x256xf32>
    %55 = arith.truncf %54 : vector<8x256xf32> to vector<8x256xbf16>
    %c0_29 = arith.constant 0 : index
    %c0_30 = arith.constant 0 : index
    %c0_31 = arith.constant 0 : index
    %56 = vector.load %arg9[%c0_29, %c0_30, %c0_31] : memref<8x384x256xbf16, #tpu.memory_space<vmem>>, vector<1x384x256xbf16>
    %57 = vector.shape_cast %56 : vector<1x384x256xbf16> to vector<384x256xbf16>
    %c0_32 = arith.constant 0 : index
    %c0_33 = arith.constant 0 : index
    %c0_34 = arith.constant 0 : index
    %58 = vector.load %arg10[%c0_32, %c0_33, %c0_34] : memref<8x128x256xbf16, #tpu.memory_space<vmem>>, vector<1x128x256xbf16>
    %59 = vector.shape_cast %58 : vector<1x128x256xbf16> to vector<128x256xbf16>
    %60 = vector.extract_strided_slice %57 {offsets = [0, 0], sizes = [256, 256], strides = [1, 1]} : vector<384x256xbf16> to vector<256x256xbf16>
    %cst_35 = arith.constant dense<0.000000e+00> : vector<8x256xf32>
    %61 = tpu.matmul %55, %60, %cst_35 {dimension_numbers = #tpu.dot_dimension_numbers<[1], [0], [0], [1], [0, 0, 1, 1], [], []>} : vector<8x256xbf16>, vector<256x256xbf16>, vector<8x256xf32> -> vector<8x256xf32>
    %62 = vector.extract_strided_slice %57 {offsets = [256, 0], sizes = [128, 256], strides = [1, 1]} : vector<384x256xbf16> to vector<128x256xbf16>
    %cst_36 = arith.constant dense<0.000000e+00> : vector<8x256xf32>
    %63 = tpu.matmul %0, %62, %cst_36 {dimension_numbers = #tpu.dot_dimension_numbers<[1], [0], [0], [1], [0, 0, 1, 1], [], []>} : vector<8x128xbf16>, vector<128x256xbf16>, vector<8x256xf32> -> vector<8x256xf32>
    %64 = arith.addf %61, %63 : vector<8x256xf32>
    %cst_37 = arith.constant dense<0.000000e+00> : vector<8x256xf32>
    %65 = tpu.matmul %19, %59, %cst_37 {dimension_numbers = #tpu.dot_dimension_numbers<[1], [0], [0], [1], [0, 0, 1, 1], [], []>} : vector<8x128xbf16>, vector<128x256xbf16>, vector<8x256xf32> -> vector<8x256xf32>
    %c0_38 = arith.constant 0 : index
    %c0_39 = arith.constant 0 : index
    %c0_40 = arith.constant 0 : index
    %66 = vector.load %arg11[%c0_38, %c0_39, %c0_40] : memref<8x2x256xf32, #tpu.memory_space<vmem>>, vector<1x2x256xf32>
    %67 = vector.shape_cast %66 : vector<1x2x256xf32> to vector<2x256xf32>
    %68 = vector.extract_strided_slice %67 {offsets = [0, 0], sizes = [1, 256], strides = [1, 1]} : vector<2x256xf32> to vector<1x256xf32>
    %69 = vector.broadcast %68 : vector<1x256xf32> to vector<8x256xf32>
    %70 = arith.addf %64, %69 : vector<8x256xf32>
    %71 = vector.extract_strided_slice %67 {offsets = [1, 0], sizes = [1, 256], strides = [1, 1]} : vector<2x256xf32> to vector<1x256xf32>
    %72 = vector.broadcast %71 : vector<1x256xf32> to vector<8x256xf32>
    %73 = arith.addf %65, %72 : vector<8x256xf32>
    %cst_41 = arith.constant 1.000000e+00 : f32
    %74 = vector.broadcast %cst_41 : f32 to vector<8x256xf32>
    %75 = arith.addf %74, %73 : vector<8x256xf32>
    %76 = arith.mulf %70, %75 : vector<8x256xf32>
    %cst_42 = arith.constant dense<0.000000e+00> : vector<8xf32>
    %77 = vector.multi_reduction <add>, %76, %cst_42 [1] : vector<8x256xf32> to vector<8xf32>
    %78 = vector.shape_cast %77 : vector<8xf32> to vector<8x1xf32>
    %cst_43 = arith.constant 2.560000e+02 : f32
    %79 = vector.broadcast %cst_43 : f32 to vector<8x1xf32>
    %80 = arith.divf %78, %79 : vector<8x1xf32>
    %81 = vector.broadcast %80 : vector<8x1xf32> to vector<8x256xf32>
    %82 = arith.subf %76, %81 : vector<8x256xf32>
    %83 = arith.mulf %82, %82 : vector<8x256xf32>
    %cst_44 = arith.constant dense<0.000000e+00> : vector<8xf32>
    %84 = vector.multi_reduction <add>, %83, %cst_44 [1] : vector<8x256xf32> to vector<8xf32>
    %85 = vector.shape_cast %84 : vector<8xf32> to vector<8x1xf32>
    %cst_45 = arith.constant 2.560000e+02 : f32
    %86 = vector.broadcast %cst_45 : f32 to vector<8x1xf32>
    %87 = arith.divf %85, %86 : vector<8x1xf32>
    %cst_46 = arith.constant 9.99999974E-6 : f32
    %88 = vector.broadcast %cst_46 : f32 to vector<8x1xf32>
    %89 = arith.addf %87, %88 : vector<8x1xf32>
    %90 = math.rsqrt %89 : vector<8x1xf32>
    %91 = vector.broadcast %90 : vector<8x1xf32> to vector<8x256xf32>
    %92 = arith.mulf %82, %91 : vector<8x256xf32>
    %93 = arith.negf %92 : vector<8x256xf32>
    %94 = math.exp %93 : vector<8x256xf32>
    %cst_47 = arith.constant 1.000000e+00 : f32
    %95 = vector.broadcast %cst_47 : f32 to vector<8x256xf32>
    %96 = arith.addf %95, %94 : vector<8x256xf32>
    %97 = arith.divf %95, %96 : vector<8x256xf32>
    %98 = arith.mulf %92, %97 : vector<8x256xf32>
    %99 = arith.truncf %98 : vector<8x256xf32> to vector<8x256xbf16>
    %c1_48 = arith.constant 1 : index
    %c0_49 = arith.constant 0 : index
    %c0_50 = arith.constant 0 : index
    %100 = vector.load %arg9[%c1_48, %c0_49, %c0_50] : memref<8x384x256xbf16, #tpu.memory_space<vmem>>, vector<1x384x256xbf16>
    %101 = vector.shape_cast %100 : vector<1x384x256xbf16> to vector<384x256xbf16>
    %c1_51 = arith.constant 1 : index
    %c0_52 = arith.constant 0 : index
    %c0_53 = arith.constant 0 : index
    %102 = vector.load %arg10[%c1_51, %c0_52, %c0_53] : memref<8x128x256xbf16, #tpu.memory_space<vmem>>, vector<1x128x256xbf16>
    %103 = vector.shape_cast %102 : vector<1x128x256xbf16> to vector<128x256xbf16>
    %104 = vector.extract_strided_slice %101 {offsets = [0, 0], sizes = [256, 256], strides = [1, 1]} : vector<384x256xbf16> to vector<256x256xbf16>
    %cst_54 = arith.constant dense<0.000000e+00> : vector<8x256xf32>
    %105 = tpu.matmul %99, %104, %cst_54 {dimension_numbers = #tpu.dot_dimension_numbers<[1], [0], [0], [1], [0, 0, 1, 1], [], []>} : vector<8x256xbf16>, vector<256x256xbf16>, vector<8x256xf32> -> vector<8x256xf32>
    %106 = vector.extract_strided_slice %101 {offsets = [256, 0], sizes = [128, 256], strides = [1, 1]} : vector<384x256xbf16> to vector<128x256xbf16>
    %cst_55 = arith.constant dense<0.000000e+00> : vector<8x256xf32>
    %107 = tpu.matmul %0, %106, %cst_55 {dimension_numbers = #tpu.dot_dimension_numbers<[1], [0], [0], [1], [0, 0, 1, 1], [], []>} : vector<8x128xbf16>, vector<128x256xbf16>, vector<8x256xf32> -> vector<8x256xf32>
    %108 = arith.addf %105, %107 : vector<8x256xf32>
    %cst_56 = arith.constant dense<0.000000e+00> : vector<8x256xf32>
    %109 = tpu.matmul %19, %103, %cst_56 {dimension_numbers = #tpu.dot_dimension_numbers<[1], [0], [0], [1], [0, 0, 1, 1], [], []>} : vector<8x128xbf16>, vector<128x256xbf16>, vector<8x256xf32> -> vector<8x256xf32>
    %c1_57 = arith.constant 1 : index
    %c0_58 = arith.constant 0 : index
    %c0_59 = arith.constant 0 : index
    %110 = vector.load %arg11[%c1_57, %c0_58, %c0_59] : memref<8x2x256xf32, #tpu.memory_space<vmem>>, vector<1x2x256xf32>
    %111 = vector.shape_cast %110 : vector<1x2x256xf32> to vector<2x256xf32>
    %112 = vector.extract_strided_slice %111 {offsets = [0, 0], sizes = [1, 256], strides = [1, 1]} : vector<2x256xf32> to vector<1x256xf32>
    %113 = vector.broadcast %112 : vector<1x256xf32> to vector<8x256xf32>
    %114 = arith.addf %108, %113 : vector<8x256xf32>
    %115 = vector.extract_strided_slice %111 {offsets = [1, 0], sizes = [1, 256], strides = [1, 1]} : vector<2x256xf32> to vector<1x256xf32>
    %116 = vector.broadcast %115 : vector<1x256xf32> to vector<8x256xf32>
    %117 = arith.addf %109, %116 : vector<8x256xf32>
    %cst_60 = arith.constant 1.000000e+00 : f32
    %118 = vector.broadcast %cst_60 : f32 to vector<8x256xf32>
    %119 = arith.addf %118, %117 : vector<8x256xf32>
    %120 = arith.mulf %114, %119 : vector<8x256xf32>
    %cst_61 = arith.constant dense<0.000000e+00> : vector<8xf32>
    %121 = vector.multi_reduction <add>, %120, %cst_61 [1] : vector<8x256xf32> to vector<8xf32>
    %122 = vector.shape_cast %121 : vector<8xf32> to vector<8x1xf32>
    %cst_62 = arith.constant 2.560000e+02 : f32
    %123 = vector.broadcast %cst_62 : f32 to vector<8x1xf32>
    %124 = arith.divf %122, %123 : vector<8x1xf32>
    %125 = vector.broadcast %124 : vector<8x1xf32> to vector<8x256xf32>
    %126 = arith.subf %120, %125 : vector<8x256xf32>
    %127 = arith.mulf %126, %126 : vector<8x256xf32>
    %cst_63 = arith.constant dense<0.000000e+00> : vector<8xf32>
    %128 = vector.multi_reduction <add>, %127, %cst_63 [1] : vector<8x256xf32> to vector<8xf32>
    %129 = vector.shape_cast %128 : vector<8xf32> to vector<8x1xf32>
    %cst_64 = arith.constant 2.560000e+02 : f32
    %130 = vector.broadcast %cst_64 : f32 to vector<8x1xf32>
    %131 = arith.divf %129, %130 : vector<8x1xf32>
    %cst_65 = arith.constant 9.99999974E-6 : f32
    %132 = vector.broadcast %cst_65 : f32 to vector<8x1xf32>
    %133 = arith.addf %131, %132 : vector<8x1xf32>
    %134 = math.rsqrt %133 : vector<8x1xf32>
    %135 = vector.broadcast %134 : vector<8x1xf32> to vector<8x256xf32>
    %136 = arith.mulf %126, %135 : vector<8x256xf32>
    %137 = arith.negf %136 : vector<8x256xf32>
    %138 = math.exp %137 : vector<8x256xf32>
    %cst_66 = arith.constant 1.000000e+00 : f32
    %139 = vector.broadcast %cst_66 : f32 to vector<8x256xf32>
    %140 = arith.addf %139, %138 : vector<8x256xf32>
    %141 = arith.divf %139, %140 : vector<8x256xf32>
    %142 = arith.mulf %136, %141 : vector<8x256xf32>
    %143 = arith.truncf %142 : vector<8x256xf32> to vector<8x256xbf16>
    %c2 = arith.constant 2 : index
    %c0_67 = arith.constant 0 : index
    %c0_68 = arith.constant 0 : index
    %144 = vector.load %arg9[%c2, %c0_67, %c0_68] : memref<8x384x256xbf16, #tpu.memory_space<vmem>>, vector<1x384x256xbf16>
    %145 = vector.shape_cast %144 : vector<1x384x256xbf16> to vector<384x256xbf16>
    %c2_69 = arith.constant 2 : index
    %c0_70 = arith.constant 0 : index
    %c0_71 = arith.constant 0 : index
    %146 = vector.load %arg10[%c2_69, %c0_70, %c0_71] : memref<8x128x256xbf16, #tpu.memory_space<vmem>>, vector<1x128x256xbf16>
    %147 = vector.shape_cast %146 : vector<1x128x256xbf16> to vector<128x256xbf16>
    %148 = vector.extract_strided_slice %145 {offsets = [0, 0], sizes = [256, 256], strides = [1, 1]} : vector<384x256xbf16> to vector<256x256xbf16>
    %cst_72 = arith.constant dense<0.000000e+00> : vector<8x256xf32>
    %149 = tpu.matmul %143, %148, %cst_72 {dimension_numbers = #tpu.dot_dimension_numbers<[1], [0], [0], [1], [0, 0, 1, 1], [], []>} : vector<8x256xbf16>, vector<256x256xbf16>, vector<8x256xf32> -> vector<8x256xf32>
    %150 = vector.extract_strided_slice %145 {offsets = [256, 0], sizes = [128, 256], strides = [1, 1]} : vector<384x256xbf16> to vector<128x256xbf16>
    %cst_73 = arith.constant dense<0.000000e+00> : vector<8x256xf32>
    %151 = tpu.matmul %0, %150, %cst_73 {dimension_numbers = #tpu.dot_dimension_numbers<[1], [0], [0], [1], [0, 0, 1, 1], [], []>} : vector<8x128xbf16>, vector<128x256xbf16>, vector<8x256xf32> -> vector<8x256xf32>
    %152 = arith.addf %149, %151 : vector<8x256xf32>
    %cst_74 = arith.constant dense<0.000000e+00> : vector<8x256xf32>
    %153 = tpu.matmul %19, %147, %cst_74 {dimension_numbers = #tpu.dot_dimension_numbers<[1], [0], [0], [1], [0, 0, 1, 1], [], []>} : vector<8x128xbf16>, vector<128x256xbf16>, vector<8x256xf32> -> vector<8x256xf32>
    %c2_75 = arith.constant 2 : index
    %c0_76 = arith.constant 0 : index
    %c0_77 = arith.constant 0 : index
    %154 = vector.load %arg11[%c2_75, %c0_76, %c0_77] : memref<8x2x256xf32, #tpu.memory_space<vmem>>, vector<1x2x256xf32>
    %155 = vector.shape_cast %154 : vector<1x2x256xf32> to vector<2x256xf32>
    %156 = vector.extract_strided_slice %155 {offsets = [0, 0], sizes = [1, 256], strides = [1, 1]} : vector<2x256xf32> to vector<1x256xf32>
    %157 = vector.broadcast %156 : vector<1x256xf32> to vector<8x256xf32>
    %158 = arith.addf %152, %157 : vector<8x256xf32>
    %159 = vector.extract_strided_slice %155 {offsets = [1, 0], sizes = [1, 256], strides = [1, 1]} : vector<2x256xf32> to vector<1x256xf32>
    %160 = vector.broadcast %159 : vector<1x256xf32> to vector<8x256xf32>
    %161 = arith.addf %153, %160 : vector<8x256xf32>
    %cst_78 = arith.constant 1.000000e+00 : f32
    %162 = vector.broadcast %cst_78 : f32 to vector<8x256xf32>
    %163 = arith.addf %162, %161 : vector<8x256xf32>
    %164 = arith.mulf %158, %163 : vector<8x256xf32>
    %cst_79 = arith.constant dense<0.000000e+00> : vector<8xf32>
    %165 = vector.multi_reduction <add>, %164, %cst_79 [1] : vector<8x256xf32> to vector<8xf32>
    %166 = vector.shape_cast %165 : vector<8xf32> to vector<8x1xf32>
    %cst_80 = arith.constant 2.560000e+02 : f32
    %167 = vector.broadcast %cst_80 : f32 to vector<8x1xf32>
    %168 = arith.divf %166, %167 : vector<8x1xf32>
    %169 = vector.broadcast %168 : vector<8x1xf32> to vector<8x256xf32>
    %170 = arith.subf %164, %169 : vector<8x256xf32>
    %171 = arith.mulf %170, %170 : vector<8x256xf32>
    %cst_81 = arith.constant dense<0.000000e+00> : vector<8xf32>
    %172 = vector.multi_reduction <add>, %171, %cst_81 [1] : vector<8x256xf32> to vector<8xf32>
    %173 = vector.shape_cast %172 : vector<8xf32> to vector<8x1xf32>
    %cst_82 = arith.constant 2.560000e+02 : f32
    %174 = vector.broadcast %cst_82 : f32 to vector<8x1xf32>
    %175 = arith.divf %173, %174 : vector<8x1xf32>
    %cst_83 = arith.constant 9.99999974E-6 : f32
    %176 = vector.broadcast %cst_83 : f32 to vector<8x1xf32>
    %177 = arith.addf %175, %176 : vector<8x1xf32>
    %178 = math.rsqrt %177 : vector<8x1xf32>
    %179 = vector.broadcast %178 : vector<8x1xf32> to vector<8x256xf32>
    %180 = arith.mulf %170, %179 : vector<8x256xf32>
    %181 = arith.negf %180 : vector<8x256xf32>
    %182 = math.exp %181 : vector<8x256xf32>
    %cst_84 = arith.constant 1.000000e+00 : f32
    %183 = vector.broadcast %cst_84 : f32 to vector<8x256xf32>
    %184 = arith.addf %183, %182 : vector<8x256xf32>
    %185 = arith.divf %183, %184 : vector<8x256xf32>
    %186 = arith.mulf %180, %185 : vector<8x256xf32>
    %187 = arith.truncf %186 : vector<8x256xf32> to vector<8x256xbf16>
    %c3 = arith.constant 3 : index
    %c0_85 = arith.constant 0 : index
    %c0_86 = arith.constant 0 : index
    %188 = vector.load %arg9[%c3, %c0_85, %c0_86] : memref<8x384x256xbf16, #tpu.memory_space<vmem>>, vector<1x384x256xbf16>
    %189 = vector.shape_cast %188 : vector<1x384x256xbf16> to vector<384x256xbf16>
    %c3_87 = arith.constant 3 : index
    %c0_88 = arith.constant 0 : index
    %c0_89 = arith.constant 0 : index
    %190 = vector.load %arg10[%c3_87, %c0_88, %c0_89] : memref<8x128x256xbf16, #tpu.memory_space<vmem>>, vector<1x128x256xbf16>
    %191 = vector.shape_cast %190 : vector<1x128x256xbf16> to vector<128x256xbf16>
    %192 = vector.extract_strided_slice %189 {offsets = [0, 0], sizes = [256, 256], strides = [1, 1]} : vector<384x256xbf16> to vector<256x256xbf16>
    %cst_90 = arith.constant dense<0.000000e+00> : vector<8x256xf32>
    %193 = tpu.matmul %187, %192, %cst_90 {dimension_numbers = #tpu.dot_dimension_numbers<[1], [0], [0], [1], [0, 0, 1, 1], [], []>} : vector<8x256xbf16>, vector<256x256xbf16>, vector<8x256xf32> -> vector<8x256xf32>
    %194 = vector.extract_strided_slice %189 {offsets = [256, 0], sizes = [128, 256], strides = [1, 1]} : vector<384x256xbf16> to vector<128x256xbf16>
    %cst_91 = arith.constant dense<0.000000e+00> : vector<8x256xf32>
    %195 = tpu.matmul %0, %194, %cst_91 {dimension_numbers = #tpu.dot_dimension_numbers<[1], [0], [0], [1], [0, 0, 1, 1], [], []>} : vector<8x128xbf16>, vector<128x256xbf16>, vector<8x256xf32> -> vector<8x256xf32>
    %196 = arith.addf %193, %195 : vector<8x256xf32>
    %cst_92 = arith.constant dense<0.000000e+00> : vector<8x256xf32>
    %197 = tpu.matmul %19, %191, %cst_92 {dimension_numbers = #tpu.dot_dimension_numbers<[1], [0], [0], [1], [0, 0, 1, 1], [], []>} : vector<8x128xbf16>, vector<128x256xbf16>, vector<8x256xf32> -> vector<8x256xf32>
    %c3_93 = arith.constant 3 : index
    %c0_94 = arith.constant 0 : index
    %c0_95 = arith.constant 0 : index
    %198 = vector.load %arg11[%c3_93, %c0_94, %c0_95] : memref<8x2x256xf32, #tpu.memory_space<vmem>>, vector<1x2x256xf32>
    %199 = vector.shape_cast %198 : vector<1x2x256xf32> to vector<2x256xf32>
    %200 = vector.extract_strided_slice %199 {offsets = [0, 0], sizes = [1, 256], strides = [1, 1]} : vector<2x256xf32> to vector<1x256xf32>
    %201 = vector.broadcast %200 : vector<1x256xf32> to vector<8x256xf32>
    %202 = arith.addf %196, %201 : vector<8x256xf32>
    %203 = vector.extract_strided_slice %199 {offsets = [1, 0], sizes = [1, 256], strides = [1, 1]} : vector<2x256xf32> to vector<1x256xf32>
    %204 = vector.broadcast %203 : vector<1x256xf32> to vector<8x256xf32>
    %205 = arith.addf %197, %204 : vector<8x256xf32>
    %cst_96 = arith.constant 1.000000e+00 : f32
    %206 = vector.broadcast %cst_96 : f32 to vector<8x256xf32>
    %207 = arith.addf %206, %205 : vector<8x256xf32>
    %208 = arith.mulf %202, %207 : vector<8x256xf32>
    %cst_97 = arith.constant dense<0.000000e+00> : vector<8xf32>
    %209 = vector.multi_reduction <add>, %208, %cst_97 [1] : vector<8x256xf32> to vector<8xf32>
    %210 = vector.shape_cast %209 : vector<8xf32> to vector<8x1xf32>
    %cst_98 = arith.constant 2.560000e+02 : f32
    %211 = vector.broadcast %cst_98 : f32 to vector<8x1xf32>
    %212 = arith.divf %210, %211 : vector<8x1xf32>
    %213 = vector.broadcast %212 : vector<8x1xf32> to vector<8x256xf32>
    %214 = arith.subf %208, %213 : vector<8x256xf32>
    %215 = arith.mulf %214, %214 : vector<8x256xf32>
    %cst_99 = arith.constant dense<0.000000e+00> : vector<8xf32>
    %216 = vector.multi_reduction <add>, %215, %cst_99 [1] : vector<8x256xf32> to vector<8xf32>
    %217 = vector.shape_cast %216 : vector<8xf32> to vector<8x1xf32>
    %cst_100 = arith.constant 2.560000e+02 : f32
    %218 = vector.broadcast %cst_100 : f32 to vector<8x1xf32>
    %219 = arith.divf %217, %218 : vector<8x1xf32>
    %cst_101 = arith.constant 9.99999974E-6 : f32
    %220 = vector.broadcast %cst_101 : f32 to vector<8x1xf32>
    %221 = arith.addf %219, %220 : vector<8x1xf32>
    %222 = math.rsqrt %221 : vector<8x1xf32>
    %223 = vector.broadcast %222 : vector<8x1xf32> to vector<8x256xf32>
    %224 = arith.mulf %214, %223 : vector<8x256xf32>
    %225 = arith.negf %224 : vector<8x256xf32>
    %226 = math.exp %225 : vector<8x256xf32>
    %cst_102 = arith.constant 1.000000e+00 : f32
    %227 = vector.broadcast %cst_102 : f32 to vector<8x256xf32>
    %228 = arith.addf %227, %226 : vector<8x256xf32>
    %229 = arith.divf %227, %228 : vector<8x256xf32>
    %230 = arith.mulf %224, %229 : vector<8x256xf32>
    %231 = arith.truncf %230 : vector<8x256xf32> to vector<8x256xbf16>
    %c4 = arith.constant 4 : index
    %c0_103 = arith.constant 0 : index
    %c0_104 = arith.constant 0 : index
    %232 = vector.load %arg9[%c4, %c0_103, %c0_104] : memref<8x384x256xbf16, #tpu.memory_space<vmem>>, vector<1x384x256xbf16>
    %233 = vector.shape_cast %232 : vector<1x384x256xbf16> to vector<384x256xbf16>
    %c4_105 = arith.constant 4 : index
    %c0_106 = arith.constant 0 : index
    %c0_107 = arith.constant 0 : index
    %234 = vector.load %arg10[%c4_105, %c0_106, %c0_107] : memref<8x128x256xbf16, #tpu.memory_space<vmem>>, vector<1x128x256xbf16>
    %235 = vector.shape_cast %234 : vector<1x128x256xbf16> to vector<128x256xbf16>
    %236 = vector.extract_strided_slice %233 {offsets = [0, 0], sizes = [256, 256], strides = [1, 1]} : vector<384x256xbf16> to vector<256x256xbf16>
    %cst_108 = arith.constant dense<0.000000e+00> : vector<8x256xf32>
    %237 = tpu.matmul %231, %236, %cst_108 {dimension_numbers = #tpu.dot_dimension_numbers<[1], [0], [0], [1], [0, 0, 1, 1], [], []>} : vector<8x256xbf16>, vector<256x256xbf16>, vector<8x256xf32> -> vector<8x256xf32>
    %238 = vector.extract_strided_slice %233 {offsets = [256, 0], sizes = [128, 256], strides = [1, 1]} : vector<384x256xbf16> to vector<128x256xbf16>
    %cst_109 = arith.constant dense<0.000000e+00> : vector<8x256xf32>
    %239 = tpu.matmul %0, %238, %cst_109 {dimension_numbers = #tpu.dot_dimension_numbers<[1], [0], [0], [1], [0, 0, 1, 1], [], []>} : vector<8x128xbf16>, vector<128x256xbf16>, vector<8x256xf32> -> vector<8x256xf32>
    %240 = arith.addf %237, %239 : vector<8x256xf32>
    %cst_110 = arith.constant dense<0.000000e+00> : vector<8x256xf32>
    %241 = tpu.matmul %19, %235, %cst_110 {dimension_numbers = #tpu.dot_dimension_numbers<[1], [0], [0], [1], [0, 0, 1, 1], [], []>} : vector<8x128xbf16>, vector<128x256xbf16>, vector<8x256xf32> -> vector<8x256xf32>
    %c4_111 = arith.constant 4 : index
    %c0_112 = arith.constant 0 : index
    %c0_113 = arith.constant 0 : index
    %242 = vector.load %arg11[%c4_111, %c0_112, %c0_113] : memref<8x2x256xf32, #tpu.memory_space<vmem>>, vector<1x2x256xf32>
    %243 = vector.shape_cast %242 : vector<1x2x256xf32> to vector<2x256xf32>
    %244 = vector.extract_strided_slice %243 {offsets = [0, 0], sizes = [1, 256], strides = [1, 1]} : vector<2x256xf32> to vector<1x256xf32>
    %245 = vector.broadcast %244 : vector<1x256xf32> to vector<8x256xf32>
    %246 = arith.addf %240, %245 : vector<8x256xf32>
    %247 = vector.extract_strided_slice %243 {offsets = [1, 0], sizes = [1, 256], strides = [1, 1]} : vector<2x256xf32> to vector<1x256xf32>
    %248 = vector.broadcast %247 : vector<1x256xf32> to vector<8x256xf32>
    %249 = arith.addf %241, %248 : vector<8x256xf32>
    %cst_114 = arith.constant 1.000000e+00 : f32
    %250 = vector.broadcast %cst_114 : f32 to vector<8x256xf32>
    %251 = arith.addf %250, %249 : vector<8x256xf32>
    %252 = arith.mulf %246, %251 : vector<8x256xf32>
    %cst_115 = arith.constant dense<0.000000e+00> : vector<8xf32>
    %253 = vector.multi_reduction <add>, %252, %cst_115 [1] : vector<8x256xf32> to vector<8xf32>
    %254 = vector.shape_cast %253 : vector<8xf32> to vector<8x1xf32>
    %cst_116 = arith.constant 2.560000e+02 : f32
    %255 = vector.broadcast %cst_116 : f32 to vector<8x1xf32>
    %256 = arith.divf %254, %255 : vector<8x1xf32>
    %257 = vector.broadcast %256 : vector<8x1xf32> to vector<8x256xf32>
    %258 = arith.subf %252, %257 : vector<8x256xf32>
    %259 = arith.mulf %258, %258 : vector<8x256xf32>
    %cst_117 = arith.constant dense<0.000000e+00> : vector<8xf32>
    %260 = vector.multi_reduction <add>, %259, %cst_117 [1] : vector<8x256xf32> to vector<8xf32>
    %261 = vector.shape_cast %260 : vector<8xf32> to vector<8x1xf32>
    %cst_118 = arith.constant 2.560000e+02 : f32
    %262 = vector.broadcast %cst_118 : f32 to vector<8x1xf32>
    %263 = arith.divf %261, %262 : vector<8x1xf32>
    %cst_119 = arith.constant 9.99999974E-6 : f32
    %264 = vector.broadcast %cst_119 : f32 to vector<8x1xf32>
    %265 = arith.addf %263, %264 : vector<8x1xf32>
    %266 = math.rsqrt %265 : vector<8x1xf32>
    %267 = vector.broadcast %266 : vector<8x1xf32> to vector<8x256xf32>
    %268 = arith.mulf %258, %267 : vector<8x256xf32>
    %269 = arith.negf %268 : vector<8x256xf32>
    %270 = math.exp %269 : vector<8x256xf32>
    %cst_120 = arith.constant 1.000000e+00 : f32
    %271 = vector.broadcast %cst_120 : f32 to vector<8x256xf32>
    %272 = arith.addf %271, %270 : vector<8x256xf32>
    %273 = arith.divf %271, %272 : vector<8x256xf32>
    %274 = arith.mulf %268, %273 : vector<8x256xf32>
    %275 = arith.truncf %274 : vector<8x256xf32> to vector<8x256xbf16>
    %c5 = arith.constant 5 : index
    %c0_121 = arith.constant 0 : index
    %c0_122 = arith.constant 0 : index
    %276 = vector.load %arg9[%c5, %c0_121, %c0_122] : memref<8x384x256xbf16, #tpu.memory_space<vmem>>, vector<1x384x256xbf16>
    %277 = vector.shape_cast %276 : vector<1x384x256xbf16> to vector<384x256xbf16>
    %c5_123 = arith.constant 5 : index
    %c0_124 = arith.constant 0 : index
    %c0_125 = arith.constant 0 : index
    %278 = vector.load %arg10[%c5_123, %c0_124, %c0_125] : memref<8x128x256xbf16, #tpu.memory_space<vmem>>, vector<1x128x256xbf16>
    %279 = vector.shape_cast %278 : vector<1x128x256xbf16> to vector<128x256xbf16>
    %280 = vector.extract_strided_slice %277 {offsets = [0, 0], sizes = [256, 256], strides = [1, 1]} : vector<384x256xbf16> to vector<256x256xbf16>
    %cst_126 = arith.constant dense<0.000000e+00> : vector<8x256xf32>
    %281 = tpu.matmul %275, %280, %cst_126 {dimension_numbers = #tpu.dot_dimension_numbers<[1], [0], [0], [1], [0, 0, 1, 1], [], []>} : vector<8x256xbf16>, vector<256x256xbf16>, vector<8x256xf32> -> vector<8x256xf32>
    %282 = vector.extract_strided_slice %277 {offsets = [256, 0], sizes = [128, 256], strides = [1, 1]} : vector<384x256xbf16> to vector<128x256xbf16>
    %cst_127 = arith.constant dense<0.000000e+00> : vector<8x256xf32>
    %283 = tpu.matmul %0, %282, %cst_127 {dimension_numbers = #tpu.dot_dimension_numbers<[1], [0], [0], [1], [0, 0, 1, 1], [], []>} : vector<8x128xbf16>, vector<128x256xbf16>, vector<8x256xf32> -> vector<8x256xf32>
    %284 = arith.addf %281, %283 : vector<8x256xf32>
    %cst_128 = arith.constant dense<0.000000e+00> : vector<8x256xf32>
    %285 = tpu.matmul %19, %279, %cst_128 {dimension_numbers = #tpu.dot_dimension_numbers<[1], [0], [0], [1], [0, 0, 1, 1], [], []>} : vector<8x128xbf16>, vector<128x256xbf16>, vector<8x256xf32> -> vector<8x256xf32>
    %c5_129 = arith.constant 5 : index
    %c0_130 = arith.constant 0 : index
    %c0_131 = arith.constant 0 : index
    %286 = vector.load %arg11[%c5_129, %c0_130, %c0_131] : memref<8x2x256xf32, #tpu.memory_space<vmem>>, vector<1x2x256xf32>
    %287 = vector.shape_cast %286 : vector<1x2x256xf32> to vector<2x256xf32>
    %288 = vector.extract_strided_slice %287 {offsets = [0, 0], sizes = [1, 256], strides = [1, 1]} : vector<2x256xf32> to vector<1x256xf32>
    %289 = vector.broadcast %288 : vector<1x256xf32> to vector<8x256xf32>
    %290 = arith.addf %284, %289 : vector<8x256xf32>
    %291 = vector.extract_strided_slice %287 {offsets = [1, 0], sizes = [1, 256], strides = [1, 1]} : vector<2x256xf32> to vector<1x256xf32>
    %292 = vector.broadcast %291 : vector<1x256xf32> to vector<8x256xf32>
    %293 = arith.addf %285, %292 : vector<8x256xf32>
    %cst_132 = arith.constant 1.000000e+00 : f32
    %294 = vector.broadcast %cst_132 : f32 to vector<8x256xf32>
    %295 = arith.addf %294, %293 : vector<8x256xf32>
    %296 = arith.mulf %290, %295 : vector<8x256xf32>
    %cst_133 = arith.constant dense<0.000000e+00> : vector<8xf32>
    %297 = vector.multi_reduction <add>, %296, %cst_133 [1] : vector<8x256xf32> to vector<8xf32>
    %298 = vector.shape_cast %297 : vector<8xf32> to vector<8x1xf32>
    %cst_134 = arith.constant 2.560000e+02 : f32
    %299 = vector.broadcast %cst_134 : f32 to vector<8x1xf32>
    %300 = arith.divf %298, %299 : vector<8x1xf32>
    %301 = vector.broadcast %300 : vector<8x1xf32> to vector<8x256xf32>
    %302 = arith.subf %296, %301 : vector<8x256xf32>
    %303 = arith.mulf %302, %302 : vector<8x256xf32>
    %cst_135 = arith.constant dense<0.000000e+00> : vector<8xf32>
    %304 = vector.multi_reduction <add>, %303, %cst_135 [1] : vector<8x256xf32> to vector<8xf32>
    %305 = vector.shape_cast %304 : vector<8xf32> to vector<8x1xf32>
    %cst_136 = arith.constant 2.560000e+02 : f32
    %306 = vector.broadcast %cst_136 : f32 to vector<8x1xf32>
    %307 = arith.divf %305, %306 : vector<8x1xf32>
    %cst_137 = arith.constant 9.99999974E-6 : f32
    %308 = vector.broadcast %cst_137 : f32 to vector<8x1xf32>
    %309 = arith.addf %307, %308 : vector<8x1xf32>
    %310 = math.rsqrt %309 : vector<8x1xf32>
    %311 = vector.broadcast %310 : vector<8x1xf32> to vector<8x256xf32>
    %312 = arith.mulf %302, %311 : vector<8x256xf32>
    %313 = arith.negf %312 : vector<8x256xf32>
    %314 = math.exp %313 : vector<8x256xf32>
    %cst_138 = arith.constant 1.000000e+00 : f32
    %315 = vector.broadcast %cst_138 : f32 to vector<8x256xf32>
    %316 = arith.addf %315, %314 : vector<8x256xf32>
    %317 = arith.divf %315, %316 : vector<8x256xf32>
    %318 = arith.mulf %312, %317 : vector<8x256xf32>
    %319 = arith.truncf %318 : vector<8x256xf32> to vector<8x256xbf16>
    %c6 = arith.constant 6 : index
    %c0_139 = arith.constant 0 : index
    %c0_140 = arith.constant 0 : index
    %320 = vector.load %arg9[%c6, %c0_139, %c0_140] : memref<8x384x256xbf16, #tpu.memory_space<vmem>>, vector<1x384x256xbf16>
    %321 = vector.shape_cast %320 : vector<1x384x256xbf16> to vector<384x256xbf16>
    %c6_141 = arith.constant 6 : index
    %c0_142 = arith.constant 0 : index
    %c0_143 = arith.constant 0 : index
    %322 = vector.load %arg10[%c6_141, %c0_142, %c0_143] : memref<8x128x256xbf16, #tpu.memory_space<vmem>>, vector<1x128x256xbf16>
    %323 = vector.shape_cast %322 : vector<1x128x256xbf16> to vector<128x256xbf16>
    %324 = vector.extract_strided_slice %321 {offsets = [0, 0], sizes = [256, 256], strides = [1, 1]} : vector<384x256xbf16> to vector<256x256xbf16>
    %cst_144 = arith.constant dense<0.000000e+00> : vector<8x256xf32>
    %325 = tpu.matmul %319, %324, %cst_144 {dimension_numbers = #tpu.dot_dimension_numbers<[1], [0], [0], [1], [0, 0, 1, 1], [], []>} : vector<8x256xbf16>, vector<256x256xbf16>, vector<8x256xf32> -> vector<8x256xf32>
    %326 = vector.extract_strided_slice %321 {offsets = [256, 0], sizes = [128, 256], strides = [1, 1]} : vector<384x256xbf16> to vector<128x256xbf16>
    %cst_145 = arith.constant dense<0.000000e+00> : vector<8x256xf32>
    %327 = tpu.matmul %0, %326, %cst_145 {dimension_numbers = #tpu.dot_dimension_numbers<[1], [0], [0], [1], [0, 0, 1, 1], [], []>} : vector<8x128xbf16>, vector<128x256xbf16>, vector<8x256xf32> -> vector<8x256xf32>
    %328 = arith.addf %325, %327 : vector<8x256xf32>
    %cst_146 = arith.constant dense<0.000000e+00> : vector<8x256xf32>
    %329 = tpu.matmul %19, %323, %cst_146 {dimension_numbers = #tpu.dot_dimension_numbers<[1], [0], [0], [1], [0, 0, 1, 1], [], []>} : vector<8x128xbf16>, vector<128x256xbf16>, vector<8x256xf32> -> vector<8x256xf32>
    %c6_147 = arith.constant 6 : index
    %c0_148 = arith.constant 0 : index
    %c0_149 = arith.constant 0 : index
    %330 = vector.load %arg11[%c6_147, %c0_148, %c0_149] : memref<8x2x256xf32, #tpu.memory_space<vmem>>, vector<1x2x256xf32>
    %331 = vector.shape_cast %330 : vector<1x2x256xf32> to vector<2x256xf32>
    %332 = vector.extract_strided_slice %331 {offsets = [0, 0], sizes = [1, 256], strides = [1, 1]} : vector<2x256xf32> to vector<1x256xf32>
    %333 = vector.broadcast %332 : vector<1x256xf32> to vector<8x256xf32>
    %334 = arith.addf %328, %333 : vector<8x256xf32>
    %335 = vector.extract_strided_slice %331 {offsets = [1, 0], sizes = [1, 256], strides = [1, 1]} : vector<2x256xf32> to vector<1x256xf32>
    %336 = vector.broadcast %335 : vector<1x256xf32> to vector<8x256xf32>
    %337 = arith.addf %329, %336 : vector<8x256xf32>
    %cst_150 = arith.constant 1.000000e+00 : f32
    %338 = vector.broadcast %cst_150 : f32 to vector<8x256xf32>
    %339 = arith.addf %338, %337 : vector<8x256xf32>
    %340 = arith.mulf %334, %339 : vector<8x256xf32>
    %cst_151 = arith.constant dense<0.000000e+00> : vector<8xf32>
    %341 = vector.multi_reduction <add>, %340, %cst_151 [1] : vector<8x256xf32> to vector<8xf32>
    %342 = vector.shape_cast %341 : vector<8xf32> to vector<8x1xf32>
    %cst_152 = arith.constant 2.560000e+02 : f32
    %343 = vector.broadcast %cst_152 : f32 to vector<8x1xf32>
    %344 = arith.divf %342, %343 : vector<8x1xf32>
    %345 = vector.broadcast %344 : vector<8x1xf32> to vector<8x256xf32>
    %346 = arith.subf %340, %345 : vector<8x256xf32>
    %347 = arith.mulf %346, %346 : vector<8x256xf32>
    %cst_153 = arith.constant dense<0.000000e+00> : vector<8xf32>
    %348 = vector.multi_reduction <add>, %347, %cst_153 [1] : vector<8x256xf32> to vector<8xf32>
    %349 = vector.shape_cast %348 : vector<8xf32> to vector<8x1xf32>
    %cst_154 = arith.constant 2.560000e+02 : f32
    %350 = vector.broadcast %cst_154 : f32 to vector<8x1xf32>
    %351 = arith.divf %349, %350 : vector<8x1xf32>
    %cst_155 = arith.constant 9.99999974E-6 : f32
    %352 = vector.broadcast %cst_155 : f32 to vector<8x1xf32>
    %353 = arith.addf %351, %352 : vector<8x1xf32>
    %354 = math.rsqrt %353 : vector<8x1xf32>
    %355 = vector.broadcast %354 : vector<8x1xf32> to vector<8x256xf32>
    %356 = arith.mulf %346, %355 : vector<8x256xf32>
    %357 = arith.negf %356 : vector<8x256xf32>
    %358 = math.exp %357 : vector<8x256xf32>
    %cst_156 = arith.constant 1.000000e+00 : f32
    %359 = vector.broadcast %cst_156 : f32 to vector<8x256xf32>
    %360 = arith.addf %359, %358 : vector<8x256xf32>
    %361 = arith.divf %359, %360 : vector<8x256xf32>
    %362 = arith.mulf %356, %361 : vector<8x256xf32>
    %363 = arith.truncf %362 : vector<8x256xf32> to vector<8x256xbf16>
    %c7 = arith.constant 7 : index
    %c0_157 = arith.constant 0 : index
    %c0_158 = arith.constant 0 : index
    %364 = vector.load %arg9[%c7, %c0_157, %c0_158] : memref<8x384x256xbf16, #tpu.memory_space<vmem>>, vector<1x384x256xbf16>
    %365 = vector.shape_cast %364 : vector<1x384x256xbf16> to vector<384x256xbf16>
    %c7_159 = arith.constant 7 : index
    %c0_160 = arith.constant 0 : index
    %c0_161 = arith.constant 0 : index
    %366 = vector.load %arg10[%c7_159, %c0_160, %c0_161] : memref<8x128x256xbf16, #tpu.memory_space<vmem>>, vector<1x128x256xbf16>
    %367 = vector.shape_cast %366 : vector<1x128x256xbf16> to vector<128x256xbf16>
    %368 = vector.extract_strided_slice %365 {offsets = [0, 0], sizes = [256, 256], strides = [1, 1]} : vector<384x256xbf16> to vector<256x256xbf16>
    %cst_162 = arith.constant dense<0.000000e+00> : vector<8x256xf32>
    %369 = tpu.matmul %363, %368, %cst_162 {dimension_numbers = #tpu.dot_dimension_numbers<[1], [0], [0], [1], [0, 0, 1, 1], [], []>} : vector<8x256xbf16>, vector<256x256xbf16>, vector<8x256xf32> -> vector<8x256xf32>
    %370 = vector.extract_strided_slice %365 {offsets = [256, 0], sizes = [128, 256], strides = [1, 1]} : vector<384x256xbf16> to vector<128x256xbf16>
    %cst_163 = arith.constant dense<0.000000e+00> : vector<8x256xf32>
    %371 = tpu.matmul %0, %370, %cst_163 {dimension_numbers = #tpu.dot_dimension_numbers<[1], [0], [0], [1], [0, 0, 1, 1], [], []>} : vector<8x128xbf16>, vector<128x256xbf16>, vector<8x256xf32> -> vector<8x256xf32>
    %372 = arith.addf %369, %371 : vector<8x256xf32>
    %cst_164 = arith.constant dense<0.000000e+00> : vector<8x256xf32>
    %373 = tpu.matmul %19, %367, %cst_164 {dimension_numbers = #tpu.dot_dimension_numbers<[1], [0], [0], [1], [0, 0, 1, 1], [], []>} : vector<8x128xbf16>, vector<128x256xbf16>, vector<8x256xf32> -> vector<8x256xf32>
    %c7_165 = arith.constant 7 : index
    %c0_166 = arith.constant 0 : index
    %c0_167 = arith.constant 0 : index
    %374 = vector.load %arg11[%c7_165, %c0_166, %c0_167] : memref<8x2x256xf32, #tpu.memory_space<vmem>>, vector<1x2x256xf32>
    %375 = vector.shape_cast %374 : vector<1x2x256xf32> to vector<2x256xf32>
    %376 = vector.extract_strided_slice %375 {offsets = [0, 0], sizes = [1, 256], strides = [1, 1]} : vector<2x256xf32> to vector<1x256xf32>
    %377 = vector.broadcast %376 : vector<1x256xf32> to vector<8x256xf32>
    %378 = arith.addf %372, %377 : vector<8x256xf32>
    %379 = vector.extract_strided_slice %375 {offsets = [1, 0], sizes = [1, 256], strides = [1, 1]} : vector<2x256xf32> to vector<1x256xf32>
    %380 = vector.broadcast %379 : vector<1x256xf32> to vector<8x256xf32>
    %381 = arith.addf %373, %380 : vector<8x256xf32>
    %cst_168 = arith.constant 1.000000e+00 : f32
    %382 = vector.broadcast %cst_168 : f32 to vector<8x256xf32>
    %383 = arith.addf %382, %381 : vector<8x256xf32>
    %384 = arith.mulf %378, %383 : vector<8x256xf32>
    %cst_169 = arith.constant dense<0.000000e+00> : vector<8xf32>
    %385 = vector.multi_reduction <add>, %384, %cst_169 [1] : vector<8x256xf32> to vector<8xf32>
    %386 = vector.shape_cast %385 : vector<8xf32> to vector<8x1xf32>
    %cst_170 = arith.constant 2.560000e+02 : f32
    %387 = vector.broadcast %cst_170 : f32 to vector<8x1xf32>
    %388 = arith.divf %386, %387 : vector<8x1xf32>
    %389 = vector.broadcast %388 : vector<8x1xf32> to vector<8x256xf32>
    %390 = arith.subf %384, %389 : vector<8x256xf32>
    %391 = arith.mulf %390, %390 : vector<8x256xf32>
    %cst_171 = arith.constant dense<0.000000e+00> : vector<8xf32>
    %392 = vector.multi_reduction <add>, %391, %cst_171 [1] : vector<8x256xf32> to vector<8xf32>
    %393 = vector.shape_cast %392 : vector<8xf32> to vector<8x1xf32>
    %cst_172 = arith.constant 2.560000e+02 : f32
    %394 = vector.broadcast %cst_172 : f32 to vector<8x1xf32>
    %395 = arith.divf %393, %394 : vector<8x1xf32>
    %cst_173 = arith.constant 9.99999974E-6 : f32
    %396 = vector.broadcast %cst_173 : f32 to vector<8x1xf32>
    %397 = arith.addf %395, %396 : vector<8x1xf32>
    %398 = math.rsqrt %397 : vector<8x1xf32>
    %399 = vector.broadcast %398 : vector<8x1xf32> to vector<8x256xf32>
    %400 = arith.mulf %390, %399 : vector<8x256xf32>
    %401 = arith.negf %400 : vector<8x256xf32>
    %402 = math.exp %401 : vector<8x256xf32>
    %cst_174 = arith.constant 1.000000e+00 : f32
    %403 = vector.broadcast %cst_174 : f32 to vector<8x256xf32>
    %404 = arith.addf %403, %402 : vector<8x256xf32>
    %405 = arith.divf %403, %404 : vector<8x256xf32>
    %406 = arith.mulf %400, %405 : vector<8x256xf32>
    %407 = arith.truncf %406 : vector<8x256xf32> to vector<8x256xbf16>
    %c0_175 = arith.constant 0 : index
    %c0_176 = arith.constant 0 : index
    %408 = vector.load %arg12[%c0_175, %c0_176] : memref<384x128xbf16, #tpu.memory_space<vmem>>, vector<384x128xbf16>
    %409 = vector.extract_strided_slice %408 {offsets = [0, 0], sizes = [256, 128], strides = [1, 1]} : vector<384x128xbf16> to vector<256x128xbf16>
    %cst_177 = arith.constant dense<0.000000e+00> : vector<8x128xf32>
    %410 = tpu.matmul %407, %409, %cst_177 {dimension_numbers = #tpu.dot_dimension_numbers<[1], [0], [0], [1], [0, 0, 1, 1], [], []>} : vector<8x256xbf16>, vector<256x128xbf16>, vector<8x128xf32> -> vector<8x128xf32>
    %411 = vector.extract_strided_slice %408 {offsets = [256, 0], sizes = [128, 128], strides = [1, 1]} : vector<384x128xbf16> to vector<128x128xbf16>
    %cst_178 = arith.constant dense<0.000000e+00> : vector<8x128xf32>
    %412 = tpu.matmul %0, %411, %cst_178 {dimension_numbers = #tpu.dot_dimension_numbers<[1], [0], [0], [1], [0, 0, 1, 1], [], []>} : vector<8x128xbf16>, vector<128x128xbf16>, vector<8x128xf32> -> vector<8x128xf32>
    %413 = arith.addf %410, %412 : vector<8x128xf32>
    %c2_179 = arith.constant 2 : index
    %c0_180 = arith.constant 0 : index
    %414 = vector.load %arg5[%c2_179, %c0_180] : memref<3x128xf32, #tpu.memory_space<vmem>>, vector<1x128xf32>
    %415 = vector.broadcast %414 : vector<1x128xf32> to vector<8x128xf32>
    %416 = arith.addf %413, %415 : vector<8x128xf32>
    %c0_181 = arith.constant 0 : index
    %c0_182 = arith.constant 0 : index
    %417 = vector.load %arg13[%c0_181, %c0_182] : memref<8x128xf32, #tpu.memory_space<vmem>>, vector<8x128xf32>
    tpu.vector_store %arg13[%c0_181, %c0_182], %416 {strides = array<i32>} : memref<8x128xf32, #tpu.memory_space<vmem>>, vector<8x128xf32>,
    return
  }
  func.func @transform_0(%arg0: i32) -> (i32, i32) {
    %c0_i32 = arith.constant 0 : i32
    %c0_i32_0 = arith.constant 0 : i32
    %c0_i32_1 = arith.constant 0 : i32
    return %c0_i32, %c0_i32_0 : i32, i32
  }
  func.func @transform_1(%arg0: i32) -> (i32, i32) {
    %c0_i32 = arith.constant 0 : i32
    %c0_i32_0 = arith.constant 0 : i32
    %c0_i32_1 = arith.constant 0 : i32
    return %c0_i32, %c0_i32_0 : i32, i32
  }
  func.func @transform_2(%arg0: i32) -> (i32, i32) {
    %c0_i32 = arith.constant 0 : i32
    %c0_i32_0 = arith.constant 0 : i32
    %c0_i32_1 = arith.constant 0 : i32
    return %c0_i32, %c0_i32_0 : i32, i32
  }
  func.func @transform_3(%arg0: i32) -> (i32, i32) {
    %c0_i32 = arith.constant 0 : i32
    %c0_i32_0 = arith.constant 0 : i32
    %c0_i32_1 = arith.constant 0 : i32
    return %c0_i32, %c0_i32_0 : i32, i32
  }
  func.func @transform_4(%arg0: i32) -> (i32, i32) {
    %c0_i32 = arith.constant 0 : i32
    %c0_i32_0 = arith.constant 0 : i32
    %c0_i32_1 = arith.constant 0 : i32
    return %c0_i32, %c0_i32_0 : i32, i32
  }
  func.func @transform_5(%arg0: i32) -> (i32, i32) {
    %c0_i32 = arith.constant 0 : i32
    %c0_i32_0 = arith.constant 0 : i32
    %c0_i32_1 = arith.constant 0 : i32
    return %c0_i32, %c0_i32_0 : i32, i32
  }
  func.func @transform_6(%arg0: i32) -> (i32, i32) {
    %c0_i32 = arith.constant 0 : i32
    %c0_i32_0 = arith.constant 0 : i32
    %c0_i32_1 = arith.constant 0 : i32
    return %c0_i32, %c0_i32_0 : i32, i32
  }
  func.func @transform_7(%arg0: i32) -> (i32, i32) {
    %c0_i32 = arith.constant 0 : i32
    %c0_i32_0 = arith.constant 0 : i32
    %c0_i32_1 = arith.constant 0 : i32
    return %c0_i32, %c0_i32_0 : i32, i32
  }
  func.func @transform_8(%arg0: i32) -> (i32, i32, i32) {
    %c0_i32 = arith.constant 0 : i32
    %c0_i32_0 = arith.constant 0 : i32
    %c0_i32_1 = arith.constant 0 : i32
    %c0_i32_2 = arith.constant 0 : i32
    return %c0_i32, %c0_i32_0, %c0_i32_1 : i32, i32, i32
  }
  func.func @transform_9(%arg0: i32) -> (i32, i32, i32) {
    %c0_i32 = arith.constant 0 : i32
    %c0_i32_0 = arith.constant 0 : i32
    %c0_i32_1 = arith.constant 0 : i32
    %c0_i32_2 = arith.constant 0 : i32
    return %c0_i32, %c0_i32_0, %c0_i32_1 : i32, i32, i32
  }
  func.func @transform_10(%arg0: i32) -> (i32, i32, i32) {
    %c0_i32 = arith.constant 0 : i32
    %c0_i32_0 = arith.constant 0 : i32
    %c0_i32_1 = arith.constant 0 : i32
    %c0_i32_2 = arith.constant 0 : i32
    return %c0_i32, %c0_i32_0, %c0_i32_1 : i32, i32, i32
  }
  func.func @transform_11(%arg0: i32) -> (i32, i32) {
    %c0_i32 = arith.constant 0 : i32
    %c0_i32_0 = arith.constant 0 : i32
    %c0_i32_1 = arith.constant 0 : i32
    return %c0_i32, %c0_i32_0 : i32, i32
  }
  func.func @transform_12(%arg0: i32) -> (i32, i32) {
    %c0_i32 = arith.constant 0 : i32
    %c0_i32_0 = arith.constant 0 : i32
    %c0_i32_1 = arith.constant 0 : i32
    return %c0_i32, %c0_i32_0 : i32, i32
  }
}

</mosaic_0001>

<bundles_post_ra>
// kernel: tpu_custom_call.1
= control target key start
LH: loop header
LB: loop body
LE: loop exit
PB: predicated region body
PF: predicated region fallthrough
CT: control target
= control target key end

     0   :  { %17 = vsyncpa [#allocation3], 0  ;;  %s8162_s0 = inlined_call_operand.hbm [shape: bf16[8,64], index: 0, kind: input, shape index: {}]   ;;  %s8163_s1 = inlined_call_operand.hbm [shape: bf16[8,128], index: 1, kind: input, shape index: {}]   ;;  %s8164_s2 = inlined_call_operand.hbm [shape: bf16[64,128], index: 2, kind: input, shape index: {}]   ;;  %s8165_s3 = inlined_call_operand.hbm [shape: bf16[128,128], index: 3, kind: input, shape index: {}]   ;;  %s8166_s4 = inlined_call_operand.hbm [shape: f32[3,128], index: 4, kind: input, shape index: {}]   ;;  %s8167_s5 = inlined_call_operand.hbm [shape: bf16[128,256], index: 5, kind: input, shape index: {}]   ;;  %s8168_s6 = inlined_call_operand.hbm [shape: bf16[128,256], index: 6, kind: input, shape index: {}]   ;;  %s8169_s7 = inlined_call_operand.hbm [shape: f32[2,256], index: 7, kind: input, shape index: {}]   ;;  %s8170_s8 = inlined_call_operand.hbm [shape: bf16[8,384,256], index: 8, kind: input, shape index: {}]   ;;  %s8171_s9 = inlined_call_operand.hbm [shape: bf16[8,128,256], index: 9, kind: input, shape index: {}]   ;;  %s8172_s10 = inlined_call_operand.hbm [shape: f32[8,2,256], index: 10, kind: input, shape index: {}]   ;;  %s8173_s11 = inlined_call_operand.hbm [shape: bf16[384,128], index: 11, kind: input, shape index: {}]   ;;  %s8174_s12 = inlined_call_operand.hbm [shape: f32[8,128], index: 12, kind: output, shape index: {}]  }
   0x1   :  { %18 = vsyncpa [#allocation6], 0 }
   0x2   :  { %19 = vsyncpa [#allocation9], 0 }
   0x3   :  { %20 = vsyncpa [#allocation12], 0 }
   0x4   :  { %21 = vsyncpa [#allocation15], 0 }
   0x5   :  { %22 = vsyncpa [#allocation18], 0 }
   0x6   :  { %23 = vsyncpa [#allocation21], 0 }
   0x7   :  { %24 = vsyncpa [#allocation4], 0  ;;  %s7664_s21 = smov [#allocation5]  }
   0x8   :  { %s41_s22 = sshll.u32 %s7664_s21, 4  ;;  %s42_s22 = int_to_ptr.vmem [resolvable:$true] %s41_s22 }
   0x9   :  { %s7396_s23 = scalar_lea.vmem %s42_s22, 64  ;;  %p7401_p1 = scmp.lt.s32.totalorder %s42_s22, %s42_s22 }
   0xa   :  { %p7397_p0 = scmp.ne.s32.totalorder %s42_s22, %s7396_s23  ;;  %p7402_p2 = scmp.lt.s32.totalorder %s7396_s23, %s7396_s23 }
   0xc   :  { %p7403_p3 = por %p7402_p2, %p7401_p1 }
   0xe   :  { %p7404_p4 = pnand %p7403_p3, %p7397_p0 }
  0x10   :  { %7407 = shalt.err (!%p7404_p4)
}
  0x11   :  { %44 = dma.hbm_to_vmem [thread:$0]  %s8163_s1, 64, %s42_s22, [#allocation6]  }
  0x12   :  { %s7665_s26 = smov [#allocation8]   ;;  %s7666_s28 = smov [#allocation11]  }
  0x13   :  { %s62_s27 = sshll.u32 %s7665_s26, 4  ;;  %s84_s29 = sshll.u32 %s7666_s28, 4  ;;  %s63_s27 = int_to_ptr.vmem [resolvable:$true] %s62_s27  ;;  %s85_s29 = int_to_ptr.vmem [resolvable:$true] %s84_s29 }
  0x14   :  { %s7416_s30 = scalar_lea.vmem %s63_s27, 1024  ;;  %p7421_p6 = scmp.lt.s32.totalorder %s63_s27, %s63_s27 }
  0x15   :  { %p7417_p5 = scmp.ne.s32.totalorder %s63_s27, %s7416_s30  ;;  %p7422_p7 = scmp.lt.s32.totalorder %s7416_s30, %s7416_s30 }
  0x17   :  { %p7423_p8 = por %p7422_p7, %p7421_p6 }
  0x19   :  { %p7424_p9 = pnand %p7423_p8, %p7417_p5 }
  0x1b   :  { %7427 = shalt.err (!%p7424_p9)
}
  0x1c   :  { %s7667_s13 = smov 64   ;;  %s7668_s14 = smov 4  }
  0x1d   :  { %68 = dma.hbm_to_vmem [thread:$0]  %s8165_s3, 1024, %s63_s27, [#allocation9], %s7667_s13, %s7667_s13, %s7668_s14  }
  0x1e   :  { %s7436_s1 = scalar_lea.vmem %s85_s29, 2048  ;;  %p7441_p11 = scmp.lt.s32.totalorder %s85_s29, %s85_s29 }
  0x1f   :  { %p7437_p10 = scmp.ne.s32.totalorder %s85_s29, %s7436_s1  ;;  %p7442_p12 = scmp.lt.s32.totalorder %s7436_s1, %s7436_s1 }
  0x21   :  { %p7443_p13 = por %p7442_p12, %p7441_p11 }
  0x23   :  { %p7444_p0 = pnand %p7443_p13, %p7437_p10 }
  0x25   :  { %7447 = shalt.err (!%p7444_p0)
}
  0x26   :  { %s7669_s17 = smov 128   ;;  %s7670_s18 = smov 8  }
  0x27   :  { %90 = dma.hbm_to_vmem [thread:$0]  %s8167_s5, 2048, %s85_s29, [#allocation12], %s7669_s17, %s7669_s17, %s7670_s18  }
  0x28   :  { %s7671_s21 = smov [#allocation14]   ;;  %s7672_s3 = smov [#allocation17]  }
  0x29   :  { %s109_s22 = sshll.u32 %s7671_s21, 4  ;;  %s130_s23 = sshll.u32 %s7672_s3, 4  ;;  %s110_s22 = int_to_ptr.vmem [resolvable:$true] %s109_s22  ;;  %s131_s23 = int_to_ptr.vmem [resolvable:$true] %s130_s23 }
  0x2a   :  { %s7456_s24 = scalar_lea.vmem %s110_s22, 64  ;;  %p7461_p2 = scmp.lt.s32.totalorder %s110_s22, %s110_s22 }
  0x2b   :  { %p7457_p1 = scmp.ne.s32.totalorder %s110_s22, %s7456_s24  ;;  %p7462_p3 = scmp.lt.s32.totalorder %s7456_s24, %s7456_s24 }
  0x2d   :  { %p7463_p4 = por %p7462_p3, %p7461_p2 }
  0x2f   :  { %p7464_p5 = pnand %p7463_p4, %p7457_p1 }
  0x31   :  { %7467 = shalt.err (!%p7464_p5)
}
  0x32   :  { %112 = dma.hbm_to_vmem [thread:$0]  %s8169_s7, 64, %s110_s22, [#allocation15]  }
  0x33   :  { %s7476_s27 = scalar_lea.vmem %s131_s23, 16384  ;;  %p7481_p7 = scmp.lt.s32.totalorder %s131_s23, %s131_s23 }
  0x34   :  { %p7477_p6 = scmp.ne.s32.totalorder %s131_s23, %s7476_s27  ;;  %p7482_p8 = scmp.lt.s32.totalorder %s7476_s27, %s7476_s27 }
  0x36   :  { %p7483_p9 = por %p7482_p8, %p7481_p7 }
  0x38   :  { %p7484_p10 = pnand %p7483_p9, %p7477_p6 }
  0x3a   :  { %7487 = shalt.err (!%p7484_p10)
}
  0x3b   :  { %136 = dma.hbm_to_vmem [thread:$0]  %s8171_s9, 16384, %s131_s23, [#allocation18], %s7669_s17, %s7669_s17, %s7670_s18  }
  0x3c   :  { %s7673_s29 = smov [#allocation2]   ;;  %s7674_s15 = smov [#allocation7]  }
  0x3d   :  { %s31_s30 = sshll.u32 %s7673_s29, 4  ;;  %s50_s7 = sshll.u32 %s7674_s15, 4  ;;  %s32_s30 = int_to_ptr.vmem [resolvable:$true] %s31_s30  ;;  %s51_s7 = int_to_ptr.vmem [resolvable:$true] %s50_s7 }
  0x3e   :  { %s7496_s16 = scalar_lea.vmem %s32_s30, 64  ;;  %p7501_p12 = scmp.lt.s32.totalorder %s32_s30, %s32_s30 }
  0x3f   :  { %p7497_p11 = scmp.ne.s32.totalorder %s32_s30, %s7496_s16  ;;  %p7502_p13 = scmp.lt.s32.totalorder %s7496_s16, %s7496_s16 }
  0x41   :  { %p7503_p0 = por %p7502_p13, %p7501_p12 }
  0x43   :  { %p7504_p1 = pnand %p7503_p0, %p7497_p11 }
  0x45   :  { %7507 = shalt.err (!%p7504_p1)
}
  0x46   :  { %34 = dma.hbm_to_vmem [thread:$0]  %s8162_s0, 64, %s32_s30, [#allocation3]  }
  0x47   :  { %s7516_s20 = scalar_lea.vmem %s51_s7, 512  ;;  %p7521_p3 = scmp.lt.s32.totalorder %s51_s7, %s51_s7 }
  0x48   :  { %p7517_p2 = scmp.ne.s32.totalorder %s51_s7, %s7516_s20  ;;  %p7522_p4 = scmp.lt.s32.totalorder %s7516_s20, %s7516_s20 }
  0x4a   :  { %p7523_p5 = por %p7522_p4, %p7521_p3 }
  0x4c   :  { %p7524_p6 = pnand %p7523_p5, %p7517_p2 }
  0x4e   :  { %7527 = shalt.err (!%p7524_p6)
}
  0x4f   :  { %56 = dma.hbm_to_vmem [thread:$0]  %s8164_s2, 512, %s51_s7, [#allocation6], %s7667_s13, %s7667_s13, %s7668_s14  }
  0x50   :  { %s7675_s22 = smov [#allocation10]   ;;  %s7676_s23 = smov [#allocation13]  }
  0x51   :  { %s75_s3 = sshll.u32 %s7675_s22, 4  ;;  %s96_s0 = sshll.u32 %s7676_s23, 4  ;;  %s76_s3 = int_to_ptr.vmem [resolvable:$true] %s75_s3  ;;  %s97_s0 = int_to_ptr.vmem [resolvable:$true] %s96_s0 }
  0x52   :  { %s7536_s24 = scalar_lea.vmem %s76_s3, 64  ;;  %p7541_p8 = scmp.lt.s32.totalorder %s76_s3, %s76_s3 }
  0x53   :  { %p7537_p7 = scmp.ne.s32.totalorder %s76_s3, %s7536_s24  ;;  %p7542_p9 = scmp.lt.s32.totalorder %s7536_s24, %s7536_s24 }
  0x55   :  { %p7543_p10 = por %p7542_p9, %p7541_p8 }
  0x57   :  { %p7544_p11 = pnand %p7543_p10, %p7537_p7 }
  0x59   :  { %7547 = shalt.err (!%p7544_p11)
}
  0x5a   :  { %78 = dma.hbm_to_vmem [thread:$0]  %s8166_s4, 64, %s76_s3, [#allocation9]  }
  0x5b   :  { %s7556_s27 = scalar_lea.vmem %s97_s0, 2048  ;;  %p7561_p13 = scmp.lt.s32.totalorder %s97_s0, %s97_s0 }
  0x5c   :  { %p7557_p12 = scmp.ne.s32.totalorder %s97_s0, %s7556_s27  ;;  %p7562_p0 = scmp.lt.s32.totalorder %s7556_s27, %s7556_s27 }
  0x5e   :  { %p7563_p1 = por %p7562_p0, %p7561_p13 }
  0x60   :  { %p7564_p2 = pnand %p7563_p1, %p7557_p12 }
  0x62   :  { %7567 = shalt.err (!%p7564_p2)
}
  0x63   :  { %102 = dma.hbm_to_vmem [thread:$0]  %s8168_s6, 2048, %s97_s0, [#allocation12], %s7669_s17, %s7669_s17, %s7670_s18  }
  0x64   :  { %s7677_s28 = smov [#allocation16]   ;;  %s7678_s30 = smov [#allocation19]  }
  0x65   :  { %s118_s29 = sshll.u32 %s7677_s28, 4  ;;  %s142_s4 = sshll.u32 %s7678_s30, 4  ;;  %s119_s29 = int_to_ptr.vmem [resolvable:$true] %s118_s29  ;;  %s143_s4 = int_to_ptr.vmem [resolvable:$true] %s142_s4 }
  0x66   :  { %s7576_s15 = scalar_lea.vmem %s119_s29, 49152  ;;  %p7581_p4 = scmp.lt.s32.totalorder %s119_s29, %s119_s29 }
  0x67   :  { %p7577_p3 = scmp.ne.s32.totalorder %s119_s29, %s7576_s15  ;;  %p7582_p5 = scmp.lt.s32.totalorder %s7576_s15, %s7576_s15 }
  0x69   :  { %p7583_p6 = por %p7582_p5, %p7581_p4 }
  0x6b   :  { %p7584_p7 = pnand %p7583_p6, %p7577_p3 }
  0x6d   :  { %7587 = shalt.err (!%p7584_p7)
}
  0x6e   :  { %124 = dma.hbm_to_vmem [thread:$0]  %s8170_s8, 49152, %s119_s29, [#allocation15], %s7669_s17, %s7669_s17, %s7670_s18  }
  0x6f   :  { %s7596_s6 = scalar_lea.vmem %s143_s4, 512  ;;  %p7601_p9 = scmp.lt.s32.totalorder %s143_s4, %s143_s4 }
  0x70   :  { %p7597_p8 = scmp.ne.s32.totalorder %s143_s4, %s7596_s6  ;;  %p7602_p10 = scmp.lt.s32.totalorder %s7596_s6, %s7596_s6 }
  0x72   :  { %p7603_p11 = por %p7602_p10, %p7601_p9 }
  0x74   :  { %p7604_p12 = pnand %p7603_p11, %p7597_p8 }
  0x76   :  { %7607 = shalt.err (!%p7604_p12)
}
  0x77   :  { %148 = dma.hbm_to_vmem [thread:$0]  %s8172_s10, 512, %s143_s4, [#allocation18], %s7667_s13, %s7667_s13, %s7668_s14  }
  0x78   :  { %s7679_s20 = smov [#allocation20]  }
  0x79   :  { %s154_s9 = sshll.u32 %s7679_s20, 4  ;;  %s155_s9 = int_to_ptr.vmem [resolvable:$true] %s154_s9 }
  0x7a   :  { %s7616_s21 = scalar_lea.vmem %s155_s9, 3072  ;;  %p7621_p0 = scmp.lt.s32.totalorder %s155_s9, %s155_s9 }
  0x7b   :  { %p7617_p13 = scmp.ne.s32.totalorder %s155_s9, %s7616_s21  ;;  %p7622_p1 = scmp.lt.s32.totalorder %s7616_s21, %s7616_s21 }
  0x7d   :  { %p7623_p2 = por %p7622_p1, %p7621_p0 }
  0x7f   :  { %p7624_p3 = pnand %p7623_p2, %p7617_p13 }
  0x81   :  { %7627 = shalt.err (!%p7624_p3)
}
  0x82   :  { %160 = dma.hbm_to_vmem [thread:$0]  %s8173_s11, 3072, %s155_s9, [#allocation21], %s7667_s13, %s7667_s13, %s7668_s14  }
  0x83   :  { %7648 = dma.done.wait [#allocation3], 64  }
  0x84   :  { %7649 = vsyncadd [#allocation3], 4294967232 }
  0x85   :  { %7650 = dma.done.wait [#allocation6], 576  }
  0x86   :  { %7651 = vsyncadd [#allocation6], 4294966720 }
  0x87   :  { %7652 = dma.done.wait [#allocation9], 1088  }
  0x88   :  { %7653 = vsyncadd [#allocation9], 4294966208 }
  0x89   :  { %7654 = dma.done.wait [#allocation12], 4096  }
  0x8a   :  { %7655 = vsyncadd [#allocation12], 4294963200 }
  0x8b   :  { %7656 = dma.done.wait [#allocation15], 49216  }
  0x8c   :  { %7657 = vsyncadd [#allocation15], 4294918080 }
  0x8d   :  { %7658 = dma.done.wait [#allocation18], 16896  }
  0x8e   :  { %7659 = vsyncadd [#allocation18], 4294950400 }
  0x8f   :  { %7660 = dma.done.wait [#allocation21], 3072  }
  0x90   :  { %7661 = vsyncadd [#allocation21], 4294964224  ;;  %v7680_v0 = vmov 0.0   ;;  %vm7681_vm0 = vmmov 0   ;;  %v6440_v1 = vld [vmem:[#allocation7 + $0x18] sm:$0xff]   ;;  %v6441_v2 = vld [vmem:[#allocation7 + $0x10] sm:$0xff]  }
  0x91   :  { %6368 = vmatprep.subr.bf16.mxu0 %v7680_v0  ;;  %6376 = vmatprep.mubr.msk.bf16.mxu0 %vm7681_vm0, %v7680_v0  ;;  %v6444_v3 = vld [vmem:[#allocation8 + $0x38] sm:$0xff]   ;;  %v6442_v4 = vld [vmem:[#allocation7 + $0x8] sm:$0xff]   ;;  %v6445_v5 = vld [vmem:[#allocation8 + $0x30] sm:$0xff]   ;;  %vm237_vm1 = vcmask 523264   ;;  %v7682_v19 = vmov 0   ;;  %s7683_s10 = smov [#allocation22]  }
  0x92   :  { %6380 = vmatprep.subr.bf16.mxu1 %v7680_v0  ;;  %6396 = vmatprep.mubr.msk.bf16.mxu1 %vm7681_vm0, %v7680_v0  ;;  %v6443_v6 = vld [vmem:[#allocation7] sm:$0xff]   ;;  %v6446_v7 = vld [vmem:[#allocation8 + $0x28] sm:$0xff]   ;;  %v199_v8 = vld [vmem:[#allocation2] sm:$0xf]  ;;  %s5705_s11 = sshll.u32 %s7683_s10, 4  ;;  %s5706_s11 = int_to_ptr.vmem [resolvable:$true] %s5705_s11 }
  0x93   :  { %6369 = vmatpush3.bf16.msra.mxu0 %v6440_v1  ;;  %6381 = vmatpush3.bf16.msra.mxu1 %v6444_v3  ;;  %v6447_v9 = vld [vmem:[#allocation8 + $0x20] sm:$0xff]   ;;  %v6448_v10 = vld [vmem:[#allocation8 + $0x18] sm:$0xff]   ;;  %v6449_v11 = vld [vmem:[#allocation8 + $0x10] sm:$0xff]   ;;  %s7628_s13 = scalar_lea.vmem %s5706_s11, 128  ;;  %p7633_p5 = scmp.lt.s32.totalorder %s5706_s11, %s5706_s11 }
  0x94   :  { %6370 = vmatprep.subr.bf16.mxu0 %v7680_v0  ;;  %6382 = vmatprep.subr.bf16.mxu1 %v7680_v0  ;;  %v6450_v12 = vld [vmem:[#allocation8 + $0x8] sm:$0xff]   ;;  %v6451_v13 = vld [vmem:[#allocation8] sm:$0xff]   ;;  %v6452_v14 = vld [vmem:[#allocation11 + $0x70] ss:$8 sps:$4 sm:$0xff]   ;;  %p7629_p4 = scmp.ne.s32.totalorder %s5706_s11, %s7628_s13  ;;  %p7634_p6 = scmp.lt.s32.totalorder %s7628_s13, %s7628_s13 }
  0x95   :  { %v6454_v15 = vld [vmem:[#allocation11 + $0x74] ss:$8 sps:$4 sm:$0xff]   ;;  %v6457_v16 = vld [vmem:[#allocation11 + $0x64] ss:$8 sps:$4 sm:$0xff]   ;;  %v6455_v17 = vld [vmem:[#allocation11 + $0x60] ss:$8 sps:$4 sm:$0xff]  }
  0x96   :  { %v6460_v18 = vld [vmem:[#allocation11 + $0x54] ss:$8 sps:$4 sm:$0xff]   ;;  %v6458_v20 = vld [vmem:[#allocation11 + $0x50] ss:$8 sps:$4 sm:$0xff]   ;;  %v6463_v21 = vld [vmem:[#allocation11 + $0x44] ss:$8 sps:$4 sm:$0xff]   ;;  %p7635_p7 = por %p7634_p6, %p7633_p5 }
  0x97   :  { %6371 = vmatpush3.bf16.msra.mxu0 %v6441_v2  ;;  %6383 = vmatpush3.bf16.msra.mxu1 %v6445_v5  ;;  %v6461_v22 = vld [vmem:[#allocation11 + $0x40] ss:$8 sps:$4 sm:$0xff]   ;;  %v6466_v23 = vld [vmem:[#allocation11 + $0x34] ss:$8 sps:$4 sm:$0xff]   ;;  %v6464_v24 = vld [vmem:[#allocation11 + $0x30] ss:$8 sps:$4 sm:$0xff]  }
  0x98   :  { %6372 = vmatprep.subr.bf16.mxu0 %v7680_v0  ;;  %6384 = vmatprep.subr.bf16.mxu1 %v7680_v0  ;;  %v6469_v25 = vld [vmem:[#allocation11 + $0x24] ss:$8 sps:$4 sm:$0xff]   ;;  %v6467_v26 = vld [vmem:[#allocation11 + $0x20] ss:$8 sps:$4 sm:$0xff]   ;;  %v6472_v27 = vld [vmem:[#allocation11 + $0x14] ss:$8 sps:$4 sm:$0xff]   ;;  %p7636_p8 = pnand %p7635_p7, %p7629_p4 }
  0x99   :  { %v6470_v28 = vld [vmem:[#allocation11 + $0x10] ss:$8 sps:$4 sm:$0xff]   ;;  %v6475_v29 = vld [vmem:[#allocation11 + $0x4] ss:$8 sps:$4 sm:$0xff]   ;;  %v6473_v30 = vld [vmem:[#allocation11] ss:$8 sps:$4 sm:$0xff]  }
  0x9a   :  { %v6478_v31 = vld [vmem:[#allocation16 + $0x174] ss:$8 sps:$4 sm:$0xff]   ;;  %v6476_v32 = vld [vmem:[#allocation16 + $0x170] ss:$8 sps:$4 sm:$0xff]   ;;  %v6481_v34 = vld [vmem:[#allocation16 + $0x164] ss:$8 sps:$4 sm:$0xff]  }
  0x9b   :  { %6373 = vmatpush3.bf16.msra.mxu0 %v6442_v4  ;;  %6385 = vmatpush3.bf16.msra.mxu1 %v6446_v7  ;;  %v7826_v33 = vld [vmem:[#allocation5] sm:$0xf]  ;;  %v6479_v35 = vld [vmem:[#allocation16 + $0x160] ss:$8 sps:$4 sm:$0xff]   ;;  %v6482_v37 = vld [vmem:[#allocation16 + $0x150] ss:$8 sps:$4 sm:$0xff]  }
  0x9c   :  { %6374 = vmatprep.subr.bf16.mxu0 %v7680_v0  ;;  %6386 = vmatprep.subr.bf16.mxu1 %v7680_v0  ;;  %v6484_v36 = vld [vmem:[#allocation16 + $0x154] ss:$8 sps:$4 sm:$0xff]   ;;  %v6487_v38 = vld [vmem:[#allocation16 + $0x144] ss:$8 sps:$4 sm:$0xff]   ;;  %v6485_v39 = vld [vmem:[#allocation16 + $0x140] ss:$8 sps:$4 sm:$0xff]  }
  0x9d   :  { %v6490_v40 = vld [vmem:[#allocation16 + $0x134] ss:$8 sps:$4 sm:$0xff]   ;;  %v6488_v41 = vld [vmem:[#allocation16 + $0x130] ss:$8 sps:$4 sm:$0xff]   ;;  %v6493_v42 = vld [vmem:[#allocation16 + $0x124] ss:$8 sps:$4 sm:$0xff]  }
  0x9e   :  { %v6491_v43 = vld [vmem:[#allocation16 + $0x120] ss:$8 sps:$4 sm:$0xff]   ;;  %v6496_v44 = vld [vmem:[#allocation16 + $0x114] ss:$8 sps:$4 sm:$0xff]   ;;  %v6494_v45 = vld [vmem:[#allocation16 + $0x110] ss:$8 sps:$4 sm:$0xff]  }
  0x9f   :  { %6375 = vmatpush3.bf16.msra.mxu0 %v6443_v6  ;;  %6387 = vmatpush3.bf16.msra.mxu1 %v6447_v9  ;;  %v5720_v46 = vld [vmem:[#allocation10] ss:$0 sm:$0xff]  ;;  %v6499_v53 = vld [vmem:[#allocation16 + $0x104] ss:$8 sps:$4 sm:$0xff]   ;;  %v6497_v54 = vld [vmem:[#allocation16 + $0x100] ss:$8 sps:$4 sm:$0xff]  }
  0xa0   :  { %6388 = vmatprep.subr.bf16.mxu1 %v7680_v0  ;;  %507 = vmatprep.subr.bf16.mxu0 %v6454_v15  ;;  %v6502_v55 = vld [vmem:[#allocation17 + $0x74] ss:$8 sps:$4 sm:$0xff]   ;;  %v6500_v56 = vld [vmem:[#allocation17 + $0x70] ss:$8 sps:$4 sm:$0xff]   ;;  %v6508_v59 = vld [vmem:[#allocation17 + $0x64] ss:$8 sps:$4 sm:$0xff]  }
  0xa1   :  { %v6505_v57 = vld [vmem:[#allocation13 + $0x74] ss:$8 sps:$4 sm:$0xff]   ;;  %v6503_v58 = vld [vmem:[#allocation13 + $0x70] ss:$8 sps:$4 sm:$0xff]   ;;  %v6506_v60 = vld [vmem:[#allocation17 + $0x60] ss:$8 sps:$4 sm:$0xff]  }
  0xa2   :  { %6377 = vmatmul.mubr.msk.bf16.vlgmr.msra.gmra.mxu0 %vm237_vm1, %v199_v8  ;;  %v6511_v61 = vld [vmem:[#allocation13 + $0x64] ss:$8 sps:$4 sm:$0xff]   ;;  %v6509_v62 = vld [vmem:[#allocation13 + $0x60] ss:$8 sps:$4 sm:$0xff]   ;;  %v6512_v1 = vld [vmem:[#allocation17 + $0x50] ss:$8 sps:$4 sm:$0xff]  }
  0xa3   :  { %6389 = vmatpush3.bf16.msra.mxu1 %v6448_v10  ;;  %508 = vmatpush1.bf16.msra.mxu0 %v6452_v14  ;;  %v6514_v63 = vld [vmem:[#allocation17 + $0x54] ss:$8 sps:$4 sm:$0xff]   ;;  %v6517_v2 = vld [vmem:[#allocation13 + $0x54] ss:$8 sps:$4 sm:$0xff]   ;;  %v6520_v4 = vld [vmem:[#allocation17 + $0x44] ss:$8 sps:$4 sm:$0xff]  }
  0xa4   :  { %6390 = vmatprep.subr.bf16.mxu1 %v7680_v0  ;;  %509 = vmatprep.subr.bf16.mxu0 %v6457_v16  ;;  %v6515_v3 = vld [vmem:[#allocation13 + $0x50] ss:$8 sps:$4 sm:$0xff]   ;;  %v6518_v5 = vld [vmem:[#allocation17 + $0x40] ss:$8 sps:$4 sm:$0xff]   ;;  %v6521_v7 = vld [vmem:[#allocation13 + $0x40] ss:$8 sps:$4 sm:$0xff]  }
  0xa5   :  { %539 = vmatprep.mubr.bf16.mxu0 %v7682_v19  ;;  %v6523_v6 = vld [vmem:[#allocation13 + $0x44] ss:$8 sps:$4 sm:$0xff]   ;;  %v6526_v8 = vld [vmem:[#allocation17 + $0x34] ss:$8 sps:$4 sm:$0xff]   ;;  %v6524_v9 = vld [vmem:[#allocation17 + $0x30] ss:$8 sps:$4 sm:$0xff]  }
  0xa6   :  { %v6529_v10 = vld [vmem:[#allocation13 + $0x34] ss:$8 sps:$4 sm:$0xff]   ;;  %v6535_v14 = vld [vmem:[#allocation13 + $0x24] ss:$8 sps:$4 sm:$0xff]   ;;  %v6533_v15 = vld [vmem:[#allocation13 + $0x20] ss:$8 sps:$4 sm:$0xff]  }
  0xa7   :  { %6391 = vmatpush3.bf16.msra.mxu1 %v6449_v11  ;;  %510 = vmatpush1.bf16.msra.mxu0 %v6455_v17  ;;  %v6527_v11 = vld [vmem:[#allocation13 + $0x30] ss:$8 sps:$4 sm:$0xff]   ;;  %v6536_v17 = vld [vmem:[#allocation17 + $0x10] ss:$8 sps:$4 sm:$0xff]  }
  0xa8   :  { %6392 = vmatprep.subr.bf16.mxu1 %v7680_v0  ;;  %511 = vmatprep.subr.bf16.mxu0 %v6460_v18  ;;  %v6538_v16 = vld [vmem:[#allocation17 + $0x14] ss:$8 sps:$4 sm:$0xff]   ;;  %v6541_v18 = vld [vmem:[#allocation13 + $0x14] ss:$8 sps:$4 sm:$0xff]  }
  0xab   :  { %6393 = vmatpush3.bf16.msra.mxu1 %v6450_v12  ;;  %512 = vmatpush1.bf16.msra.mxu0 %v6458_v20  ;;  %v6532_v12 = vld [vmem:[#allocation17 + $0x24] ss:$8 sps:$4 sm:$0xff]  }
  0xac   :  { %6394 = vmatprep.subr.bf16.mxu1 %v7680_v0  ;;  %513 = vmatprep.subr.bf16.mxu0 %v6463_v21  ;;  %v6539_v20 = vld [vmem:[#allocation13 + $0x10] ss:$8 sps:$4 sm:$0xff]  }
  0xad   :  { %v6544_v21 = vld [vmem:[#allocation17 + $0x4] ss:$8 sps:$4 sm:$0xff]  }
  0xaf   :  { %6395 = vmatpush3.bf16.msra.mxu1 %v6451_v13  ;;  %514 = vmatpush1.bf16.msra.mxu0 %v6461_v22  ;;  %v6530_v13 = vld [vmem:[#allocation17 + $0x20] ss:$8 sps:$4 sm:$0xff]  }
  0xb0   :  { %515 = vmatprep.subr.bf16.mxu0 %v6466_v23  ;;  %657 = vmatprep.subr.bf16.mxu1 %v6505_v57  ;;  %v6542_v22 = vld [vmem:[#allocation17] ss:$8 sps:$4 sm:$0xff]  }
  0xb1   :  { %v6547_v23 = vld [vmem:[#allocation13 + $0x4] ss:$8 sps:$4 sm:$0xff]  }
  0xb2   :  { %v6575_v57 = vld [vmem:[#allocation17 + $0xe0] ss:$8 sps:$4 sm:$0xff]  }
  0xb3   :  { %516 = vmatpush1.bf16.msra.mxu0 %v6464_v24  ;;  %v6545_v24 = vld [vmem:[#allocation13] ss:$8 sps:$4 sm:$0xff]  }
  0xb4   :  { %517 = vmatprep.subr.bf16.mxu0 %v6469_v25  ;;  %v6550_v25 = vld [vmem:[#allocation16 + $0x2f4] ss:$8 sps:$4 sm:$0xff]  }
  0xb7   :  { %518 = vmatpush1.bf16.msra.mxu0 %v6467_v26  ;;  %v5726_v26 = vld [vmem:[#allocation10 + $0x1] ss:$0 sm:$0xff] }
  0xb8   :  { %519 = vmatprep.subr.bf16.mxu0 %v6472_v27 }
  0xbb   :  { %520 = vmatpush1.bf16.msra.mxu0 %v6470_v28 }
  0xbc   :  { %521 = vmatprep.subr.bf16.mxu0 %v6475_v29 }
  0xbf   :  { %522 = vmatpush1.bf16.msra.mxu0 %v6473_v30 }
  0xc0   :  { %879 = vmatprep.subr.bf16.mxu0 %v6478_v31 }
  0xc2   :  { %540 = vmatmul.mubr.bf16.vlgmr.msra.gmra.mxu0 %v7826_v33 }
  0xc3   :  { %880 = vmatpush1.bf16.msra.mxu0 %v6476_v32  ;;  %911 = vmatprep.mubr.bf16.mxu0 %v7682_v19 }
  0xc4   :  { %881 = vmatprep.subr.bf16.mxu0 %v6481_v34 }
  0xc7   :  { %882 = vmatpush1.bf16.msra.mxu0 %v6479_v35 }
  0xc8   :  { %883 = vmatprep.subr.bf16.mxu0 %v6484_v36 }
  0xcb   :  { %884 = vmatpush1.bf16.msra.mxu0 %v6482_v37 }
  0xcc   :  { %885 = vmatprep.subr.bf16.mxu0 %v6487_v38  ;;  %v6548_v38 = vld [vmem:[#allocation16 + $0x2f0] ss:$8 sps:$4 sm:$0xff]  }
  0xcf   :  { %886 = vmatpush1.bf16.msra.mxu0 %v6485_v39 }
  0xd0   :  { %887 = vmatprep.subr.bf16.mxu0 %v6490_v40  ;;  %v6553_v40 = vld [vmem:[#allocation16 + $0x2e4] ss:$8 sps:$4 sm:$0xff]  }
  0xd3   :  { %888 = vmatpush1.bf16.msra.mxu0 %v6488_v41  ;;  %v6551_v41 = vld [vmem:[#allocation16 + $0x2e0] ss:$8 sps:$4 sm:$0xff]  }
  0xd4   :  { %889 = vmatprep.subr.bf16.mxu0 %v6493_v42  ;;  %v6556_v42 = vld [vmem:[#allocation16 + $0x2d4] ss:$8 sps:$4 sm:$0xff]  }
  0xd7   :  { %890 = vmatpush1.bf16.msra.mxu0 %v6491_v43  ;;  %v6554_v43 = vld [vmem:[#allocation16 + $0x2d0] ss:$8 sps:$4 sm:$0xff]  }
  0xd8   :  { %891 = vmatprep.subr.bf16.mxu0 %v6496_v44  ;;  %v6559_v44 = vld [vmem:[#allocation16 + $0x2c4] ss:$8 sps:$4 sm:$0xff]  }
  0xdb   :  { %892 = vmatpush1.bf16.msra.mxu0 %v6494_v45  ;;  %v6557_v45 = vld [vmem:[#allocation16 + $0x2c0] ss:$8 sps:$4 sm:$0xff]  }
  0xdc   :  { %893 = vmatprep.subr.bf16.mxu0 %v6499_v53  ;;  %v6569_v53 = vld [vmem:[#allocation16 + $0x280] ss:$8 sps:$4 sm:$0xff]  }
  0xdf   :  { %894 = vmatpush1.bf16.msra.mxu0 %v6497_v54  ;;  %v6574_v54 = vld [vmem:[#allocation17 + $0xf4] ss:$8 sps:$4 sm:$0xff]  }
  0xe0   :  { %1241 = vmatprep.subr.bf16.mxu0 %v6502_v55  ;;  %v6572_v55 = vld [vmem:[#allocation17 + $0xf0] ss:$8 sps:$4 sm:$0xff]  }
  0xe2   :  { %912 = vmatmul.mubr.bf16.vlgmr.msra.gmra.mxu0 %v7826_v33 }
  0xe3   :  { %1242 = vmatpush1.bf16.msra.mxu0 %v6500_v56  ;;  %1273 = vmatprep.mubr.bf16.mxu0 %v7682_v19  ;;  %v6577_v56 = vld [vmem:[#allocation17 + $0xe4] ss:$8 sps:$4 sm:$0xff]  }
  0xe4   :  { %1243 = vmatprep.subr.bf16.mxu0 %v6508_v59  ;;  %v6578_v59 = vld [vmem:[#allocation17 + $0xd0] ss:$8 sps:$4 sm:$0xff]  }
  0xe7   :  { %1244 = vmatpush1.bf16.msra.mxu0 %v6506_v60  ;;  %v6583_v60 = vld [vmem:[#allocation17 + $0xc4] ss:$8 sps:$4 sm:$0xff]  }
  0xe8   :  { %1245 = vmatprep.subr.bf16.mxu0 %v6514_v63  ;;  %v6584_v63 = vld [vmem:[#allocation17 + $0xb0] ss:$8 sps:$4 sm:$0xff]  }
  0xeb   :  { %1246 = vmatpush1.bf16.msra.mxu0 %v6512_v1  ;;  %v6589_v1 = vld [vmem:[#allocation17 + $0xa4] ss:$8 sps:$4 sm:$0xff]  }
  0xec   :  { %1247 = vmatprep.subr.bf16.mxu0 %v6520_v4  ;;  %v6592_v4 = vld [vmem:[#allocation17 + $0x94] ss:$8 sps:$4 sm:$0xff]  }
  0xef   :  { %1248 = vmatpush1.bf16.msra.mxu0 %v6518_v5 }
  0xf0   :  { %1249 = vmatprep.subr.bf16.mxu0 %v6526_v8  ;;  %v6595_v8 = vld [vmem:[#allocation17 + $0x84] ss:$8 sps:$4 sm:$0xff]  }
  0xf3   :  { %1250 = vmatpush1.bf16.msra.mxu0 %v6524_v9 }
  0xf4   :  { %1251 = vmatprep.subr.bf16.mxu0 %v6532_v12  ;;  %v6598_v12 = vld [vmem:[#allocation16 + $0x474] ss:$8 sps:$4 sm:$0xff]  }
  0xf7   :  { %1252 = vmatpush1.bf16.msra.mxu0 %v6530_v13 }
  0xf8   :  { %1253 = vmatprep.subr.bf16.mxu0 %v6538_v16  ;;  %v6601_v16 = vld [vmem:[#allocation16 + $0x464] ss:$8 sps:$4 sm:$0xff]  }
  0xfb   :  { %1254 = vmatpush1.bf16.msra.mxu0 %v6536_v17  ;;  %v6599_v17 = vld [vmem:[#allocation16 + $0x460] ss:$8 sps:$4 sm:$0xff]  }
  0xfc   :  { %1255 = vmatprep.subr.bf16.mxu0 %v6544_v21  ;;  %v6607_v21 = vld [vmem:[#allocation16 + $0x444] ss:$8 sps:$4 sm:$0xff]  }
  0xff   :  { %1256 = vmatpush1.bf16.msra.mxu0 %v6542_v22  ;;  %v6605_v22 = vld [vmem:[#allocation16 + $0x440] ss:$8 sps:$4 sm:$0xff]  }
 0x100   :  { %1464 = vmatprep.subr.bf16.mxu0 %v6550_v25  ;;  %v6613_v25 = vld [vmem:[#allocation16 + $0x424] ss:$8 sps:$4 sm:$0xff]  }
 0x162   :  { %v275_v47 = vpop.f32.mrf.mxu0 }
 0x163   :  { %v276_v48 = vadd.f32 %v5720_v46, %v275_v47  ;;  %v6562_v46 = vld [vmem:[#allocation16 + $0x2b4] ss:$8 sps:$4 sm:$0xff]   ;;  %v6560_v47 = vld [vmem:[#allocation16 + $0x2b0] ss:$8 sps:$4 sm:$0xff]  }
 0x164   :  { %v6378_v49 = vpop.f32.mrf.mxu0 }
 0x165   :  { %v281_v50 = vpack.c.bf16 %v276_v48, %v276_v48  ;;  %v6565_v48 = vld [vmem:[#allocation16 + $0x2a4] ss:$8 sps:$4 sm:$0xff]   ;;  %v6563_v49 = vld [vmem:[#allocation16 + $0x2a0] ss:$8 sps:$4 sm:$0xff]  }
 0x166   :  { %v278_v51 = vpop.f32.mrf.mxu0 }
 0x167   :  { %6397 = vmatmul.mubr.bf16.vlgmr.msra.gmra.mxu1 %v281_v50  ;;  %v6568_v50 = vld [vmem:[#allocation16 + $0x294] ss:$8 sps:$4 sm:$0xff]   ;;  %v6566_v51 = vld [vmem:[#allocation16 + $0x290] ss:$8 sps:$4 sm:$0xff]  }
 0x168   :  { %v6379_v52 = vpop.f32.mrf.mxu0  ;;  %689 = vmatprep.mubr.bf16.mxu1 %v7682_v19  ;;  %658 = vmatpush1.bf16.msra.mxu1 %v6503_v58  ;;  %v6580_v58 = vld [vmem:[#allocation17 + $0xd4] ss:$8 sps:$4 sm:$0xff]  }
 0x169   :  { %659 = vmatprep.subr.bf16.mxu1 %v6511_v61  ;;  %v6571_v52 = vld [vmem:[#allocation16 + $0x284] ss:$8 sps:$4 sm:$0xff]   ;;  %v6581_v61 = vld [vmem:[#allocation17 + $0xc0] ss:$8 sps:$4 sm:$0xff]  }
 0x16c   :  { %660 = vmatpush1.bf16.msra.mxu1 %v6509_v62  ;;  %v6586_v62 = vld [vmem:[#allocation17 + $0xb4] ss:$8 sps:$4 sm:$0xff]  }
 0x16d   :  { %661 = vmatprep.subr.bf16.mxu1 %v6517_v2 }
 0x170   :  { %662 = vmatpush1.bf16.msra.mxu1 %v6515_v3 }
 0x171   :  { %663 = vmatprep.subr.bf16.mxu1 %v6523_v6  ;;  %v6590_v6 = vld [vmem:[#allocation17 + $0x90] ss:$8 sps:$4 sm:$0xff]  }
 0x174   :  { %664 = vmatpush1.bf16.msra.mxu1 %v6521_v7 }
 0x175   :  { %665 = vmatprep.subr.bf16.mxu1 %v6529_v10  ;;  %v6593_v10 = vld [vmem:[#allocation17 + $0x80] ss:$8 sps:$4 sm:$0xff]  }
 0x178   :  { %666 = vmatpush1.bf16.msra.mxu1 %v6527_v11 }
 0x179   :  { %667 = vmatprep.subr.bf16.mxu1 %v6535_v14  ;;  %v6596_v14 = vld [vmem:[#allocation16 + $0x470] ss:$8 sps:$4 sm:$0xff]  }
 0x17c   :  { %668 = vmatpush1.bf16.msra.mxu1 %v6533_v15 }
 0x17d   :  { %669 = vmatprep.subr.bf16.mxu1 %v6541_v18  ;;  %v6604_v18 = vld [vmem:[#allocation16 + $0x454] ss:$8 sps:$4 sm:$0xff]  }
 0x180   :  { %670 = vmatpush1.bf16.msra.mxu1 %v6539_v20  ;;  %v6602_v20 = vld [vmem:[#allocation16 + $0x450] ss:$8 sps:$4 sm:$0xff]  }
 0x181   :  { %671 = vmatprep.subr.bf16.mxu1 %v6547_v23  ;;  %v6610_v23 = vld [vmem:[#allocation16 + $0x434] ss:$8 sps:$4 sm:$0xff]  }
 0x182   :  { %v7840_v2 = vpop.f32.mrf.mxu0 }
 0x184   :  { %672 = vmatpush1.bf16.msra.mxu1 %v6545_v24  ;;  %v7842_v3 = vpop.f32.mrf.mxu0  ;;  %v6608_v24 = vld [vmem:[#allocation16 + $0x430] ss:$8 sps:$4 sm:$0xff]  }
 0x186   :  { %v545_v5 = vpop.f32.mrf.mxu0 }
 0x187   :  { %v6668_v5 = vld [vmem:[#allocation17 + $0x1f0] ss:$8 sps:$4 sm:$0xff]  }
 0x188   :  { %v546_v7 = vpop.f32.mrf.mxu0 }
 0x189   :  { %v6671_v7 = vld [vmem:[#allocation17 + $0x1e0] ss:$8 sps:$4 sm:$0xff]  }
 0x1a2   :  { %v7844_v9 = vpop.f32.mrf.mxu0 }
 0x1a4   :  { %v7846_v11 = vpop.f32.mrf.mxu0 }
 0x1a6   :  { %v917_v13 = vpop.f32.mrf.mxu0 }
 0x1a7   :  { %v6677_v13 = vld [vmem:[#allocation17 + $0x1c0] ss:$8 sps:$4 sm:$0xff]  }
 0x1a8   :  { %v918_v15 = vpop.f32.mrf.mxu0 }
 0x1a9   :  { %v6680_v15 = vld [vmem:[#allocation17 + $0x1b0] ss:$8 sps:$4 sm:$0xff]  }
 0x227   :  { %v385_v27 = vpop.f32.mrf.mxu1 }
 0x228   :  { %v386_v28 = vadd.f32 %v5726_v26, %v385_v27  ;;  %v6611_v26 = vld [vmem:[#allocation16 + $0x420] ss:$8 sps:$4 sm:$0xff]   ;;  %v6616_v27 = vld [vmem:[#allocation16 + $0x414] ss:$8 sps:$4 sm:$0xff]  }
 0x229   :  { %v6398_v29 = vpop.f32.mrf.mxu1 }
 0x22a   :  { %v5735_v30 = vmul.f32 -1.442695, %v386_v28  ;;  %v6619_v29 = vld [vmem:[#allocation16 + $0x404] ss:$8 sps:$4 sm:$0xff]  }
 0x22b   :  { %v388_v31 = vpop.f32.mrf.mxu1 }
 0x22c   :  { %7292 = vpow2.f32 %v5735_v30  ;;  %v6617_v30 = vld [vmem:[#allocation16 + $0x400] ss:$8 sps:$4 sm:$0xff]   ;;  %v6622_v31 = vld [vmem:[#allocation17 + $0x174] ss:$8 sps:$4 sm:$0xff]  }
 0x22d   :  { %v6399_v32 = vpop.f32.mrf.mxu1 }
 0x22e   :  { %v6620_v32 = vld [vmem:[#allocation17 + $0x170] ss:$8 sps:$4 sm:$0xff]  }
 0x239   :  { %v7293_v34 = vpop.eup %7292 }
 0x23a   :  { %v394_v35 = vadd.f32 1.0, %v7293_v34  ;;  %v6625_v34 = vld [vmem:[#allocation17 + $0x164] ss:$8 sps:$4 sm:$0xff]  }
 0x23c   :  { %7294 = vrcp.f32 %v394_v35  ;;  %v7850_v35 = vld [vmem:[#allocation5] sm:$0xf] }
 0x249   :  { %v7295_v36 = vpop.eup %7294 }
 0x24a   :  { %v397_v37 = vmul.f32 %v7295_v36, %v386_v28  ;;  %v6614_v28 = vld [vmem:[#allocation16 + $0x410] ss:$8 sps:$4 sm:$0xff]   ;;  %v6623_v36 = vld [vmem:[#allocation17 + $0x160] ss:$8 sps:$4 sm:$0xff]  }
 0x24c   :  { %v7833_v39 = vpack.c.bf16 %v397_v37, %v397_v37  ;;  %v6628_v37 = vld [vmem:[#allocation17 + $0x154] ss:$8 sps:$4 sm:$0xff]  }
 0x24e   :  { %690 = vmatmul.mubr.bf16.vlgmr.msra.gmra.mxu1 %v7833_v39  ;;  %1274 = vmatmul.mubr.bf16.vlgmr.msra.gmra.mxu0 %v7833_v39 }
 0x24f   :  { %1465 = vmatpush1.bf16.msra.mxu0 %v6548_v38  ;;  %1496 = vmatprep.mubr.bf16.mxu0 %v7682_v19  ;;  %v6626_v38 = vld [vmem:[#allocation17 + $0x150] ss:$8 sps:$4 sm:$0xff]  }
 0x250   :  { %1466 = vmatprep.subr.bf16.mxu0 %v6553_v40  ;;  %v6631_v40 = vld [vmem:[#allocation17 + $0x144] ss:$8 sps:$4 sm:$0xff]  }
 0x253   :  { %1467 = vmatpush1.bf16.msra.mxu0 %v6551_v41  ;;  %v6629_v41 = vld [vmem:[#allocation17 + $0x140] ss:$8 sps:$4 sm:$0xff]  }
 0x254   :  { %1468 = vmatprep.subr.bf16.mxu0 %v6556_v42  ;;  %v6634_v42 = vld [vmem:[#allocation17 + $0x134] ss:$8 sps:$4 sm:$0xff]  }
 0x257   :  { %1469 = vmatpush1.bf16.msra.mxu0 %v6554_v43  ;;  %v6632_v43 = vld [vmem:[#allocation17 + $0x130] ss:$8 sps:$4 sm:$0xff]  }
 0x258   :  { %1470 = vmatprep.subr.bf16.mxu0 %v6559_v44  ;;  %v6637_v44 = vld [vmem:[#allocation17 + $0x124] ss:$8 sps:$4 sm:$0xff]  }
 0x25b   :  { %1471 = vmatpush1.bf16.msra.mxu0 %v6557_v45  ;;  %v6635_v45 = vld [vmem:[#allocation17 + $0x120] ss:$8 sps:$4 sm:$0xff]  }
 0x25c   :  { %1472 = vmatprep.subr.bf16.mxu0 %v6562_v46  ;;  %v6640_v46 = vld [vmem:[#allocation17 + $0x114] ss:$8 sps:$4 sm:$0xff]  }
 0x25f   :  { %1473 = vmatpush1.bf16.msra.mxu0 %v6560_v47  ;;  %v6638_v47 = vld [vmem:[#allocation17 + $0x110] ss:$8 sps:$4 sm:$0xff]  }
 0x260   :  { %1474 = vmatprep.subr.bf16.mxu0 %v6565_v48  ;;  %v6643_v48 = vld [vmem:[#allocation17 + $0x104] ss:$8 sps:$4 sm:$0xff]  }
 0x263   :  { %1475 = vmatpush1.bf16.msra.mxu0 %v6563_v49  ;;  %v6641_v49 = vld [vmem:[#allocation17 + $0x100] ss:$8 sps:$4 sm:$0xff]  }
 0x264   :  { %1476 = vmatprep.subr.bf16.mxu0 %v6568_v50  ;;  %v6646_v50 = vld [vmem:[#allocation16 + $0x5f4] ss:$8 sps:$4 sm:$0xff]  }
 0x267   :  { %1477 = vmatpush1.bf16.msra.mxu0 %v6566_v51  ;;  %v6644_v51 = vld [vmem:[#allocation16 + $0x5f0] ss:$8 sps:$4 sm:$0xff]  }
 0x268   :  { %1478 = vmatprep.subr.bf16.mxu0 %v6571_v52  ;;  %v6649_v52 = vld [vmem:[#allocation16 + $0x5e4] ss:$8 sps:$4 sm:$0xff]  }
 0x26b   :  { %1479 = vmatpush1.bf16.msra.mxu0 %v6569_v53  ;;  %v6647_v53 = vld [vmem:[#allocation16 + $0x5e0] ss:$8 sps:$4 sm:$0xff]  }
 0x26c   :  { %1827 = vmatprep.subr.bf16.mxu0 %v6574_v54  ;;  %v6652_v54 = vld [vmem:[#allocation16 + $0x5d4] ss:$8 sps:$4 sm:$0xff]  }
 0x26e   :  { %1497 = vmatmul.mubr.bf16.vlgmr.msra.gmra.mxu0 %v7826_v33  ;;  %v6587_v33 = vld [vmem:[#allocation17 + $0xa0] ss:$8 sps:$4 sm:$0xff]  }
 0x26f   :  { %1828 = vmatpush1.bf16.msra.mxu0 %v6572_v55  ;;  %1859 = vmatprep.mubr.bf16.mxu0 %v7682_v19  ;;  %v6650_v55 = vld [vmem:[#allocation16 + $0x5d0] ss:$8 sps:$4 sm:$0xff]  }
 0x270   :  { %1829 = vmatprep.subr.bf16.mxu0 %v6577_v56  ;;  %v6655_v56 = vld [vmem:[#allocation16 + $0x5c4] ss:$8 sps:$4 sm:$0xff]  }
 0x273   :  { %1830 = vmatpush1.bf16.msra.mxu0 %v6575_v57  ;;  %v6653_v57 = vld [vmem:[#allocation16 + $0x5c0] ss:$8 sps:$4 sm:$0xff]  }
 0x274   :  { %1831 = vmatprep.subr.bf16.mxu0 %v6580_v58  ;;  %v6658_v58 = vld [vmem:[#allocation16 + $0x5b4] ss:$8 sps:$4 sm:$0xff]  }
 0x277   :  { %1832 = vmatpush1.bf16.msra.mxu0 %v6578_v59  ;;  %v6656_v59 = vld [vmem:[#allocation16 + $0x5b0] ss:$8 sps:$4 sm:$0xff]  }
 0x278   :  { %1833 = vmatprep.subr.bf16.mxu0 %v6583_v60  ;;  %v6661_v60 = vld [vmem:[#allocation16 + $0x5a4] ss:$8 sps:$4 sm:$0xff]  }
 0x27b   :  { %1834 = vmatpush1.bf16.msra.mxu0 %v6581_v61  ;;  %v6659_v61 = vld [vmem:[#allocation16 + $0x5a0] ss:$8 sps:$4 sm:$0xff]  }
 0x27c   :  { %1835 = vmatprep.subr.bf16.mxu0 %v6586_v62  ;;  %v6664_v62 = vld [vmem:[#allocation16 + $0x594] ss:$8 sps:$4 sm:$0xff]  }
 0x27f   :  { %1836 = vmatpush1.bf16.msra.mxu0 %v6584_v63  ;;  %v6662_v63 = vld [vmem:[#allocation16 + $0x590] ss:$8 sps:$4 sm:$0xff]  }
 0x280   :  { %1837 = vmatprep.subr.bf16.mxu0 %v6589_v1  ;;  %v6667_v1 = vld [vmem:[#allocation16 + $0x584] ss:$8 sps:$4 sm:$0xff]  }
 0x283   :  { %1838 = vmatpush1.bf16.msra.mxu0 %v6587_v33  ;;  %v6665_v33 = vld [vmem:[#allocation16 + $0x580] ss:$8 sps:$4 sm:$0xff]  }
 0x284   :  { %1839 = vmatprep.subr.bf16.mxu0 %v6592_v4  ;;  %v6670_v4 = vld [vmem:[#allocation17 + $0x1f4] ss:$8 sps:$4 sm:$0xff]  }
 0x287   :  { %1840 = vmatpush1.bf16.msra.mxu0 %v6590_v6  ;;  %v6673_v6 = vld [vmem:[#allocation17 + $0x1e4] ss:$8 sps:$4 sm:$0xff]  }
 0x288   :  { %1841 = vmatprep.subr.bf16.mxu0 %v6595_v8  ;;  %v6676_v8 = vld [vmem:[#allocation17 + $0x1d4] ss:$8 sps:$4 sm:$0xff]  }
 0x28b   :  { %1842 = vmatpush1.bf16.msra.mxu0 %v6593_v10  ;;  %v6674_v10 = vld [vmem:[#allocation17 + $0x1d0] ss:$8 sps:$4 sm:$0xff]  }
 0x28c   :  { %2050 = vmatprep.subr.bf16.mxu0 %v6598_v12  ;;  %v6679_v12 = vld [vmem:[#allocation17 + $0x1c4] ss:$8 sps:$4 sm:$0xff]  }
 0x28e   :  { %1860 = vmatmul.mubr.bf16.vlgmr.msra.gmra.mxu0 %v7833_v39 }
 0x28f   :  { %2051 = vmatpush1.bf16.msra.mxu0 %v6596_v14  ;;  %2082 = vmatprep.mubr.bf16.mxu0 %v7682_v19  ;;  %v6682_v14 = vld [vmem:[#allocation17 + $0x1b4] ss:$8 sps:$4 sm:$0xff]  }
 0x290   :  { %2052 = vmatprep.subr.bf16.mxu0 %v6601_v16  ;;  %v6685_v16 = vld [vmem:[#allocation17 + $0x1a4] ss:$8 sps:$4 sm:$0xff]  }
 0x293   :  { %2053 = vmatpush1.bf16.msra.mxu0 %v6599_v17  ;;  %v6683_v17 = vld [vmem:[#allocation17 + $0x1a0] ss:$8 sps:$4 sm:$0xff]  }
 0x294   :  { %2054 = vmatprep.subr.bf16.mxu0 %v6604_v18  ;;  %v6688_v18 = vld [vmem:[#allocation17 + $0x194] ss:$8 sps:$4 sm:$0xff]  }
 0x297   :  { %2055 = vmatpush1.bf16.msra.mxu0 %v6602_v20  ;;  %v417_v20 = vlaneseq }
 0x298   :  { %2056 = vmatprep.subr.bf16.mxu0 %v6607_v21  ;;  %v6686_v21 = vld [vmem:[#allocation17 + $0x190] ss:$8 sps:$4 sm:$0xff]  }
 0x29b   :  { %2057 = vmatpush1.bf16.msra.mxu0 %v6605_v22  ;;  %v6691_v22 = vld [vmem:[#allocation17 + $0x184] ss:$8 sps:$4 sm:$0xff]  }
 0x29c   :  { %2058 = vmatprep.subr.bf16.mxu0 %v6610_v23  ;;  %v7858_v23 = vshrl.u32 %v417_v20, 7  ;;  %v6730_v20 = vld [vmem:[#allocation17 + $0x234] ss:$8 sps:$4 sm:$0xff]  }
 0x29f   :  { %2059 = vmatpush1.bf16.msra.mxu0 %v6608_v24  ;;  %v7861_v24 = vsub.s32 0, %v7858_v23 }
 0x2a0   :  { %2060 = vmatprep.subr.bf16.mxu0 %v6613_v25  ;;  %v6689_v25 = vld [vmem:[#allocation17 + $0x180] ss:$8 sps:$4 sm:$0xff]  }
 0x2a3   :  { %2061 = vmatpush1.bf16.msra.mxu0 %v6611_v26  ;;  %v6694_v26 = vld [vmem:[#allocation16 + $0x774] ss:$8 sps:$4 sm:$0xff]  }
 0x2a4   :  { %2062 = vmatprep.subr.bf16.mxu0 %v6616_v27  ;;  %v565_v27 = vld [vmem:[#allocation14 + $0x1] ss:$2 sm:$0x3] }
 0x2a7   :  { %2063 = vmatpush1.bf16.msra.mxu0 %v6614_v28  ;;  %v415_v28 = vld [vmem:[#allocation14] ss:$2 sm:$0x3] }
 0x2a8   :  { %2064 = vmatprep.subr.bf16.mxu0 %v6619_v29  ;;  %v7864_v29 = vsub.s32 1, %v7858_v23 }
 0x2ab   :  { %2065 = vmatpush1.bf16.msra.mxu0 %v6617_v30  ;;  %v6692_v30 = vld [vmem:[#allocation16 + $0x770] ss:$8 sps:$4 sm:$0xff]  }
 0x2ac   :  { %2413 = vmatprep.subr.bf16.mxu0 %v6622_v31  ;;  %v570_v31 = vrot.slane %v565_v27, %v7861_v24 }
 0x2ae   :  { %2083 = vmatmul.mubr.bf16.vlgmr.msra.gmra.mxu0 %v7850_v35 }
 0x2af   :  { %2414 = vmatpush1.bf16.msra.mxu0 %v6620_v32  ;;  %2445 = vmatprep.mubr.bf16.mxu0 %v7682_v19  ;;  %v6697_v32 = vld [vmem:[#allocation16 + $0x764] ss:$8 sps:$4 sm:$0xff]  }
 0x2b0   :  { %2415 = vmatprep.subr.bf16.mxu0 %v6625_v34  ;;  %v420_v34 = vrot.slane %v415_v28, %v7861_v24 }
 0x2b3   :  { %2416 = vmatpush1.bf16.msra.mxu0 %v6623_v36  ;;  %v574_v36 = vrot.slane %v565_v27, %v7864_v29  ;;  %v6734_v27 = vld [vmem:[#allocation17 + $0x210] ss:$8 sps:$4 sm:$0xff]  }
 0x2b4   :  { %2417 = vmatprep.subr.bf16.mxu0 %v6628_v37 }
 0x2b7   :  { %2418 = vmatpush1.bf16.msra.mxu0 %v6626_v38 }
 0x2b8   :  { %2419 = vmatprep.subr.bf16.mxu0 %v6631_v40  ;;  %v424_v40 = vrot.slane %v415_v28, %v7864_v29  ;;  %v6739_v28 = vld [vmem:[#allocation17 + $0x204] ss:$8 sps:$4 sm:$0xff]  }
 0x2bb   :  { %2420 = vmatpush1.bf16.msra.mxu0 %v6629_v41 }
 0x2bc   :  { %2421 = vmatprep.subr.bf16.mxu0 %v6634_v42  ;;  %v6695_v42 = vld [vmem:[#allocation16 + $0x760] ss:$8 sps:$4 sm:$0xff]  }
 0x2bf   :  { %2422 = vmatpush1.bf16.msra.mxu0 %v6632_v43 }
 0x2c0   :  { %2423 = vmatprep.subr.bf16.mxu0 %v6637_v44 }
 0x2c3   :  { %2424 = vmatpush1.bf16.msra.mxu0 %v6635_v45  ;;  %v6700_v45 = vld [vmem:[#allocation16 + $0x754] ss:$8 sps:$4 sm:$0xff]  }
 0x2c4   :  { %2425 = vmatprep.subr.bf16.mxu0 %v6640_v46  ;;  %v542_v46 = vadd.f32 %v7840_v2, %v420_v34  ;;  %v6745_v34 = vld [vmem:[#allocation16 + $0x8e4] ss:$8 sps:$4 sm:$0xff]  }
 0x2c7   :  { %2426 = vmatpush1.bf16.msra.mxu0 %v6638_v47 }
 0x2c8   :  { %2427 = vmatprep.subr.bf16.mxu0 %v6643_v48 }
 0x2cb   :  { %2428 = vmatpush1.bf16.msra.mxu0 %v6641_v49 }
 0x2cc   :  { %2636 = vmatprep.subr.bf16.mxu0 %v6646_v50 }
 0x2ce   :  { %2446 = vmatmul.mubr.bf16.vlgmr.msra.gmra.mxu0 %v7833_v39 }
 0x2cf   :  { %2637 = vmatpush1.bf16.msra.mxu0 %v6644_v51  ;;  %2668 = vmatprep.mubr.bf16.mxu0 %v7682_v19  ;;  %v544_v51 = vadd.f32 %v7842_v3, %v424_v40  ;;  %v6704_v3 = vld [vmem:[#allocation16 + $0x730] ss:$8 sps:$4 sm:$0xff]  }
 0x2d0   :  { %2638 = vmatprep.subr.bf16.mxu0 %v6649_v52 }
 0x2d3   :  { %2639 = vmatpush1.bf16.msra.mxu0 %v6647_v53  ;;  %v6698_v53 = vld [vmem:[#allocation16 + $0x750] ss:$8 sps:$4 sm:$0xff]  }
 0x2d4   :  { %2640 = vmatprep.subr.bf16.mxu0 %v6652_v54 }
 0x2d7   :  { %2641 = vmatpush1.bf16.msra.mxu0 %v6650_v55 }
 0x2d8   :  { %2642 = vmatprep.subr.bf16.mxu0 %v6655_v56  ;;  %v6703_v56 = vld [vmem:[#allocation16 + $0x744] ss:$8 sps:$4 sm:$0xff]  }
 0x2db   :  { %2643 = vmatpush1.bf16.msra.mxu0 %v6653_v57 }
 0x2dc   :  { %2644 = vmatprep.subr.bf16.mxu0 %v6658_v58 }
 0x2df   :  { %2645 = vmatpush1.bf16.msra.mxu0 %v6656_v59  ;;  %v6701_v59 = vld [vmem:[#allocation16 + $0x740] ss:$8 sps:$4 sm:$0xff]  }
 0x2e0   :  { %2646 = vmatprep.subr.bf16.mxu0 %v6661_v60  ;;  %v6706_v60 = vld [vmem:[#allocation16 + $0x734] ss:$8 sps:$4 sm:$0xff]  }
 0x2e3   :  { %2647 = vmatpush1.bf16.msra.mxu0 %v6659_v61  ;;  %v6709_v61 = vld [vmem:[#allocation16 + $0x724] ss:$8 sps:$4 sm:$0xff]  }
 0x2e4   :  { %2648 = vmatprep.subr.bf16.mxu0 %v6664_v62  ;;  %v6707_v62 = vld [vmem:[#allocation16 + $0x720] ss:$8 sps:$4 sm:$0xff]  }
 0x2e7   :  { %2649 = vmatpush1.bf16.msra.mxu0 %v6662_v63  ;;  %v6712_v63 = vld [vmem:[#allocation16 + $0x714] ss:$8 sps:$4 sm:$0xff]  }
 0x2e8   :  { %2650 = vmatprep.subr.bf16.mxu0 %v6667_v1  ;;  %v6710_v1 = vld [vmem:[#allocation16 + $0x710] ss:$8 sps:$4 sm:$0xff]  }
 0x2eb   :  { %2651 = vmatpush1.bf16.msra.mxu0 %v6665_v33  ;;  %v6715_v33 = vld [vmem:[#allocation16 + $0x704] ss:$8 sps:$4 sm:$0xff]  }
 0x2ec   :  { %2999 = vmatprep.subr.bf16.mxu0 %v6670_v4  ;;  %v6713_v4 = vld [vmem:[#allocation16 + $0x700] ss:$8 sps:$4 sm:$0xff]  }
 0x2ee   :  { %2669 = vmatmul.mubr.bf16.vlgmr.msra.gmra.mxu0 %v7850_v35 }
 0x2ef   :  { %3000 = vmatpush1.bf16.msra.mxu0 %v6668_v5  ;;  %3031 = vmatprep.mubr.bf16.mxu0 %v7682_v19  ;;  %v6718_v5 = vld [vmem:[#allocation17 + $0x274] ss:$8 sps:$4 sm:$0xff]  }
 0x2f0   :  { %3001 = vmatprep.subr.bf16.mxu0 %v6673_v6  ;;  %v6716_v6 = vld [vmem:[#allocation17 + $0x270] ss:$8 sps:$4 sm:$0xff]  }
 0x2f3   :  { %3002 = vmatpush1.bf16.msra.mxu0 %v6671_v7  ;;  %v6721_v7 = vld [vmem:[#allocation17 + $0x264] ss:$8 sps:$4 sm:$0xff]  }
 0x2f4   :  { %3003 = vmatprep.subr.bf16.mxu0 %v6676_v8 }
 0x2f7   :  { %3004 = vmatpush1.bf16.msra.mxu0 %v6674_v10  ;;  %v6719_v10 = vld [vmem:[#allocation17 + $0x260] ss:$8 sps:$4 sm:$0xff]  }
 0x2f8   :  { %3005 = vmatprep.subr.bf16.mxu0 %v6679_v12  ;;  %v6724_v12 = vld [vmem:[#allocation17 + $0x254] ss:$8 sps:$4 sm:$0xff]  }
 0x2fb   :  { %3006 = vmatpush1.bf16.msra.mxu0 %v6677_v13 }
 0x2fc   :  { %3007 = vmatprep.subr.bf16.mxu0 %v6682_v14 }
 0x2ff   :  { %3008 = vmatpush1.bf16.msra.mxu0 %v6680_v15  ;;  %v6722_v15 = vld [vmem:[#allocation17 + $0x250] ss:$8 sps:$4 sm:$0xff]  }
 0x300   :  { %3009 = vmatprep.subr.bf16.mxu0 %v6685_v16  ;;  %v6727_v16 = vld [vmem:[#allocation17 + $0x244] ss:$8 sps:$4 sm:$0xff]  }
 0x303   :  { %3010 = vmatpush1.bf16.msra.mxu0 %v6683_v17 }
 0x304   :  { %3011 = vmatprep.subr.bf16.mxu0 %v6688_v18  ;;  %v6725_v18 = vld [vmem:[#allocation17 + $0x240] ss:$8 sps:$4 sm:$0xff]  }
 0x307   :  { %3012 = vmatpush1.bf16.msra.mxu0 %v6686_v21  ;;  %v6728_v21 = vld [vmem:[#allocation17 + $0x230] ss:$8 sps:$4 sm:$0xff]  }
 0x308   :  { %3013 = vmatprep.subr.bf16.mxu0 %v6691_v22  ;;  %v6733_v22 = vld [vmem:[#allocation17 + $0x224] ss:$8 sps:$4 sm:$0xff]  }
 0x30b   :  { %3014 = vmatpush1.bf16.msra.mxu0 %v6689_v25  ;;  %v6731_v25 = vld [vmem:[#allocation17 + $0x220] ss:$8 sps:$4 sm:$0xff]  }
 0x30c   :  { %3222 = vmatprep.subr.bf16.mxu0 %v6694_v26  ;;  %v6736_v26 = vld [vmem:[#allocation17 + $0x214] ss:$8 sps:$4 sm:$0xff]  }
 0x30e   :  { %3032 = vmatmul.mubr.bf16.vlgmr.msra.gmra.mxu0 %v7833_v39  ;;  %v691_v37 = vpop.f32.mrf.mxu1  ;;  %v7870_v38 = vpop.f32.mrf.mxu0 }
 0x30f   :  { %v692_v41 = vadd.f32 %v691_v37, %v570_v31  ;;  %3223 = vmatpush1.bf16.msra.mxu0 %v6692_v30  ;;  %3254 = vmatprep.mubr.bf16.mxu0 %v7682_v19  ;;  %v6737_v30 = vld [vmem:[#allocation17 + $0x200] ss:$8 sps:$4 sm:$0xff]   ;;  %v6742_v31 = vld [vmem:[#allocation16 + $0x8f4] ss:$8 sps:$4 sm:$0xff]  }
 0x310   :  { %v693_v43 = vpop.f32.mrf.mxu1  ;;  %v7874_v44 = vpop.f32.mrf.mxu0  ;;  %3224 = vmatprep.subr.bf16.mxu0 %v6697_v32  ;;  %v6740_v32 = vld [vmem:[#allocation16 + $0x8f0] ss:$8 sps:$4 sm:$0xff]   ;;  %v6743_v37 = vld [vmem:[#allocation16 + $0x8e0] ss:$8 sps:$4 sm:$0xff]  }
 0x311   :  { %v698_v47 = vadd.f32 1.0, %v692_v41  ;;  %v694_v48 = vadd.f32 %v693_v43, %v574_v36  ;;  %v6748_v41 = vld [vmem:[#allocation16 + $0x8d4] ss:$8 sps:$4 sm:$0xff]   ;;  %v6746_v43 = vld [vmem:[#allocation16 + $0x8d0] ss:$8 sps:$4 sm:$0xff]  }
 0x312   :  { %v695_v49 = vpop.f32.mrf.mxu1  ;;  %v1279_v50 = vpop.f32.mrf.mxu0 }
 0x313   :  { %v699_v52 = vadd.f32 1.0, %v694_v48  ;;  %3225 = vmatpush1.bf16.msra.mxu0 %v6695_v42  ;;  %v7878_v57 = vmul.f32 %v698_v47, %v542_v46  ;;  %v6751_v46 = vld [vmem:[#allocation16 + $0x8c4] ss:$8 sps:$4 sm:$0xff]   ;;  %v6749_v47 = vld [vmem:[#allocation16 + $0x8c0] ss:$8 sps:$4 sm:$0xff]  }
 0x314   :  { %v696_v54 = vpop.f32.mrf.mxu1  ;;  %v1280_v55 = vpop.f32.mrf.mxu0  ;;  %3226 = vmatprep.subr.bf16.mxu0 %v6700_v45  ;;  %v6754_v48 = vld [vmem:[#allocation16 + $0x8b4] ss:$8 sps:$4 sm:$0xff]   ;;  %v6752_v49 = vld [vmem:[#allocation16 + $0x8b0] ss:$8 sps:$4 sm:$0xff]   ;;  %v6757_v50 = vld [vmem:[#allocation16 + $0x8a4] ss:$8 sps:$4 sm:$0xff]  }
 0x315   :  { %v7880_v58 = vmul.f32 %v699_v52, %v544_v51  ;;  %v6755_v51 = vld [vmem:[#allocation16 + $0x8a0] ss:$8 sps:$4 sm:$0xff]   ;;  %v6760_v52 = vld [vmem:[#allocation16 + $0x894] ss:$8 sps:$4 sm:$0xff]   ;;  %v6763_v54 = vld [vmem:[#allocation16 + $0x884] ss:$8 sps:$4 sm:$0xff]  }
 0x316   :  { %v6761_v55 = vld [vmem:[#allocation16 + $0x880] ss:$8 sps:$4 sm:$0xff]  }
 0x317   :  { %3227 = vmatpush1.bf16.msra.mxu0 %v6698_v53  ;;  %v702_v2 = vadd.f32 %v7880_v58, %v7878_v57  ;;  %v6758_v53 = vld [vmem:[#allocation16 + $0x890] ss:$8 sps:$4 sm:$0xff]  }
 0x318   :  { %3228 = vmatprep.subr.bf16.mxu0 %v6703_v56  ;;  %v6766_v56 = vld [vmem:[#allocation17 + $0x2f4] ss:$8 sps:$4 sm:$0xff]  }
 0x319   :  { %703 = vadd.xlane.f32.xlu0 %v702_v2  ;;  %v6769_v2 = vld [vmem:[#allocation17 + $0x2e4] ss:$8 sps:$4 sm:$0xff]  }
 0x31b   :  { %3229 = vmatpush1.bf16.msra.mxu0 %v6701_v59  ;;  %v6764_v59 = vld [vmem:[#allocation17 + $0x2f0] ss:$8 sps:$4 sm:$0xff]  }
 0x31c   :  { %3230 = vmatprep.subr.bf16.mxu0 %v6706_v60 }
 0x31f   :  { %3231 = vmatpush1.bf16.msra.mxu0 %v6704_v3  ;;  %v6767_v3 = vld [vmem:[#allocation17 + $0x2e0] ss:$8 sps:$4 sm:$0xff]  }
 0x320   :  { %3232 = vmatprep.subr.bf16.mxu0 %v6709_v61  ;;  %v6772_v61 = vld [vmem:[#allocation17 + $0x2d4] ss:$8 sps:$4 sm:$0xff]  }
 0x323   :  { %3233 = vmatpush1.bf16.msra.mxu0 %v6707_v62 }
 0x324   :  { %3234 = vmatprep.subr.bf16.mxu0 %v6712_v63 }
 0x327   :  { %3235 = vmatpush1.bf16.msra.mxu0 %v6710_v1  ;;  %v6770_v1 = vld [vmem:[#allocation17 + $0x2d0] ss:$8 sps:$4 sm:$0xff]  }
 0x328   :  { %3236 = vmatprep.subr.bf16.mxu0 %v6715_v33  ;;  %v6775_v33 = vld [vmem:[#allocation17 + $0x2c4] ss:$8 sps:$4 sm:$0xff]  }
 0x32b   :  { %3237 = vmatpush1.bf16.msra.mxu0 %v6713_v4 }
 0x32c   :  { %3585 = vmatprep.subr.bf16.mxu0 %v6718_v5  ;;  %v6773_v5 = vld [vmem:[#allocation17 + $0x2c0] ss:$8 sps:$4 sm:$0xff]  }
 0x32e   :  { %3255 = vmatmul.mubr.bf16.vlgmr.msra.gmra.mxu0 %v7850_v35  ;;  %v7885_v8 = vpop.f32.mrf.mxu0 }
 0x32f   :  { %3586 = vmatpush1.bf16.msra.mxu0 %v6716_v6  ;;  %3617 = vmatprep.mubr.bf16.mxu0 %v7682_v19  ;;  %v6778_v6 = vld [vmem:[#allocation17 + $0x2b4] ss:$8 sps:$4 sm:$0xff]  }
 0x330   :  { %3587 = vmatprep.subr.bf16.mxu0 %v6721_v7  ;;  %v7888_v13 = vpop.f32.mrf.mxu0  ;;  %v6776_v7 = vld [vmem:[#allocation17 + $0x2b0] ss:$8 sps:$4 sm:$0xff]  }
 0x332   :  { %v1502_v14 = vpop.f32.mrf.mxu0 }
 0x333   :  { %3588 = vmatpush1.bf16.msra.mxu0 %v6719_v10  ;;  %v6781_v10 = vld [vmem:[#allocation17 + $0x2a4] ss:$8 sps:$4 sm:$0xff]   ;;  %v6784_v14 = vld [vmem:[#allocation17 + $0x294] ss:$8 sps:$4 sm:$0xff]  }
 0x334   :  { %3589 = vmatprep.subr.bf16.mxu0 %v6724_v12  ;;  %v1503_v17 = vpop.f32.mrf.mxu0  ;;  %v6779_v12 = vld [vmem:[#allocation17 + $0x2a0] ss:$8 sps:$4 sm:$0xff]  }
 0x335   :  { %v6785_v17 = vld [vmem:[#allocation17 + $0x280] ss:$8 sps:$4 sm:$0xff]  }
 0x337   :  { %3590 = vmatpush1.bf16.msra.mxu0 %v6722_v15  ;;  %v6782_v15 = vld [vmem:[#allocation17 + $0x290] ss:$8 sps:$4 sm:$0xff]  }
 0x338   :  { %3591 = vmatprep.subr.bf16.mxu0 %v6727_v16  ;;  %v6787_v16 = vld [vmem:[#allocation17 + $0x284] ss:$8 sps:$4 sm:$0xff]  }
 0x33b   :  { %3592 = vmatpush1.bf16.msra.mxu0 %v6725_v18  ;;  %v6790_v18 = vld [vmem:[#allocation16 + $0xa74] ss:$8 sps:$4 sm:$0xff]  }
 0x33c   :  { %3593 = vmatprep.subr.bf16.mxu0 %v6730_v20  ;;  %v6788_v20 = vld [vmem:[#allocation16 + $0xa70] ss:$8 sps:$4 sm:$0xff]  }
 0x33f   :  { %3594 = vmatpush1.bf16.msra.mxu0 %v6728_v21  ;;  %v6793_v21 = vld [vmem:[#allocation16 + $0xa64] ss:$8 sps:$4 sm:$0xff]  }
 0x340   :  { %3595 = vmatprep.subr.bf16.mxu0 %v6733_v22 }
 0x343   :  { %3596 = vmatpush1.bf16.msra.mxu0 %v6731_v25  ;;  %v6791_v25 = vld [vmem:[#allocation16 + $0xa60] ss:$8 sps:$4 sm:$0xff]  }
 0x344   :  { %3597 = vmatprep.subr.bf16.mxu0 %v6736_v26 }
 0x347   :  { %3598 = vmatpush1.bf16.msra.mxu0 %v6734_v27  ;;  %v6796_v27 = vld [vmem:[#allocation16 + $0xa54] ss:$8 sps:$4 sm:$0xff]  }
 0x348   :  { %3599 = vmatprep.subr.bf16.mxu0 %v6739_v28 }
 0x34b   :  { %3600 = vmatpush1.bf16.msra.mxu0 %v6737_v30  ;;  %v6794_v30 = vld [vmem:[#allocation16 + $0xa50] ss:$8 sps:$4 sm:$0xff]  }
 0x34c   :  { %3808 = vmatprep.subr.bf16.mxu0 %v6742_v31 }
 0x34e   :  { %v7890_v36 = vpop.f32.mrf.mxu0  ;;  %3618 = vmatmul.mubr.bf16.vlgmr.msra.gmra.mxu0 %v7833_v39 }
 0x34f   :  { %3809 = vmatpush1.bf16.msra.mxu0 %v6740_v32  ;;  %3840 = vmatprep.mubr.bf16.mxu0 %v7682_v19  ;;  %v6799_v32 = vld [vmem:[#allocation16 + $0xa44] ss:$8 sps:$4 sm:$0xff]  }
 0x350   :  { %v7894_v40 = vpop.f32.mrf.mxu0  ;;  %3810 = vmatprep.subr.bf16.mxu0 %v6745_v34  ;;  %v6884_v34 = vld [vmem:[#allocation16 + $0x70] ss:$8 sps:$4 sm:$0xff]  }
 0x352   :  { %v1865_v42 = vpop.f32.mrf.mxu0 }
 0x353   :  { %3811 = vmatpush1.bf16.msra.mxu0 %v6743_v37  ;;  %v6886_v37 = vld [vmem:[#allocation16 + $0x74] ss:$8 sps:$4 sm:$0xff]   ;;  %v6797_v42 = vld [vmem:[#allocation16 + $0xa40] ss:$8 sps:$4 sm:$0xff]  }
 0x354   :  { %v1866_v45 = vpop.f32.mrf.mxu0  ;;  %3812 = vmatprep.subr.bf16.mxu0 %v6748_v41  ;;  %v6889_v41 = vld [vmem:[#allocation16 + $0x64] ss:$8 sps:$4 sm:$0xff]   ;;  %1080 = vmatprep.subr.bf16.mxu1 %v6886_v37  ;;  %v6830_v37 = vld [vmem:[#allocation17 + $0x310] ss:$8 sps:$4 sm:$0xff]  }
 0x355   :  { %1081 = vmatpush1.bf16.msra.mxu1 %v6884_v34  ;;  %v6802_v45 = vld [vmem:[#allocation16 + $0xa34] ss:$8 sps:$4 sm:$0xff]  }
 0x356   :  { %1082 = vmatprep.subr.bf16.mxu1 %v6889_v41  ;;  %v6904_v34 = vld [vmem:[#allocation16 + $0x14] ss:$8 sps:$4 sm:$0xff]   ;;  %v6835_v41 = vld [vmem:[#allocation17 + $0x304] ss:$8 sps:$4 sm:$0xff]  }
 0x357   :  { %3813 = vmatpush1.bf16.msra.mxu0 %v6746_v43  ;;  %v6887_v43 = vld [vmem:[#allocation16 + $0x60] ss:$8 sps:$4 sm:$0xff]  }
 0x358   :  { %3814 = vmatprep.subr.bf16.mxu0 %v6751_v46  ;;  %v6800_v46 = vld [vmem:[#allocation16 + $0xa30] ss:$8 sps:$4 sm:$0xff]  }
 0x359   :  { %1083 = vmatpush1.bf16.msra.mxu1 %v6887_v43  ;;  %v6907_v43 = vld [vmem:[#allocation16 + $0x4] ss:$8 sps:$4 sm:$0xff]  }
 0x35b   :  { %3815 = vmatpush1.bf16.msra.mxu0 %v6749_v47  ;;  %v6805_v47 = vld [vmem:[#allocation16 + $0xa24] ss:$8 sps:$4 sm:$0xff]  }
 0x35c   :  { %3816 = vmatprep.subr.bf16.mxu0 %v6754_v48  ;;  %v6803_v48 = vld [vmem:[#allocation16 + $0xa20] ss:$8 sps:$4 sm:$0xff]  }
 0x35f   :  { %3817 = vmatpush1.bf16.msra.mxu0 %v6752_v49  ;;  %v6808_v49 = vld [vmem:[#allocation16 + $0xa14] ss:$8 sps:$4 sm:$0xff]  }
 0x360   :  { %3818 = vmatprep.subr.bf16.mxu0 %v6757_v50 }
 0x363   :  { %3819 = vmatpush1.bf16.msra.mxu0 %v6755_v51 }
 0x364   :  { %3820 = vmatprep.subr.bf16.mxu0 %v6760_v52  ;;  %v6806_v52 = vld [vmem:[#allocation16 + $0xa10] ss:$8 sps:$4 sm:$0xff]  }
 0x367   :  { %3821 = vmatpush1.bf16.msra.mxu0 %v6758_v53  ;;  %v6811_v53 = vld [vmem:[#allocation16 + $0xa04] ss:$8 sps:$4 sm:$0xff]  }
 0x368   :  { %3822 = vmatprep.subr.bf16.mxu0 %v6763_v54 }
 0x36b   :  { %3823 = vmatpush1.bf16.msra.mxu0 %v6761_v55 }
 0x36c   :  { %4171 = vmatprep.subr.bf16.mxu0 %v6766_v56  ;;  %v6809_v56 = vld [vmem:[#allocation16 + $0xa00] ss:$8 sps:$4 sm:$0xff]  }
 0x36e   :  { %3841 = vmatmul.mubr.bf16.vlgmr.msra.gmra.mxu0 %v7850_v35  ;;  %v7897_v60 = vpop.f32.mrf.mxu0 }
 0x36f   :  { %4172 = vmatpush1.bf16.msra.mxu0 %v6764_v59  ;;  %4203 = vmatprep.mubr.bf16.mxu0 %v7682_v19 }
 0x370   :  { %4173 = vmatprep.subr.bf16.mxu0 %v6769_v2  ;;  %v7900_v62 = vpop.f32.mrf.mxu0 }
 0x372   :  { %v2088_v63 = vpop.f32.mrf.mxu0 }
 0x373   :  { %4174 = vmatpush1.bf16.msra.mxu0 %v6767_v3  ;;  %v6814_v3 = vld [vmem:[#allocation17 + $0x374] ss:$8 sps:$4 sm:$0xff]   ;;  %v6812_v63 = vld [vmem:[#allocation17 + $0x370] ss:$8 sps:$4 sm:$0xff]  }
 0x374   :  { %4175 = vmatprep.subr.bf16.mxu0 %v6772_v61  ;;  %v2089_v4 = vpop.f32.mrf.mxu0 }
 0x377   :  { %4176 = vmatpush1.bf16.msra.mxu0 %v6770_v1  ;;  %v6815_v1 = vld [vmem:[#allocation17 + $0x360] ss:$8 sps:$4 sm:$0xff]  }
 0x378   :  { %4177 = vmatprep.subr.bf16.mxu0 %v6775_v33  ;;  %v6820_v33 = vld [vmem:[#allocation17 + $0x354] ss:$8 sps:$4 sm:$0xff]  }
 0x37b   :  { %4178 = vmatpush1.bf16.msra.mxu0 %v6773_v5 }
 0x37c   :  { %4179 = vmatprep.subr.bf16.mxu0 %v6778_v6  ;;  %v6818_v6 = vld [vmem:[#allocation17 + $0x350] ss:$8 sps:$4 sm:$0xff]  }
 0x37f   :  { %4180 = vmatpush1.bf16.msra.mxu0 %v6776_v7  ;;  %v6823_v7 = vld [vmem:[#allocation17 + $0x344] ss:$8 sps:$4 sm:$0xff]  }
 0x380   :  { %4181 = vmatprep.subr.bf16.mxu0 %v6781_v10 }
 0x383   :  { %4182 = vmatpush1.bf16.msra.mxu0 %v6779_v12  ;;  %v6892_v12 = vld [vmem:[#allocation16 + $0x54] ss:$8 sps:$4 sm:$0xff]  }
 0x384   :  { %4183 = vmatprep.subr.bf16.mxu0 %v6784_v14  ;;  %v6890_v14 = vld [vmem:[#allocation16 + $0x50] ss:$8 sps:$4 sm:$0xff]   ;;  %1084 = vmatprep.subr.bf16.mxu1 %v6892_v12  ;;  %v6917_v12 = vld [vmem:[#allocation16 + $0xc0] ss:$8 sps:$4 sm:$0xff]  }
 0x385   :  { %1085 = vmatpush1.bf16.msra.mxu1 %v6890_v14  ;;  %v6922_v14 = vld [vmem:[#allocation16 + $0xb4] ss:$8 sps:$4 sm:$0xff]  }
 0x387   :  { %4184 = vmatpush1.bf16.msra.mxu0 %v6782_v15  ;;  %v6821_v15 = vld [vmem:[#allocation17 + $0x340] ss:$8 sps:$4 sm:$0xff]  }
 0x388   :  { %4185 = vmatprep.subr.bf16.mxu0 %v6787_v16  ;;  %v6826_v16 = vld [vmem:[#allocation17 + $0x334] ss:$8 sps:$4 sm:$0xff]  }
 0x38b   :  { %4186 = vmatpush1.bf16.msra.mxu0 %v6785_v17  ;;  %v6893_v17 = vld [vmem:[#allocation16 + $0x40] ss:$8 sps:$4 sm:$0xff]  }
 0x38c   :  { %4394 = vmatprep.subr.bf16.mxu0 %v6790_v18  ;;  %v6895_v18 = vld [vmem:[#allocation16 + $0x44] ss:$8 sps:$4 sm:$0xff]  }
 0x38d   :  { %1086 = vmatprep.subr.bf16.mxu1 %v6895_v18  ;;  %v6925_v18 = vld [vmem:[#allocation16 + $0xa4] ss:$8 sps:$4 sm:$0xff]  }
 0x38e   :  { %v7902_v22 = vpop.f32.mrf.mxu0  ;;  %4204 = vmatmul.mubr.bf16.vlgmr.msra.gmra.mxu0 %v7833_v39  ;;  %1087 = vmatpush1.bf16.msra.mxu1 %v6893_v17  ;;  %v6920_v17 = vld [vmem:[#allocation16 + $0xb0] ss:$8 sps:$4 sm:$0xff]  }
 0x38f   :  { %4395 = vmatpush1.bf16.msra.mxu0 %v6788_v20  ;;  %4426 = vmatprep.mubr.bf16.mxu0 %v7682_v19  ;;  %v6898_v20 = vld [vmem:[#allocation16 + $0x34] ss:$8 sps:$4 sm:$0xff]  }
 0x390   :  { %v7906_v26 = vpop.f32.mrf.mxu0  ;;  %4396 = vmatprep.subr.bf16.mxu0 %v6793_v21  ;;  %v6824_v21 = vld [vmem:[#allocation17 + $0x330] ss:$8 sps:$4 sm:$0xff]   ;;  %1088 = vmatprep.subr.bf16.mxu1 %v6898_v20  ;;  %v6851_v20 = vld [vmem:[#allocation16 + $0xba0] ss:$8 sps:$4 sm:$0xff]  }
 0x392   :  { %v2451_v28 = vpop.f32.mrf.mxu0 }
 0x393   :  { %4397 = vmatpush1.bf16.msra.mxu0 %v6791_v25  ;;  %v6829_v25 = vld [vmem:[#allocation17 + $0x324] ss:$8 sps:$4 sm:$0xff]  }
 0x394   :  { %v2452_v31 = vpop.f32.mrf.mxu0  ;;  %4398 = vmatprep.subr.bf16.mxu0 %v6796_v27  ;;  %v6896_v27 = vld [vmem:[#allocation16 + $0x30] ss:$8 sps:$4 sm:$0xff]   ;;  %v6901_v28 = vld [vmem:[#allocation16 + $0x24] ss:$8 sps:$4 sm:$0xff]  }
 0x395   :  { %v6832_v31 = vld [vmem:[#allocation17 + $0x314] ss:$8 sps:$4 sm:$0xff]   ;;  %1089 = vmatpush1.bf16.msra.mxu1 %v6896_v27 }
 0x396   :  { %1090 = vmatprep.subr.bf16.mxu1 %v6901_v28  ;;  %v6928_v27 = vld [vmem:[#allocation16 + $0x94] ss:$8 sps:$4 sm:$0xff]   ;;  %v6854_v28 = vld [vmem:[#allocation16 + $0xb90] ss:$8 sps:$4 sm:$0xff]  }
 0x397   :  { %4399 = vmatpush1.bf16.msra.mxu0 %v6794_v30  ;;  %v6827_v30 = vld [vmem:[#allocation17 + $0x320] ss:$8 sps:$4 sm:$0xff]  }
 0x398   :  { %4400 = vmatprep.subr.bf16.mxu0 %v6799_v32  ;;  %v6899_v32 = vld [vmem:[#allocation16 + $0x20] ss:$8 sps:$4 sm:$0xff]  }
 0x399   :  { %1091 = vmatpush1.bf16.msra.mxu1 %v6899_v32  ;;  %v6931_v32 = vld [vmem:[#allocation16 + $0x84] ss:$8 sps:$4 sm:$0xff]  }
 0x39a   :  { %1092 = vmatprep.subr.bf16.mxu1 %v6904_v34  ;;  %v6857_v34 = vld [vmem:[#allocation16 + $0xb80] ss:$8 sps:$4 sm:$0xff]  }
 0x39b   :  { %4401 = vmatpush1.bf16.msra.mxu0 %v6797_v42  ;;  %v6902_v42 = vld [vmem:[#allocation16 + $0x10] ss:$8 sps:$4 sm:$0xff]  }
 0x39c   :  { %4402 = vmatprep.subr.bf16.mxu0 %v6802_v45  ;;  %v6833_v45 = vld [vmem:[#allocation17 + $0x300] ss:$8 sps:$4 sm:$0xff]  }
 0x39d   :  { %1093 = vmatpush1.bf16.msra.mxu1 %v6902_v42  ;;  %v6860_v42 = vld [vmem:[#allocation17 + $0x3f0] ss:$8 sps:$4 sm:$0xff]  }
 0x39e   :  { %1094 = vmatprep.subr.bf16.mxu1 %v6907_v43  ;;  %v6865_v43 = vld [vmem:[#allocation17 + $0x3e4] ss:$8 sps:$4 sm:$0xff]  }
 0x39f   :  { %4403 = vmatpush1.bf16.msra.mxu0 %v6800_v46  ;;  %v6838_v46 = vld [vmem:[#allocation16 + $0xbf4] ss:$8 sps:$4 sm:$0xff]  }
 0x3a0   :  { %4404 = vmatprep.subr.bf16.mxu0 %v6805_v47  ;;  %v6905_v47 = vld [vmem:[#allocation16] ss:$8 sps:$4 sm:$0xff]  }
 0x3a1   :  { %1095 = vmatpush1.bf16.msra.mxu1 %v6905_v47  ;;  %v6868_v47 = vld [vmem:[#allocation17 + $0x3d4] ss:$8 sps:$4 sm:$0xff]  }
 0x3a2   :  { %v704_v50 = vpop.xlane.xlu0 %703 }
 0x3a3   :  { %4405 = vmatpush1.bf16.msra.mxu0 %v6803_v48  ;;  %v706_v51 = vmul.f32 0.00390625, %v704_v50  ;;  %v6836_v48 = vld [vmem:[#allocation16 + $0xbf0] ss:$8 sps:$4 sm:$0xff]   ;;  %v6910_v50 = vld [vmem:[#allocation16 + $0xf4] ss:$8 sps:$4 sm:$0xff]  }
 0x3a4   :  { %4406 = vmatprep.subr.bf16.mxu0 %v6808_v49  ;;  %v6841_v49 = vld [vmem:[#allocation16 + $0xbe4] ss:$8 sps:$4 sm:$0xff]   ;;  %1096 = vmatprep.subr.bf16.mxu1 %v6910_v50  ;;  %v6866_v50 = vld [vmem:[#allocation17 + $0x3d0] ss:$8 sps:$4 sm:$0xff]  }
 0x3a5   :  { %v7909_v54 = vsub.f32 %v7878_v57, %v706_v51  ;;  %v7912_v55 = vsub.f32 %v7880_v58, %v706_v51  ;;  %v6817_v57 = vld [vmem:[#allocation17 + $0x364] ss:$8 sps:$4 sm:$0xff]  }
 0x3a7   :  { %4407 = vmatpush1.bf16.msra.mxu0 %v6806_v52  ;;  %v709_v59 = vmul.f32 %v7909_v54, %v7909_v54  ;;  %v710_v2 = vmul.f32 %v7912_v55, %v7912_v55  ;;  %v6908_v52 = vld [vmem:[#allocation16 + $0xf0] ss:$8 sps:$4 sm:$0xff]  }
 0x3a8   :  { %4408 = vmatprep.subr.bf16.mxu0 %v6811_v53  ;;  %v6839_v53 = vld [vmem:[#allocation16 + $0xbe0] ss:$8 sps:$4 sm:$0xff]   ;;  %1097 = vmatpush2.bf16.msra.mxu1 %v6908_v52  ;;  %v6871_v52 = vld [vmem:[#allocation17 + $0x3c4] ss:$8 sps:$4 sm:$0xff]  }
 0x3a9   :  { %v711_v61 = vadd.f32 %v710_v2, %v709_v59  ;;  %v6844_v59 = vld [vmem:[#allocation16 + $0xbd4] ss:$8 sps:$4 sm:$0xff]   ;;  %v6913_v2 = vld [vmem:[#allocation16 + $0xe4] ss:$8 sps:$4 sm:$0xff]  }
 0x3aa   :  { %1098 = vmatprep.subr.bf16.mxu1 %v6913_v2  ;;  %v6872_v2 = vld [vmem:[#allocation17 + $0x3b0] ss:$8 sps:$4 sm:$0xff]  }
 0x3ab   :  { %4409 = vmatpush1.bf16.msra.mxu0 %v6809_v56  ;;  %712 = vadd.xlane.f32.xlu0 %v711_v61  ;;  %v6911_v61 = vld [vmem:[#allocation16 + $0xe0] ss:$8 sps:$4 sm:$0xff]  }
 0x3ac   :  { %4757 = vmatprep.subr.bf16.mxu0 %v6814_v3  ;;  %1099 = vmatpush2.bf16.msra.mxu1 %v6911_v61  ;;  %v6880_v61 = vld [vmem:[#allocation17 + $0x394] ss:$8 sps:$4 sm:$0xff]  }
 0x3ae   :  { %4427 = vmatmul.mubr.bf16.vlgmr.msra.gmra.mxu0 %v7850_v35  ;;  %v7919_v58 = vpop.f32.mrf.mxu0 }
 0x3af   :  { %4758 = vmatpush1.bf16.msra.mxu0 %v6812_v63  ;;  %4789 = vmatprep.mubr.bf16.mxu0 %v7682_v19  ;;  %v6842_v63 = vld [vmem:[#allocation16 + $0xbd0] ss:$8 sps:$4 sm:$0xff]  }
 0x3b0   :  { %4759 = vmatprep.subr.bf16.mxu0 %v6817_v57  ;;  %v7922_v4 = vpop.f32.mrf.mxu0 }
 0x3b2   :  { %v2674_v5 = vpop.f32.mrf.mxu0 }
 0x3b3   :  { %4760 = vmatpush1.bf16.msra.mxu0 %v6815_v1  ;;  %v6847_v1 = vld [vmem:[#allocation16 + $0xbc4] ss:$8 sps:$4 sm:$0xff]   ;;  %v6914_v5 = vld [vmem:[#allocation16 + $0xd0] ss:$8 sps:$4 sm:$0xff]  }
 0x3b4   :  { %4761 = vmatprep.subr.bf16.mxu0 %v6820_v33  ;;  %v2675_v10 = vpop.f32.mrf.mxu0  ;;  %v6916_v33 = vld [vmem:[#allocation16 + $0xd4] ss:$8 sps:$4 sm:$0xff]  }
 0x3b5   :  { %1100 = vmatprep.subr.bf16.mxu1 %v6916_v33  ;;  %v6850_v10 = vld [vmem:[#allocation16 + $0xbb4] ss:$8 sps:$4 sm:$0xff]  }
 0x3b6   :  { %1101 = vmatpush2.bf16.msra.mxu1 %v6914_v5 }
 0x3b7   :  { %4762 = vmatpush1.bf16.msra.mxu0 %v6818_v6  ;;  %v6919_v6 = vld [vmem:[#allocation16 + $0xc4] ss:$8 sps:$4 sm:$0xff]  }
 0x3b8   :  { %4763 = vmatprep.subr.bf16.mxu0 %v6823_v7  ;;  %v6845_v7 = vld [vmem:[#allocation16 + $0xbc0] ss:$8 sps:$4 sm:$0xff]   ;;  %1102 = vmatprep.subr.bf16.mxu1 %v6919_v6 }
 0x3ba   :  { %1103 = vmatpush2.bf16.msra.mxu1 %v6917_v12 }
 0x3bb   :  { %4764 = vmatpush1.bf16.msra.mxu0 %v6821_v15  ;;  %v6848_v15 = vld [vmem:[#allocation16 + $0xbb0] ss:$8 sps:$4 sm:$0xff]   ;;  %1104 = vmatprep.subr.bf16.mxu1 %v6922_v14 }
 0x3bc   :  { %4765 = vmatprep.subr.bf16.mxu0 %v6826_v16  ;;  %v6853_v16 = vld [vmem:[#allocation16 + $0xba4] ss:$8 sps:$4 sm:$0xff]  }
 0x3be   :  { %1105 = vmatpush2.bf16.msra.mxu1 %v6920_v17 }
 0x3bf   :  { %4766 = vmatpush1.bf16.msra.mxu0 %v6824_v21  ;;  %v6856_v21 = vld [vmem:[#allocation16 + $0xb94] ss:$8 sps:$4 sm:$0xff]   ;;  %1106 = vmatprep.subr.bf16.mxu1 %v6925_v18 }
 0x3c0   :  { %4767 = vmatprep.subr.bf16.mxu0 %v6829_v25  ;;  %v6923_v25 = vld [vmem:[#allocation16 + $0xa0] ss:$8 sps:$4 sm:$0xff]  }
 0x3c2   :  { %1107 = vmatpush2.bf16.msra.mxu1 %v6923_v25 }
 0x3c3   :  { %4768 = vmatpush1.bf16.msra.mxu0 %v6827_v30  ;;  %v6859_v30 = vld [vmem:[#allocation16 + $0xb84] ss:$8 sps:$4 sm:$0xff]   ;;  %1108 = vmatprep.subr.bf16.mxu1 %v6928_v27 }
 0x3c4   :  { %4769 = vmatprep.subr.bf16.mxu0 %v6832_v31  ;;  %v6926_v31 = vld [vmem:[#allocation16 + $0x90] ss:$8 sps:$4 sm:$0xff]  }
 0x3c6   :  { %1109 = vmatpush2.bf16.msra.mxu1 %v6926_v31 }
 0x3c7   :  { %4770 = vmatpush1.bf16.msra.mxu0 %v6830_v37  ;;  %v6862_v37 = vld [vmem:[#allocation17 + $0x3f4] ss:$8 sps:$4 sm:$0xff]   ;;  %1110 = vmatprep.subr.bf16.mxu1 %v6931_v32 }
 0x3c8   :  { %4771 = vmatprep.subr.bf16.mxu0 %v6835_v41  ;;  %v6929_v41 = vld [vmem:[#allocation16 + $0x80] ss:$8 sps:$4 sm:$0xff]  }
 0x3ca   :  { %1111 = vmatpush2.bf16.msra.mxu1 %v6929_v41 }
 0x3cb   :  { %4772 = vmatpush1.bf16.msra.mxu0 %v6833_v45 }
 0x3cc   :  { %4980 = vmatprep.subr.bf16.mxu0 %v6838_v46  ;;  %v6863_v46 = vld [vmem:[#allocation17 + $0x3e0] ss:$8 sps:$4 sm:$0xff]  }
 0x3ce   :  { %v7924_v51 = vpop.f32.mrf.mxu0  ;;  %4790 = vmatmul.mubr.bf16.vlgmr.msra.gmra.mxu0 %v7833_v39 }
 0x3cf   :  { %4981 = vmatpush1.bf16.msra.mxu0 %v6836_v48  ;;  %5012 = vmatprep.mubr.bf16.mxu0 %v7682_v19 }
 0x3d0   :  { %v7928_v56 = vpop.f32.mrf.mxu0  ;;  %4982 = vmatprep.subr.bf16.mxu0 %v6841_v49 }
 0x3d2   :  { %v3037_v3 = vpop.f32.mrf.mxu0 }
 0x3d3   :  { %4983 = vmatpush1.bf16.msra.mxu0 %v6839_v53  ;;  %v6877_v3 = vld [vmem:[#allocation17 + $0x3a4] ss:$8 sps:$4 sm:$0xff]  }
 0x3d4   :  { %v3038_v57 = vpop.f32.mrf.mxu0  ;;  %4984 = vmatprep.subr.bf16.mxu0 %v6844_v59  ;;  %v6869_v59 = vld [vmem:[#allocation17 + $0x3c0] ss:$8 sps:$4 sm:$0xff]  }
 0x3d5   :  { %v6883_v57 = vld [vmem:[#allocation17 + $0x384] ss:$8 sps:$4 sm:$0xff]  }
 0x3d7   :  { %4985 = vmatpush1.bf16.msra.mxu0 %v6842_v63  ;;  %v6878_v63 = vld [vmem:[#allocation17 + $0x390] ss:$8 sps:$4 sm:$0xff]  }
 0x3d8   :  { %4986 = vmatprep.subr.bf16.mxu0 %v6847_v1  ;;  %v6881_v1 = vld [vmem:[#allocation17 + $0x380] ss:$8 sps:$4 sm:$0xff]  }
 0x3db   :  { %4987 = vmatpush1.bf16.msra.mxu0 %v6845_v7 }
 0x3dc   :  { %4988 = vmatprep.subr.bf16.mxu0 %v6850_v10 }
 0x3df   :  { %4989 = vmatpush1.bf16.msra.mxu0 %v6848_v15 }
 0x3e0   :  { %4990 = vmatprep.subr.bf16.mxu0 %v6853_v16 }
 0x3e3   :  { %4991 = vmatpush1.bf16.msra.mxu0 %v6851_v20 }
 0x3e4   :  { %4992 = vmatprep.subr.bf16.mxu0 %v6856_v21 }
 0x3e7   :  { %4993 = vmatpush1.bf16.msra.mxu0 %v6854_v28 }
 0x3e8   :  { %4994 = vmatprep.subr.bf16.mxu0 %v6859_v30 }
 0x3eb   :  { %4995 = vmatpush1.bf16.msra.mxu0 %v6857_v34 }
 0x3ec   :  { %5343 = vmatprep.subr.bf16.mxu0 %v6862_v37 }
 0x3ee   :  { %5013 = vmatmul.mubr.bf16.vlgmr.msra.gmra.mxu0 %v7850_v35  ;;  %v7931_v45 = vpop.f32.mrf.mxu0  ;;  %v6874_v35 = vld [vmem:[#allocation17 + $0x3b4] ss:$8 sps:$4 sm:$0xff]  }
 0x3ef   :  { %5344 = vmatpush1.bf16.msra.mxu0 %v6860_v42  ;;  %5375 = vmatprep.mubr.bf16.mxu0 %v7682_v19  ;;  %v6875_v19 = vld [vmem:[#allocation17 + $0x3a0] ss:$8 sps:$4 sm:$0xff]  }
 0x3f0   :  { %5345 = vmatprep.subr.bf16.mxu0 %v6865_v43  ;;  %v7934_v48 = vpop.f32.mrf.mxu0 }
 0x3f2   :  { %v3260_v49 = vpop.f32.mrf.mxu0 }
 0x3f3   :  { %5346 = vmatpush1.bf16.msra.mxu0 %v6863_v46 }
 0x3f4   :  { %5347 = vmatprep.subr.bf16.mxu0 %v6868_v47  ;;  %v3261_v53 = vpop.f32.mrf.mxu0 }
 0x3f7   :  { %5348 = vmatpush1.bf16.msra.mxu0 %v6866_v50 }
 0x3f8   :  { %5349 = vmatprep.subr.bf16.mxu0 %v6871_v52 }
 0x3fb   :  { %5350 = vmatpush1.bf16.msra.mxu0 %v6869_v59 }
 0x3fc   :  { %5351 = vmatprep.subr.bf16.mxu0 %v6874_v35 }
 0x3ff   :  { %5352 = vmatpush1.bf16.msra.mxu0 %v6872_v2 }
 0x400   :  { %5353 = vmatprep.subr.bf16.mxu0 %v6877_v3 }
 0x403   :  { %5354 = vmatpush1.bf16.msra.mxu0 %v6875_v19 }
 0x404   :  { %5355 = vmatprep.subr.bf16.mxu0 %v6880_v61 }
 0x407   :  { %5356 = vmatpush1.bf16.msra.mxu0 %v6878_v63 }
 0x408   :  { %5357 = vmatprep.subr.bf16.mxu0 %v6883_v57 }
 0x40b   :  { %5358 = vmatpush1.bf16.msra.mxu0 %v6881_v1 }
 0x40c   :  { %6400 = vmatprep.subr.bf16.mxu0 %v7680_v0 }
 0x40e   :  { %v7937_v33 = vpop.f32.mrf.mxu0  ;;  %5376 = vmatmul.mubr.bf16.vlgmr.msra.gmra.mxu0 %v7833_v39 }
 0x40f   :  { %6416 = vmatprep.mubr.msk.bf16.mxu0 %vm7681_vm0, %v7680_v0 }
 0x410   :  { %v7942_v5 = vpop.f32.mrf.mxu0 }
 0x412   :  { %v3623_v6 = vpop.f32.mrf.mxu0 }
 0x414   :  { %v3624_v7 = vpop.f32.mrf.mxu0 }
 0x42e   :  { %v7944_v10 = vpop.f32.mrf.mxu0 }
 0x430   :  { %v7946_v12 = vpop.f32.mrf.mxu0 }
 0x432   :  { %v3846_v14 = vpop.f32.mrf.mxu0 }
 0x434   :  { %v713_v15 = vpop.xlane.xlu0 %712  ;;  %v3847_v16 = vpop.f32.mrf.mxu0 }
 0x435   :  { %v714_v17 = vmul.f32 0.00390625, %v713_v15  ;;  %v7971_v16 = vsub.s32 3, %v7858_v23 }
 0x437   :  { %v715_v18 = vadd.f32 1e-05, %v714_v17  ;;  %v1121_v17 = vld [vmem:[#allocation19] sm:$0xf] }
 0x439   :  { %7296 = vrsqrt.f32 %v715_v18  ;;  %v1146_v18 = vrot.slane %v1121_v17, %v7864_v29 }
 0x446   :  { %v7297_v20 = vpop.eup %7296 }
 0x447   :  { %v718_v39 = vmul.f32 %v7297_v20, %v7912_v55  ;;  %v717_v21 = vmul.f32 %v7297_v20, %v7909_v54  ;;  %v1150_v20 = vrot.slane %v1121_v17, %v7971_v16 }
 0x449   :  { %v5769_v25 = vmul.f32 -1.442695, %v718_v39  ;;  %v5768_v27 = vmul.f32 -1.442695, %v717_v21 }
 0x44b   :  { %7298 = vpow2.f32 %v5769_v25  ;;  %v1156_v25 = vrot.slane %v1146_v18, %v7864_v29 }
 0x44c   :  { %7300 = vpow2.f32 %v5768_v27  ;;  %v1160_v27 = vrot.slane %v1150_v20, %v7864_v29 }
 0x44e   :  { %v7950_v28 = vpop.f32.mrf.mxu0 }
 0x450   :  { %v7952_v30 = vpop.f32.mrf.mxu0 }
 0x452   :  { %v4209_v31 = vpop.f32.mrf.mxu0 }
 0x454   :  { %v4210_v32 = vpop.f32.mrf.mxu0 }
 0x458   :  { %v7299_v34 = vpop.eup %7298 }
 0x459   :  { %v7301_v37 = vpop.eup %7300  ;;  %v726_v41 = vadd.f32 1.0, %v7299_v34 }
 0x45a   :  { %v725_v42 = vadd.f32 1.0, %v7301_v37  ;;  %v1276_v37 = vadd.f32 %v7870_v38, %v1156_v25  ;;  %v6932_v38 = vld [vmem:[#allocation16 + $0x1f0] ss:$8 sps:$4 sm:$0xff]   ;;  %v6940_v25 = vld [vmem:[#allocation16 + $0x1d4] ss:$8 sps:$4 sm:$0xff]  }
 0x45b   :  { %7302 = vrcp.f32 %v726_v41  ;;  %v1278_v41 = vadd.f32 %v7874_v44, %v1160_v27  ;;  %v6937_v44 = vld [vmem:[#allocation16 + $0x1e4] ss:$8 sps:$4 sm:$0xff]   ;;  %v6938_v27 = vld [vmem:[#allocation16 + $0x1d0] ss:$8 sps:$4 sm:$0xff]  }
 0x45c   :  { %7304 = vrcp.f32 %v725_v42 }
 0x468   :  { %v7303_v43 = vpop.eup %7302 }
 0x469   :  { %v7305_v55 = vpop.eup %7304  ;;  %v732_v46 = vmul.f32 %v7303_v43, %v718_v39  ;;  %v7976_v39 = vsub.s32 2, %v7858_v23 }
 0x46a   :  { %v731_v54 = vmul.f32 %v7305_v55, %v717_v21  ;;  %v1126_v21 = vrot.slane %v1121_v17, %v7861_v24 }
 0x46b   :  { %v734_v47 = vpack.c.bf16 %v732_v46, %v732_v46  ;;  %v1130_v31 = vrot.slane %v1121_v17, %v7976_v39 }
 0x46c   :  { %v733_v49 = vpack.c.bf16 %v731_v54, %v731_v54  ;;  %v1136_v32 = vrot.slane %v1126_v21, %v7861_v24 }
 0x46d   :  { %1112 = vmatprep.mubr.bf16.mxu1 %v734_v47  ;;  %v1140_v23 = vrot.slane %v1130_v31, %v7861_v24  ;;  %v1282_v47 = vadd.f32 1.0, %v1276_v37  ;;  %v6941_v31 = vld [vmem:[#allocation16 + $0x1c0] ss:$8 sps:$4 sm:$0xff]   ;;  %v6944_v37 = vld [vmem:[#allocation16 + $0x1b0] ss:$8 sps:$4 sm:$0xff]  }
 0x46e   :  { %1113 = vmatmul.mubr.bf16.vlgmr.msra.gmra.mxu1 %v733_v49  ;;  %v7954_v50 = vpop.f32.mrf.mxu0  ;;  %v1283_v49 = vadd.f32 1.0, %v1278_v41  ;;  %v6949_v41 = vld [vmem:[#allocation16 + $0x1a4] ss:$8 sps:$4 sm:$0xff]  }
 0x470   :  { %v7956_v52 = vpop.f32.mrf.mxu0 }
 0x472   :  { %v4432_v53 = vpop.f32.mrf.mxu0 }
 0x474   :  { %v4433_v59 = vpop.f32.mrf.mxu0 }
 0x48e   :  { %v7958_v35 = vpop.f32.mrf.mxu0 }
 0x490   :  { %v7960_v2 = vpop.f32.mrf.mxu0 }
 0x492   :  { %v4795_v3 = vpop.f32.mrf.mxu0 }
 0x494   :  { %v4796_v19 = vpop.f32.mrf.mxu0 }
 0x4ae   :  { %v7962_v61 = vpop.f32.mrf.mxu0 }
 0x4b0   :  { %v7964_v63 = vpop.f32.mrf.mxu0 }
 0x4b2   :  { %v5018_v57 = vpop.f32.mrf.mxu0 }
 0x4b4   :  { %v5019_v1 = vpop.f32.mrf.mxu0 }
 0x4b5   :  { %v6934_v1 = vld [vmem:[#allocation16 + $0x1f4] ss:$8 sps:$4 sm:$0xff]  }
 0x4b6   :  { %1665 = vmatprep.subr.bf16.mxu1 %v6934_v1  ;;  %v6968_v1 = vld [vmem:[#allocation16 + $0x230] ss:$8 sps:$4 sm:$0xff]  }
 0x4b7   :  { %1666 = vmatpush1.bf16.msra.mxu1 %v6932_v38  ;;  %v6970_v38 = vld [vmem:[#allocation16 + $0x234] ss:$8 sps:$4 sm:$0xff]  }
 0x4b8   :  { %1667 = vmatprep.subr.bf16.mxu1 %v6937_v44  ;;  %v6973_v44 = vld [vmem:[#allocation16 + $0x224] ss:$8 sps:$4 sm:$0xff]  }
 0x4ce   :  { %v7966_v6 = vpop.f32.mrf.mxu0 }
 0x4d0   :  { %v7968_v7 = vpop.f32.mrf.mxu0 }
 0x4d2   :  { %v5381_v14 = vpop.f32.mrf.mxu0 }
 0x4d4   :  { %v5382_v15 = vpop.f32.mrf.mxu0 }
 0x52e   :  { %v1114_v34 = vpop.f32.mrf.mxu1 }
 0x52f   :  { %v1115_v42 = vadd.f32 %v1114_v34, %v7844_v9  ;;  %v6935_v9 = vld [vmem:[#allocation16 + $0x1e0] ss:$8 sps:$4 sm:$0xff]   ;;  %v6946_v34 = vld [vmem:[#allocation16 + $0x1b4] ss:$8 sps:$4 sm:$0xff]  }
 0x530   :  { %v1116_v43 = vpop.f32.mrf.mxu1  ;;  %1668 = vmatpush1.bf16.msra.mxu1 %v6935_v9  ;;  %v6971_v9 = vld [vmem:[#allocation16 + $0x220] ss:$8 sps:$4 sm:$0xff]  }
 0x531   :  { %v1141_v55 = vadd.f32 %v1136_v32, %v1115_v42  ;;  %v1117_v46 = vadd.f32 %v1116_v43, %v7846_v11  ;;  %1669 = vmatprep.subr.bf16.mxu1 %v6940_v25  ;;  %v6943_v32 = vld [vmem:[#allocation16 + $0x1c4] ss:$8 sps:$4 sm:$0xff]   ;;  %v6947_v42 = vld [vmem:[#allocation16 + $0x1a0] ss:$8 sps:$4 sm:$0xff]   ;;  %v6950_v43 = vld [vmem:[#allocation16 + $0x190] ss:$8 sps:$4 sm:$0xff]  }
 0x532   :  { %v1118_v54 = vpop.f32.mrf.mxu1 }
 0x533   :  { %v1142_v53 = vadd.f32 %v1140_v23, %v1117_v46  ;;  %v1284_v3 = vmul.f32 %v1282_v47, %v1141_v55  ;;  %v6952_v23 = vld [vmem:[#allocation16 + $0x194] ss:$8 sps:$4 sm:$0xff]   ;;  %v6955_v55 = vld [vmem:[#allocation16 + $0x184] ss:$8 sps:$4 sm:$0xff]   ;;  %v6953_v46 = vld [vmem:[#allocation16 + $0x180] ss:$8 sps:$4 sm:$0xff]  }
 0x534   :  { %v1119_v59 = vpop.f32.mrf.mxu1  ;;  %1670 = vmatpush1.bf16.msra.mxu1 %v6938_v27  ;;  %v6958_v54 = vld [vmem:[#allocation16 + $0x274] ss:$8 sps:$4 sm:$0xff]   ;;  %v6956_v47 = vld [vmem:[#allocation16 + $0x270] ss:$8 sps:$4 sm:$0xff]  }
 0x535   :  { %v1285_v19 = vmul.f32 %v1283_v49, %v1142_v53  ;;  %1671 = vmatprep.subr.bf16.mxu1 %v6943_v32  ;;  %v6961_v49 = vld [vmem:[#allocation16 + $0x264] ss:$8 sps:$4 sm:$0xff]   ;;  %v6959_v53 = vld [vmem:[#allocation16 + $0x260] ss:$8 sps:$4 sm:$0xff]   ;;  %v6964_v59 = vld [vmem:[#allocation16 + $0x254] ss:$8 sps:$4 sm:$0xff]  }
 0x537   :  { %v1286_v57 = vadd.f32 %v1285_v19, %v1284_v3 }
 0x538   :  { %1672 = vmatpush1.bf16.msra.mxu1 %v6941_v31 }
 0x539   :  { %1287 = vadd.xlane.f32.xlu1 %v1286_v57  ;;  %1673 = vmatprep.subr.bf16.mxu1 %v6946_v34  ;;  %v6965_v57 = vld [vmem:[#allocation16 + $0x240] ss:$8 sps:$4 sm:$0xff]  }
 0x53c   :  { %1674 = vmatpush1.bf16.msra.mxu1 %v6944_v37 }
 0x53d   :  { %1675 = vmatprep.subr.bf16.mxu1 %v6949_v41 }
 0x540   :  { %1676 = vmatpush1.bf16.msra.mxu1 %v6947_v42 }
 0x541   :  { %1677 = vmatprep.subr.bf16.mxu1 %v6952_v23 }
 0x544   :  { %1678 = vmatpush1.bf16.msra.mxu1 %v6950_v43 }
 0x545   :  { %1679 = vmatprep.subr.bf16.mxu1 %v6955_v55 }
 0x548   :  { %1680 = vmatpush1.bf16.msra.mxu1 %v6953_v46 }
 0x549   :  { %1681 = vmatprep.subr.bf16.mxu1 %v6958_v54 }
 0x54c   :  { %1682 = vmatpush2.bf16.msra.mxu1 %v6956_v47 }
 0x54d   :  { %1683 = vmatprep.subr.bf16.mxu1 %v6961_v49 }
 0x550   :  { %1684 = vmatpush2.bf16.msra.mxu1 %v6959_v53 }
 0x551   :  { %1685 = vmatprep.subr.bf16.mxu1 %v6964_v59 }
 0x5c2   :  { %v1288_v14 = vpop.xlane.xlu1 %1287 }
 0x5c3   :  { %v1289_v15 = vmul.f32 0.00390625, %v1288_v14  ;;  %v6976_v14 = vld [vmem:[#allocation16 + $0x214] ss:$8 sps:$4 sm:$0xff]  }
 0x5c5   :  { %v7988_v11 = vsub.f32 %v1284_v3, %v1289_v15  ;;  %v7990_v17 = vsub.f32 %v1285_v19, %v1289_v15  ;;  %v6962_v3 = vld [vmem:[#allocation16 + $0x250] ss:$8 sps:$4 sm:$0xff]   ;;  %v6967_v19 = vld [vmem:[#allocation16 + $0x244] ss:$8 sps:$4 sm:$0xff]  }
 0x5c6   :  { %1686 = vmatpush2.bf16.msra.mxu1 %v6962_v3  ;;  %v6974_v15 = vld [vmem:[#allocation16 + $0x210] ss:$8 sps:$4 sm:$0xff]  }
 0x5c7   :  { %v1292_v18 = vmul.f32 %v7988_v11, %v7988_v11  ;;  %v1293_v20 = vmul.f32 %v7990_v17, %v7990_v17  ;;  %1687 = vmatprep.subr.bf16.mxu1 %v6967_v19 }
 0x5c9   :  { %v1294_v21 = vadd.f32 %v1293_v20, %v1292_v18  ;;  %v6979_v18 = vld [vmem:[#allocation16 + $0x204] ss:$8 sps:$4 sm:$0xff]   ;;  %v6977_v20 = vld [vmem:[#allocation16 + $0x200] ss:$8 sps:$4 sm:$0xff]  }
 0x5ca   :  { %1688 = vmatpush2.bf16.msra.mxu1 %v6965_v57 }
 0x5cb   :  { %1295 = vadd.xlane.f32.xlu1 %v1294_v21  ;;  %1689 = vmatprep.subr.bf16.mxu1 %v6970_v38 }
 0x5ce   :  { %1690 = vmatpush2.bf16.msra.mxu1 %v6968_v1 }
 0x5cf   :  { %1691 = vmatprep.subr.bf16.mxu1 %v6973_v44 }
 0x5d2   :  { %1692 = vmatpush2.bf16.msra.mxu1 %v6971_v9 }
 0x5d3   :  { %1693 = vmatprep.subr.bf16.mxu1 %v6976_v14 }
 0x5d6   :  { %1694 = vmatpush2.bf16.msra.mxu1 %v6974_v15 }
 0x5d7   :  { %1695 = vmatprep.subr.bf16.mxu1 %v6979_v18 }
 0x5da   :  { %1696 = vmatpush2.bf16.msra.mxu1 %v6977_v20 }
 0x654   :  { %v1296_v21 = vpop.xlane.xlu1 %1295 }
 0x655   :  { %v1297_v25 = vmul.f32 0.00390625, %v1296_v21 }
 0x657   :  { %v1298_v27 = vadd.f32 1e-05, %v1297_v25 }
 0x659   :  { %7306 = vrsqrt.f32 %v1298_v27 }
 0x666   :  { %v7307_v31 = vpop.eup %7306 }
 0x667   :  { %v1301_v32 = vmul.f32 %v7307_v31, %v7990_v17  ;;  %v1300_v34 = vmul.f32 %v7307_v31, %v7988_v11  ;;  %v1707_v17 = vld [vmem:[#allocation19 + $0x4] sm:$0xf] }
 0x668   :  { %v1732_v11 = vrot.slane %v1707_v17, %v7864_v29  ;;  %v1736_v3 = vrot.slane %v1707_v17, %v7971_v16  ;;  %v1712_v19 = vrot.slane %v1707_v17, %v7861_v24  ;;  %v1716_v1 = vrot.slane %v1707_v17, %v7976_v39  ;;  %v6988_v17 = vld [vmem:[#allocation16 + $0x354] ss:$8 sps:$4 sm:$0xff]  }
 0x669   :  { %v5835_v37 = vmul.f32 -1.442695, %v1301_v32  ;;  %v5834_v41 = vmul.f32 -1.442695, %v1300_v34 }
 0x66a   :  { %v1742_v57 = vrot.slane %v1732_v11, %v7864_v29  ;;  %v1746_v38 = vrot.slane %v1736_v3, %v7864_v29  ;;  %v1722_v44 = vrot.slane %v1712_v19, %v7861_v24  ;;  %v1726_v20 = vrot.slane %v1716_v1, %v7861_v24  ;;  %v6986_v11 = vld [vmem:[#allocation16 + $0x350] ss:$8 sps:$4 sm:$0xff]   ;;  %v6989_v3 = vld [vmem:[#allocation16 + $0x340] ss:$8 sps:$4 sm:$0xff]   ;;  %v6991_v19 = vld [vmem:[#allocation16 + $0x344] ss:$8 sps:$4 sm:$0xff]  }
 0x66b   :  { %7308 = vpow2.f32 %v5835_v37  ;;  %v6997_v1 = vld [vmem:[#allocation16 + $0x324] ss:$8 sps:$4 sm:$0xff]  }
 0x66c   :  { %7310 = vpow2.f32 %v5834_v41  ;;  %v1862_v14 = vadd.f32 %v7890_v36, %v1742_v57  ;;  %v1864_v15 = vadd.f32 %v7894_v40, %v1746_v38  ;;  %v6980_v36 = vld [vmem:[#allocation16 + $0x370] ss:$8 sps:$4 sm:$0xff]   ;;  %v6985_v40 = vld [vmem:[#allocation16 + $0x364] ss:$8 sps:$4 sm:$0xff]   ;;  %v6994_v57 = vld [vmem:[#allocation16 + $0x334] ss:$8 sps:$4 sm:$0xff]  }
 0x66d   :  { %v6992_v38 = vld [vmem:[#allocation16 + $0x330] ss:$8 sps:$4 sm:$0xff]  }
 0x678   :  { %v7309_v42 = vpop.eup %7308 }
 0x679   :  { %v7311_v23 = vpop.eup %7310  ;;  %v1309_v43 = vadd.f32 1.0, %v7309_v42 }
 0x67a   :  { %v1308_v55 = vadd.f32 1.0, %v7311_v23 }
 0x67b   :  { %7312 = vrcp.f32 %v1309_v43 }
 0x67c   :  { %7314 = vrcp.f32 %v1308_v55  ;;  %v6982_v55 = vld [vmem:[#allocation16 + $0x374] ss:$8 sps:$4 sm:$0xff]  }
 0x67d   :  { %2251 = vmatprep.subr.bf16.mxu1 %v6982_v55  ;;  %v7022_v55 = vld [vmem:[#allocation16 + $0x390] ss:$8 sps:$4 sm:$0xff]  }
 0x688   :  { %v7313_v46 = vpop.eup %7312 }
 0x689   :  { %v7315_v54 = vpop.eup %7314  ;;  %v1315_v47 = vmul.f32 %v7313_v46, %v1301_v32  ;;  %v1868_v32 = vadd.f32 1.0, %v1862_v14  ;;  %v6998_v14 = vld [vmem:[#allocation16 + $0x310] ss:$8 sps:$4 sm:$0xff]  }
 0x68a   :  { %v1314_v49 = vmul.f32 %v7315_v54, %v1300_v34  ;;  %v1869_v34 = vadd.f32 1.0, %v1864_v15  ;;  %v7003_v15 = vld [vmem:[#allocation16 + $0x304] ss:$8 sps:$4 sm:$0xff]  }
 0x68b   :  { %v1317_v53 = vpack.c.bf16 %v1315_v47, %v1315_v47 }
 0x68c   :  { %v1316_v59 = vpack.c.bf16 %v1314_v49, %v1314_v49 }
 0x68d   :  { %1697 = vmatprep.mubr.bf16.mxu1 %v1317_v53 }
 0x68e   :  { %1698 = vmatmul.mubr.bf16.vlgmr.msra.gmra.mxu1 %v1316_v59 }
 0x68f   :  { %2252 = vmatpush1.bf16.msra.mxu1 %v6980_v36  ;;  %v7024_v36 = vld [vmem:[#allocation16 + $0x394] ss:$8 sps:$4 sm:$0xff]  }
 0x690   :  { %2253 = vmatprep.subr.bf16.mxu1 %v6985_v40  ;;  %v7027_v40 = vld [vmem:[#allocation16 + $0x384] ss:$8 sps:$4 sm:$0xff]  }
 0x74e   :  { %v1699_v9 = vpop.f32.mrf.mxu1 }
 0x74f   :  { %v1700_v18 = vadd.f32 %v1699_v9, %v7885_v8  ;;  %v6983_v8 = vld [vmem:[#allocation16 + $0x360] ss:$8 sps:$4 sm:$0xff]   ;;  %v7000_v9 = vld [vmem:[#allocation16 + $0x314] ss:$8 sps:$4 sm:$0xff]  }
 0x750   :  { %v1701_v21 = vpop.f32.mrf.mxu1  ;;  %2254 = vmatpush1.bf16.msra.mxu1 %v6983_v8  ;;  %v7025_v8 = vld [vmem:[#allocation16 + $0x380] ss:$8 sps:$4 sm:$0xff]  }
 0x751   :  { %v1727_v25 = vadd.f32 %v1722_v44, %v1700_v18  ;;  %v1702_v27 = vadd.f32 %v1701_v21, %v7888_v13  ;;  %2255 = vmatprep.subr.bf16.mxu1 %v6988_v17  ;;  %v6995_v44 = vld [vmem:[#allocation16 + $0x320] ss:$8 sps:$4 sm:$0xff]   ;;  %v7004_v21 = vld [vmem:[#allocation16 + $0x3f0] ss:$8 sps:$4 sm:$0xff]  }
 0x752   :  { %v1703_v31 = vpop.f32.mrf.mxu1  ;;  %v7001_v18 = vld [vmem:[#allocation16 + $0x300] ss:$8 sps:$4 sm:$0xff]  }
 0x753   :  { %v1728_v37 = vadd.f32 %v1726_v20, %v1702_v27  ;;  %v1870_v42 = vmul.f32 %v1868_v32, %v1727_v25  ;;  %v7006_v20 = vld [vmem:[#allocation16 + $0x3f4] ss:$8 sps:$4 sm:$0xff]   ;;  %v7009_v25 = vld [vmem:[#allocation16 + $0x3e4] ss:$8 sps:$4 sm:$0xff]   ;;  %v7007_v27 = vld [vmem:[#allocation16 + $0x3e0] ss:$8 sps:$4 sm:$0xff]  }
 0x754   :  { %v1704_v41 = vpop.f32.mrf.mxu1  ;;  %2256 = vmatpush1.bf16.msra.mxu1 %v6986_v11  ;;  %v7012_v31 = vld [vmem:[#allocation16 + $0x3d4] ss:$8 sps:$4 sm:$0xff]   ;;  %v7010_v32 = vld [vmem:[#allocation16 + $0x3d0] ss:$8 sps:$4 sm:$0xff]  }
 0x755   :  { %v1871_v23 = vmul.f32 %v1869_v34, %v1728_v37  ;;  %2257 = vmatprep.subr.bf16.mxu1 %v6991_v19  ;;  %v7015_v34 = vld [vmem:[#allocation16 + $0x3c4] ss:$8 sps:$4 sm:$0xff]   ;;  %v7013_v37 = vld [vmem:[#allocation16 + $0x3c0] ss:$8 sps:$4 sm:$0xff]   ;;  %v7018_v41 = vld [vmem:[#allocation16 + $0x3b4] ss:$8 sps:$4 sm:$0xff]  }
 0x757   :  { %v1872_v43 = vadd.f32 %v1871_v23, %v1870_v42 }
 0x758   :  { %2258 = vmatpush1.bf16.msra.mxu1 %v6989_v3 }
 0x759   :  { %1873 = vadd.xlane.f32.xlu0 %v1872_v43  ;;  %2259 = vmatprep.subr.bf16.mxu1 %v6994_v57  ;;  %v7019_v43 = vld [vmem:[#allocation16 + $0x3a0] ss:$8 sps:$4 sm:$0xff]  }
 0x75c   :  { %2260 = vmatpush1.bf16.msra.mxu1 %v6992_v38 }
 0x75d   :  { %2261 = vmatprep.subr.bf16.mxu1 %v6997_v1 }
 0x760   :  { %2262 = vmatpush1.bf16.msra.mxu1 %v6995_v44 }
 0x761   :  { %2263 = vmatprep.subr.bf16.mxu1 %v7000_v9 }
 0x764   :  { %2264 = vmatpush1.bf16.msra.mxu1 %v6998_v14 }
 0x765   :  { %2265 = vmatprep.subr.bf16.mxu1 %v7003_v15 }
 0x768   :  { %2266 = vmatpush1.bf16.msra.mxu1 %v7001_v18 }
 0x769   :  { %2267 = vmatprep.subr.bf16.mxu1 %v7006_v20 }
 0x76c   :  { %2268 = vmatpush2.bf16.msra.mxu1 %v7004_v21 }
 0x76d   :  { %2269 = vmatprep.subr.bf16.mxu1 %v7009_v25 }
 0x770   :  { %2270 = vmatpush2.bf16.msra.mxu1 %v7007_v27 }
 0x771   :  { %2271 = vmatprep.subr.bf16.mxu1 %v7012_v31 }
 0x774   :  { %2272 = vmatpush2.bf16.msra.mxu1 %v7010_v32 }
 0x775   :  { %2273 = vmatprep.subr.bf16.mxu1 %v7015_v34 }
 0x778   :  { %2274 = vmatpush2.bf16.msra.mxu1 %v7013_v37 }
 0x779   :  { %2275 = vmatprep.subr.bf16.mxu1 %v7018_v41 }
 0x7e2   :  { %v1874_v46 = vpop.xlane.xlu0 %1873 }
 0x7e3   :  { %v1875_v54 = vmul.f32 0.00390625, %v1874_v46 }
 0x7e5   :  { %v8010_v13 = vsub.f32 %v1870_v42, %v1875_v54  ;;  %v8012_v47 = vsub.f32 %v1871_v23, %v1875_v54  ;;  %v7016_v42 = vld [vmem:[#allocation16 + $0x3b0] ss:$8 sps:$4 sm:$0xff]   ;;  %v7021_v23 = vld [vmem:[#allocation16 + $0x3a4] ss:$8 sps:$4 sm:$0xff]  }
 0x7e6   :  { %2276 = vmatpush2.bf16.msra.mxu1 %v7016_v42 }
 0x7e7   :  { %v1878_v49 = vmul.f32 %v8010_v13, %v8010_v13  ;;  %v1879_v53 = vmul.f32 %v8012_v47, %v8012_v47  ;;  %2277 = vmatprep.subr.bf16.mxu1 %v7021_v23 }
 0x7e9   :  { %v1880_v59 = vadd.f32 %v1879_v53, %v1878_v49 }
 0x7ea   :  { %2278 = vmatpush2.bf16.msra.mxu1 %v7019_v43 }
 0x7eb   :  { %1881 = vadd.xlane.f32.xlu1 %v1880_v59  ;;  %2279 = vmatprep.subr.bf16.mxu1 %v7024_v36 }
 0x7ee   :  { %2280 = vmatpush2.bf16.msra.mxu1 %v7022_v55 }
 0x7ef   :  { %2281 = vmatprep.subr.bf16.mxu1 %v7027_v40 }
 0x7f2   :  { %2282 = vmatpush2.bf16.msra.mxu1 %v7025_v8 }
 0x874   :  { %v1882_v46 = vpop.xlane.xlu1 %1881 }
 0x875   :  { %v1883_v54 = vmul.f32 0.00390625, %v1882_v46 }
 0x877   :  { %v1884_v49 = vadd.f32 1e-05, %v1883_v54 }
 0x879   :  { %7316 = vrsqrt.f32 %v1884_v49 }
 0x886   :  { %v7317_v53 = vpop.eup %7316 }
 0x887   :  { %v1887_v59 = vmul.f32 %v7317_v53, %v8012_v47  ;;  %v1886_v17 = vmul.f32 %v7317_v53, %v8010_v13  ;;  %v2293_v47 = vld [vmem:[#allocation19 + $0x8] sm:$0xf] }
 0x888   :  { %v2318_v13 = vrot.slane %v2293_v47, %v7864_v29  ;;  %v2322_v21 = vrot.slane %v2293_v47, %v7971_v16  ;;  %v2298_v25 = vrot.slane %v2293_v47, %v7861_v24  ;;  %v2302_v32 = vrot.slane %v2293_v47, %v7976_v39  ;;  %v7042_v47 = vld [vmem:[#allocation16 + $0x4b4] ss:$8 sps:$4 sm:$0xff]  }
 0x889   :  { %v5901_v11 = vmul.f32 -1.442695, %v1887_v59  ;;  %v5900_v3 = vmul.f32 -1.442695, %v1886_v17 }
 0x88a   :  { %v2328_v27 = vrot.slane %v2318_v13, %v7864_v29  ;;  %v2332_v31 = vrot.slane %v2322_v21, %v7864_v29  ;;  %v2308_v34 = vrot.slane %v2298_v25, %v7861_v24  ;;  %v2312_v43 = vrot.slane %v2302_v32, %v7861_v24  ;;  %v7040_v13 = vld [vmem:[#allocation16 + $0x4b0] ss:$8 sps:$4 sm:$0xff]   ;;  %v7045_v21 = vld [vmem:[#allocation16 + $0x4a4] ss:$8 sps:$4 sm:$0xff]   ;;  %v7043_v25 = vld [vmem:[#allocation16 + $0x4a0] ss:$8 sps:$4 sm:$0xff]  }
 0x88b   :  { %7318 = vpow2.f32 %v5901_v11  ;;  %v7051_v32 = vld [vmem:[#allocation16 + $0x484] ss:$8 sps:$4 sm:$0xff]  }
 0x88c   :  { %7320 = vpow2.f32 %v5900_v3  ;;  %v2448_v41 = vadd.f32 %v7902_v22, %v2328_v27  ;;  %v2450_v42 = vadd.f32 %v7906_v26, %v2332_v31  ;;  %v7028_v22 = vld [vmem:[#allocation16 + $0x4f0] ss:$8 sps:$4 sm:$0xff]   ;;  %v7030_v3 = vld [vmem:[#allocation16 + $0x4f4] ss:$8 sps:$4 sm:$0xff]   ;;  %v7033_v26 = vld [vmem:[#allocation16 + $0x4e4] ss:$8 sps:$4 sm:$0xff]  }
 0x88d   :  { %2837 = vmatprep.subr.bf16.mxu1 %v7030_v3  ;;  %v7048_v27 = vld [vmem:[#allocation16 + $0x494] ss:$8 sps:$4 sm:$0xff]   ;;  %v7046_v31 = vld [vmem:[#allocation16 + $0x490] ss:$8 sps:$4 sm:$0xff]  }
 0x88e   :  { %v2454_v46 = vadd.f32 1.0, %v2448_v41  ;;  %v2455_v54 = vadd.f32 1.0, %v2450_v42  ;;  %v7052_v41 = vld [vmem:[#allocation16 + $0x570] ss:$8 sps:$4 sm:$0xff]   ;;  %v7057_v42 = vld [vmem:[#allocation16 + $0x564] ss:$8 sps:$4 sm:$0xff]  }
 0x898   :  { %v7319_v19 = vpop.eup %7318 }
 0x899   :  { %v7321_v57 = vpop.eup %7320  ;;  %v1895_v38 = vadd.f32 1.0, %v7319_v19 }
 0x89a   :  { %v1894_v1 = vadd.f32 1.0, %v7321_v57 }
 0x89b   :  { %7322 = vrcp.f32 %v1895_v38 }
 0x89c   :  { %7324 = vrcp.f32 %v1894_v1 }
 0x8a8   :  { %v7323_v44 = vpop.eup %7322 }
 0x8a9   :  { %v7325_v9 = vpop.eup %7324  ;;  %v1901_v14 = vmul.f32 %v7323_v44, %v1887_v59 }
 0x8aa   :  { %v1900_v15 = vmul.f32 %v7325_v9, %v1886_v17 }
 0x8ab   :  { %v1903_v18 = vpack.c.bf16 %v1901_v14, %v1901_v14  ;;  %v7036_v14 = vld [vmem:[#allocation16 + $0x4d4] ss:$8 sps:$4 sm:$0xff]  }
 0x8ac   :  { %v1902_v20 = vpack.c.bf16 %v1900_v15, %v1900_v15  ;;  %v7034_v15 = vld [vmem:[#allocation16 + $0x4d0] ss:$8 sps:$4 sm:$0xff]  }
 0x8ad   :  { %2283 = vmatprep.mubr.bf16.mxu1 %v1903_v18  ;;  %v7037_v18 = vld [vmem:[#allocation16 + $0x4c0] ss:$8 sps:$4 sm:$0xff]  }
 0x8ae   :  { %2284 = vmatmul.mubr.bf16.vlgmr.msra.gmra.mxu1 %v1902_v20  ;;  %v7039_v20 = vld [vmem:[#allocation16 + $0x4c4] ss:$8 sps:$4 sm:$0xff]  }
 0x8af   :  { %2838 = vmatpush1.bf16.msra.mxu1 %v7028_v22 }
 0x8b0   :  { %2839 = vmatprep.subr.bf16.mxu1 %v7033_v26 }
 0x96e   :  { %v2285_v37 = vpop.f32.mrf.mxu1 }
 0x96f   :  { %v2286_v23 = vadd.f32 %v2285_v37, %v7897_v60  ;;  %v7031_v60 = vld [vmem:[#allocation16 + $0x4e0] ss:$8 sps:$4 sm:$0xff]   ;;  %v7054_v37 = vld [vmem:[#allocation16 + $0x574] ss:$8 sps:$4 sm:$0xff]  }
 0x970   :  { %v2287_v36 = vpop.f32.mrf.mxu1  ;;  %2840 = vmatpush1.bf16.msra.mxu1 %v7031_v60 }
 0x971   :  { %v2313_v55 = vadd.f32 %v2308_v34, %v2286_v23  ;;  %v2288_v40 = vadd.f32 %v2287_v36, %v7900_v62  ;;  %2841 = vmatprep.subr.bf16.mxu1 %v7036_v14  ;;  %v7049_v34 = vld [vmem:[#allocation16 + $0x480] ss:$8 sps:$4 sm:$0xff]   ;;  %v7058_v36 = vld [vmem:[#allocation16 + $0x550] ss:$8 sps:$4 sm:$0xff]  }
 0x972   :  { %v2289_v8 = vpop.f32.mrf.mxu1  ;;  %v7055_v23 = vld [vmem:[#allocation16 + $0x560] ss:$8 sps:$4 sm:$0xff]  }
 0x973   :  { %v2314_v49 = vadd.f32 %v2312_v43, %v2288_v40  ;;  %v2456_v59 = vmul.f32 %v2454_v46, %v2313_v55  ;;  %v7060_v43 = vld [vmem:[#allocation16 + $0x554] ss:$8 sps:$4 sm:$0xff]   ;;  %v7063_v55 = vld [vmem:[#allocation16 + $0x544] ss:$8 sps:$4 sm:$0xff]   ;;  %v7061_v40 = vld [vmem:[#allocation16 + $0x540] ss:$8 sps:$4 sm:$0xff]  }
 0x974   :  { %v2290_v53 = vpop.f32.mrf.mxu1  ;;  %2842 = vmatpush1.bf16.msra.mxu1 %v7034_v15  ;;  %v7066_v8 = vld [vmem:[#allocation16 + $0x534] ss:$8 sps:$4 sm:$0xff]   ;;  %v7064_v46 = vld [vmem:[#allocation16 + $0x530] ss:$8 sps:$4 sm:$0xff]  }
 0x975   :  { %v2457_v17 = vmul.f32 %v2455_v54, %v2314_v49  ;;  %2843 = vmatprep.subr.bf16.mxu1 %v7039_v20  ;;  %v7069_v54 = vld [vmem:[#allocation16 + $0x524] ss:$8 sps:$4 sm:$0xff]   ;;  %v7067_v49 = vld [vmem:[#allocation16 + $0x520] ss:$8 sps:$4 sm:$0xff]   ;;  %v7072_v53 = vld [vmem:[#allocation16 + $0x514] ss:$8 sps:$4 sm:$0xff]  }
 0x977   :  { %v2458_v11 = vadd.f32 %v2457_v17, %v2456_v59 }
 0x978   :  { %2844 = vmatpush1.bf16.msra.mxu1 %v7037_v18 }
 0x979   :  { %2459 = vadd.xlane.f32.xlu0 %v2458_v11  ;;  %2845 = vmatprep.subr.bf16.mxu1 %v7042_v47  ;;  %v7073_v11 = vld [vmem:[#allocation16 + $0x500] ss:$8 sps:$4 sm:$0xff]  }
 0x97c   :  { %2846 = vmatpush1.bf16.msra.mxu1 %v7040_v13 }
 0x97d   :  { %2847 = vmatprep.subr.bf16.mxu1 %v7045_v21 }
 0x980   :  { %2848 = vmatpush1.bf16.msra.mxu1 %v7043_v25 }
 0x981   :  { %2849 = vmatprep.subr.bf16.mxu1 %v7048_v27 }
 0x984   :  { %2850 = vmatpush1.bf16.msra.mxu1 %v7046_v31 }
 0x985   :  { %2851 = vmatprep.subr.bf16.mxu1 %v7051_v32 }
 0x988   :  { %2852 = vmatpush1.bf16.msra.mxu1 %v7049_v34 }
 0x989   :  { %2853 = vmatprep.subr.bf16.mxu1 %v7054_v37 }
 0x98c   :  { %2854 = vmatpush2.bf16.msra.mxu1 %v7052_v41 }
 0x98d   :  { %2855 = vmatprep.subr.bf16.mxu1 %v7057_v42 }
 0x990   :  { %2856 = vmatpush2.bf16.msra.mxu1 %v7055_v23 }
 0x991   :  { %2857 = vmatprep.subr.bf16.mxu1 %v7060_v43 }
 0x994   :  { %2858 = vmatpush2.bf16.msra.mxu1 %v7058_v36 }
 0x995   :  { %2859 = vmatprep.subr.bf16.mxu1 %v7063_v55 }
 0x998   :  { %2860 = vmatpush2.bf16.msra.mxu1 %v7061_v40 }
 0x999   :  { %2861 = vmatprep.subr.bf16.mxu1 %v7066_v8 }
 0x99c   :  { %2862 = vmatpush2.bf16.msra.mxu1 %v7064_v46 }
 0x99d   :  { %2863 = vmatprep.subr.bf16.mxu1 %v7069_v54 }
 0x9a0   :  { %2864 = vmatpush2.bf16.msra.mxu1 %v7067_v49 }
 0x9a1   :  { %2865 = vmatprep.subr.bf16.mxu1 %v7072_v53 }
 0xa02   :  { %v2460_v19 = vpop.xlane.xlu0 %2459 }
 0xa03   :  { %v2461_v57 = vmul.f32 0.00390625, %v2460_v19 }
 0xa05   :  { %v8032_v62 = vsub.f32 %v2456_v59, %v2461_v57  ;;  %v8034_v38 = vsub.f32 %v2457_v17, %v2461_v57  ;;  %v7070_v59 = vld [vmem:[#allocation16 + $0x510] ss:$8 sps:$4 sm:$0xff]   ;;  %v7075_v17 = vld [vmem:[#allocation16 + $0x504] ss:$8 sps:$4 sm:$0xff]  }
 0xa06   :  { %2866 = vmatpush2.bf16.msra.mxu1 %v7070_v59 }
 0xa07   :  { %v2464_v1 = vmul.f32 %v8032_v62, %v8032_v62  ;;  %v2465_v44 = vmul.f32 %v8034_v38, %v8034_v38  ;;  %2867 = vmatprep.subr.bf16.mxu1 %v7075_v17 }
 0xa09   :  { %v2466_v9 = vadd.f32 %v2465_v44, %v2464_v1 }
 0xa0a   :  { %2868 = vmatpush2.bf16.msra.mxu1 %v7073_v11 }
 0xa0b   :  { %2467 = vadd.xlane.f32.xlu1 %v2466_v9 }
 0xa94   :  { %v2468_v22 = vpop.xlane.xlu1 %2467 }
 0xa95   :  { %v2469_v3 = vmul.f32 0.00390625, %v2468_v22 }
 0xa97   :  { %v2470_v26 = vadd.f32 1e-05, %v2469_v3 }
 0xa99   :  { %7326 = vrsqrt.f32 %v2470_v26 }
 0xaa6   :  { %v7327_v60 = vpop.eup %7326 }
 0xaa7   :  { %v2473_v19 = vmul.f32 %v7327_v60, %v8034_v38  ;;  %v2472_v57 = vmul.f32 %v7327_v60, %v8032_v62  ;;  %v2879_v38 = vld [vmem:[#allocation19 + $0xc] sm:$0xf]  ;;  %v7078_v60 = vld [vmem:[#allocation16 + $0x674] ss:$8 sps:$4 sm:$0xff]  }
 0xaa8   :  { %v2904_v62 = vrot.slane %v2879_v38, %v7864_v29  ;;  %v2908_v31 = vrot.slane %v2879_v38, %v7971_v16  ;;  %v2884_v32 = vrot.slane %v2879_v38, %v7861_v24  ;;  %v2888_v41 = vrot.slane %v2879_v38, %v7976_v39  ;;  %3423 = vmatprep.subr.bf16.mxu1 %v7078_v60  ;;  %v7096_v38 = vld [vmem:[#allocation16 + $0x614] ss:$8 sps:$4 sm:$0xff]  }
 0xaa9   :  { %v5967_v1 = vmul.f32 -1.442695, %v2473_v19  ;;  %v5966_v44 = vmul.f32 -1.442695, %v2472_v57 }
 0xaaa   :  { %v2914_v34 = vrot.slane %v2904_v62, %v7864_v29  ;;  %v2918_v37 = vrot.slane %v2908_v31, %v7864_v29  ;;  %v2894_v42 = vrot.slane %v2884_v32, %v7861_v24  ;;  %v2898_v40 = vrot.slane %v2888_v41, %v7861_v24  ;;  %v7094_v62 = vld [vmem:[#allocation16 + $0x610] ss:$8 sps:$4 sm:$0xff]   ;;  %v7099_v31 = vld [vmem:[#allocation16 + $0x604] ss:$8 sps:$4 sm:$0xff]   ;;  %v7097_v32 = vld [vmem:[#allocation16 + $0x600] ss:$8 sps:$4 sm:$0xff]  }
 0xaab   :  { %7328 = vpow2.f32 %v5967_v1  ;;  %v7105_v41 = vld [vmem:[#allocation16 + $0x6e4] ss:$8 sps:$4 sm:$0xff]  }
 0xaac   :  { %7330 = vpow2.f32 %v5966_v44  ;;  %v3034_v43 = vadd.f32 %v7924_v51, %v2914_v34  ;;  %v3036_v36 = vadd.f32 %v7928_v56, %v2918_v37  ;;  %v7076_v51 = vld [vmem:[#allocation16 + $0x670] ss:$8 sps:$4 sm:$0xff]   ;;  %v7081_v56 = vld [vmem:[#allocation16 + $0x664] ss:$8 sps:$4 sm:$0xff]   ;;  %v7102_v34 = vld [vmem:[#allocation16 + $0x6f4] ss:$8 sps:$4 sm:$0xff]  }
 0xaad   :  { %v7100_v37 = vld [vmem:[#allocation16 + $0x6f0] ss:$8 sps:$4 sm:$0xff]  }
 0xaae   :  { %v3040_v53 = vadd.f32 1.0, %v3034_v43  ;;  %v3041_v59 = vadd.f32 1.0, %v3036_v36  ;;  %v7106_v43 = vld [vmem:[#allocation16 + $0x6d0] ss:$8 sps:$4 sm:$0xff]   ;;  %v7111_v36 = vld [vmem:[#allocation16 + $0x6c4] ss:$8 sps:$4 sm:$0xff]  }
 0xab8   :  { %v7329_v9 = vpop.eup %7328 }
 0xab9   :  { %v7331_v14 = vpop.eup %7330  ;;  %v2481_v15 = vadd.f32 1.0, %v7329_v9 }
 0xaba   :  { %v2480_v18 = vadd.f32 1.0, %v7331_v14 }
 0xabb   :  { %7332 = vrcp.f32 %v2481_v15  ;;  %v7084_v15 = vld [vmem:[#allocation16 + $0x654] ss:$8 sps:$4 sm:$0xff]  }
 0xabc   :  { %7334 = vrcp.f32 %v2480_v18  ;;  %v7082_v18 = vld [vmem:[#allocation16 + $0x650] ss:$8 sps:$4 sm:$0xff]  }
 0xac8   :  { %v7333_v20 = vpop.eup %7332 }
 0xac9   :  { %v7335_v47 = vpop.eup %7334  ;;  %v2487_v13 = vmul.f32 %v7333_v20, %v2473_v19  ;;  %v7085_v20 = vld [vmem:[#allocation16 + $0x640] ss:$8 sps:$4 sm:$0xff]  }
 0xaca   :  { %v2486_v21 = vmul.f32 %v7335_v47, %v2472_v57  ;;  %v7087_v47 = vld [vmem:[#allocation16 + $0x644] ss:$8 sps:$4 sm:$0xff]  }
 0xacb   :  { %v2489_v25 = vpack.c.bf16 %v2487_v13, %v2487_v13  ;;  %v7090_v13 = vld [vmem:[#allocation16 + $0x634] ss:$8 sps:$4 sm:$0xff]  }
 0xacc   :  { %v2488_v27 = vpack.c.bf16 %v2486_v21, %v2486_v21  ;;  %v7088_v21 = vld [vmem:[#allocation16 + $0x630] ss:$8 sps:$4 sm:$0xff]  }
 0xacd   :  { %2869 = vmatprep.mubr.bf16.mxu1 %v2489_v25  ;;  %v7093_v25 = vld [vmem:[#allocation16 + $0x624] ss:$8 sps:$4 sm:$0xff]  }
 0xace   :  { %2870 = vmatmul.mubr.bf16.vlgmr.msra.gmra.mxu1 %v2488_v27  ;;  %v7091_v27 = vld [vmem:[#allocation16 + $0x620] ss:$8 sps:$4 sm:$0xff]  }
 0xacf   :  { %3424 = vmatpush1.bf16.msra.mxu1 %v7076_v51 }
 0xad0   :  { %3425 = vmatprep.subr.bf16.mxu1 %v7081_v56 }
 0xb8e   :  { %v2871_v23 = vpop.f32.mrf.mxu1 }
 0xb8f   :  { %v2872_v55 = vadd.f32 %v2871_v23, %v7919_v58  ;;  %v7079_v58 = vld [vmem:[#allocation16 + $0x660] ss:$8 sps:$4 sm:$0xff]   ;;  %v7108_v23 = vld [vmem:[#allocation16 + $0x6d4] ss:$8 sps:$4 sm:$0xff]  }
 0xb90   :  { %v2873_v8 = vpop.f32.mrf.mxu1  ;;  %3426 = vmatpush1.bf16.msra.mxu1 %v7079_v58 }
 0xb91   :  { %v2899_v46 = vadd.f32 %v2894_v42, %v2872_v55  ;;  %v2874_v54 = vadd.f32 %v2873_v8, %v7922_v4  ;;  %3427 = vmatprep.subr.bf16.mxu1 %v7084_v15  ;;  %v7103_v42 = vld [vmem:[#allocation16 + $0x6e0] ss:$8 sps:$4 sm:$0xff]   ;;  %v7112_v8 = vld [vmem:[#allocation16 + $0x6b0] ss:$8 sps:$4 sm:$0xff]  }
 0xb92   :  { %v2875_v49 = vpop.f32.mrf.mxu1  ;;  %v7109_v55 = vld [vmem:[#allocation16 + $0x6c0] ss:$8 sps:$4 sm:$0xff]  }
 0xb93   :  { %v2900_v17 = vadd.f32 %v2898_v40, %v2874_v54  ;;  %v3042_v22 = vmul.f32 %v3040_v53, %v2899_v46  ;;  %v7114_v40 = vld [vmem:[#allocation16 + $0x6b4] ss:$8 sps:$4 sm:$0xff]   ;;  %v7117_v46 = vld [vmem:[#allocation16 + $0x6a4] ss:$8 sps:$4 sm:$0xff]   ;;  %v7115_v54 = vld [vmem:[#allocation16 + $0x6a0] ss:$8 sps:$4 sm:$0xff]  }
 0xb94   :  { %v2876_v11 = vpop.f32.mrf.mxu1  ;;  %3428 = vmatpush1.bf16.msra.mxu1 %v7082_v18  ;;  %v7120_v49 = vld [vmem:[#allocation16 + $0x694] ss:$8 sps:$4 sm:$0xff]   ;;  %v7118_v53 = vld [vmem:[#allocation16 + $0x690] ss:$8 sps:$4 sm:$0xff]  }
 0xb95   :  { %v3043_v3 = vmul.f32 %v3041_v59, %v2900_v17  ;;  %3429 = vmatprep.subr.bf16.mxu1 %v7087_v47  ;;  %v7123_v59 = vld [vmem:[#allocation16 + $0x684] ss:$8 sps:$4 sm:$0xff]   ;;  %v7121_v17 = vld [vmem:[#allocation16 + $0x680] ss:$8 sps:$4 sm:$0xff]  }
 0xb97   :  { %v3044_v26 = vadd.f32 %v3043_v3, %v3042_v22 }
 0xb98   :  { %3430 = vmatpush1.bf16.msra.mxu1 %v7085_v20 }
 0xb99   :  { %3045 = vadd.xlane.f32.xlu0 %v3044_v26  ;;  %3431 = vmatprep.subr.bf16.mxu1 %v7090_v13 }
 0xb9c   :  { %3432 = vmatpush1.bf16.msra.mxu1 %v7088_v21 }
 0xb9d   :  { %3433 = vmatprep.subr.bf16.mxu1 %v7093_v25 }
 0xba0   :  { %3434 = vmatpush1.bf16.msra.mxu1 %v7091_v27 }
 0xba1   :  { %3435 = vmatprep.subr.bf16.mxu1 %v7096_v38 }
 0xba4   :  { %3436 = vmatpush1.bf16.msra.mxu1 %v7094_v62 }
 0xba5   :  { %3437 = vmatprep.subr.bf16.mxu1 %v7099_v31 }
 0xba8   :  { %3438 = vmatpush1.bf16.msra.mxu1 %v7097_v32 }
 0xba9   :  { %3439 = vmatprep.subr.bf16.mxu1 %v7102_v34 }
 0xbac   :  { %3440 = vmatpush2.bf16.msra.mxu1 %v7100_v37 }
 0xbad   :  { %3441 = vmatprep.subr.bf16.mxu1 %v7105_v41 }
 0xbb0   :  { %3442 = vmatpush2.bf16.msra.mxu1 %v7103_v42 }
 0xbb1   :  { %3443 = vmatprep.subr.bf16.mxu1 %v7108_v23 }
 0xbb4   :  { %3444 = vmatpush2.bf16.msra.mxu1 %v7106_v43 }
 0xbb5   :  { %3445 = vmatprep.subr.bf16.mxu1 %v7111_v36 }
 0xbb8   :  { %3446 = vmatpush2.bf16.msra.mxu1 %v7109_v55 }
 0xbb9   :  { %3447 = vmatprep.subr.bf16.mxu1 %v7114_v40 }
 0xbbc   :  { %3448 = vmatpush2.bf16.msra.mxu1 %v7112_v8 }
 0xbbd   :  { %3449 = vmatprep.subr.bf16.mxu1 %v7117_v46 }
 0xbc0   :  { %3450 = vmatpush2.bf16.msra.mxu1 %v7115_v54 }
 0xbc1   :  { %3451 = vmatprep.subr.bf16.mxu1 %v7120_v49 }
 0xbc4   :  { %3452 = vmatpush2.bf16.msra.mxu1 %v7118_v53 }
 0xbc5   :  { %3453 = vmatprep.subr.bf16.mxu1 %v7123_v59 }
 0xbc8   :  { %3454 = vmatpush2.bf16.msra.mxu1 %v7121_v17  ;;  %v7126_v17 = vld [vmem:[#allocation16 + $0x7f4] ss:$8 sps:$4 sm:$0xff]  }
 0xbc9   :  { %4009 = vmatprep.subr.bf16.mxu1 %v7126_v17 }
 0xc22   :  { %v3046_v19 = vpop.xlane.xlu0 %3045 }
 0xc23   :  { %v3047_v57 = vmul.f32 0.00390625, %v3046_v19 }
 0xc25   :  { %v8054_v4 = vsub.f32 %v3042_v22, %v3047_v57  ;;  %v8056_v1 = vsub.f32 %v3043_v3, %v3047_v57 }
 0xc27   :  { %v3050_v44 = vmul.f32 %v8054_v4, %v8054_v4  ;;  %v3051_v9 = vmul.f32 %v8056_v1, %v8056_v1 }
 0xc29   :  { %v3052_v14 = vadd.f32 %v3051_v9, %v3050_v44 }
 0xc2b   :  { %3053 = vadd.xlane.f32.xlu1 %v3052_v14 }
 0xcb4   :  { %v3054_v11 = vpop.xlane.xlu1 %3053 }
 0xcb5   :  { %v3055_v22 = vmul.f32 0.00390625, %v3054_v11 }
 0xcb7   :  { %v3056_v3 = vadd.f32 1e-05, %v3055_v22 }
 0xcb9   :  { %7336 = vrsqrt.f32 %v3056_v3 }
 0xcc6   :  { %v7337_v26 = vpop.eup %7336 }
 0xcc7   :  { %v3059_v51 = vmul.f32 %v7337_v26, %v8056_v1  ;;  %v3058_v60 = vmul.f32 %v7337_v26, %v8054_v4  ;;  %v3465_v1 = vld [vmem:[#allocation19 + $0x10] sm:$0xf] }
 0xcc8   :  { %v3490_v4 = vrot.slane %v3465_v1, %v7864_v29  ;;  %v3494_v21 = vrot.slane %v3465_v1, %v7971_v16  ;;  %v3470_v25 = vrot.slane %v3465_v1, %v7861_v24  ;;  %v3474_v62 = vrot.slane %v3465_v1, %v7976_v39  ;;  %v7150_v1 = vld [vmem:[#allocation16 + $0x874] ss:$8 sps:$4 sm:$0xff]  }
 0xcc9   :  { %v6033_v56 = vmul.f32 -1.442695, %v3059_v51  ;;  %v6032_v58 = vmul.f32 -1.442695, %v3058_v60 }
 0xcca   :  { %v3500_v27 = vrot.slane %v3490_v4, %v7864_v29  ;;  %v3504_v38 = vrot.slane %v3494_v21, %v7864_v29  ;;  %v3480_v31 = vrot.slane %v3470_v25, %v7861_v24  ;;  %v3484_v42 = vrot.slane %v3474_v62, %v7861_v24  ;;  %v7148_v4 = vld [vmem:[#allocation16 + $0x870] ss:$8 sps:$4 sm:$0xff]   ;;  %v7153_v21 = vld [vmem:[#allocation16 + $0x864] ss:$8 sps:$4 sm:$0xff]   ;;  %v7151_v25 = vld [vmem:[#allocation16 + $0x860] ss:$8 sps:$4 sm:$0xff]  }
 0xccb   :  { %7338 = vpow2.f32 %v6033_v56  ;;  %v7132_v56 = vld [vmem:[#allocation16 + $0x7d4] ss:$8 sps:$4 sm:$0xff]   ;;  %v7159_v62 = vld [vmem:[#allocation16 + $0x844] ss:$8 sps:$4 sm:$0xff]  }
 0xccc   :  { %7340 = vpow2.f32 %v6032_v58  ;;  %v3620_v34 = vadd.f32 %v7937_v33, %v3500_v27  ;;  %v3622_v37 = vadd.f32 %v7942_v5, %v3504_v38  ;;  %v7124_v33 = vld [vmem:[#allocation16 + $0x7f0] ss:$8 sps:$4 sm:$0xff]   ;;  %v7129_v5 = vld [vmem:[#allocation16 + $0x7e4] ss:$8 sps:$4 sm:$0xff]   ;;  %v7156_v27 = vld [vmem:[#allocation16 + $0x854] ss:$8 sps:$4 sm:$0xff]  }
 0xccd   :  { %v7130_v58 = vld [vmem:[#allocation16 + $0x7d0] ss:$8 sps:$4 sm:$0xff]  }
 0xcce   :  { %v3626_v40 = vadd.f32 1.0, %v3620_v34  ;;  %v3627_v8 = vadd.f32 1.0, %v3622_v37  ;;  %v7154_v38 = vld [vmem:[#allocation16 + $0x850] ss:$8 sps:$4 sm:$0xff]   ;;  %v7165_v37 = vld [vmem:[#allocation16 + $0x824] ss:$8 sps:$4 sm:$0xff]  }
 0xccf   :  { %v7160_v34 = vld [vmem:[#allocation16 + $0x830] ss:$8 sps:$4 sm:$0xff]  }
 0xcd8   :  { %v7339_v19 = vpop.eup %7338 }
 0xcd9   :  { %v7341_v57 = vpop.eup %7340  ;;  %v3067_v44 = vadd.f32 1.0, %v7339_v19  ;;  %v7133_v19 = vld [vmem:[#allocation16 + $0x7c0] ss:$8 sps:$4 sm:$0xff]  }
 0xcda   :  { %v3066_v9 = vadd.f32 1.0, %v7341_v57  ;;  %v7135_v57 = vld [vmem:[#allocation16 + $0x7c4] ss:$8 sps:$4 sm:$0xff]  }
 0xcdb   :  { %7342 = vrcp.f32 %v3067_v44  ;;  %v7138_v44 = vld [vmem:[#allocation16 + $0x7b4] ss:$8 sps:$4 sm:$0xff]  }
 0xcdc   :  { %7344 = vrcp.f32 %v3066_v9  ;;  %v7136_v9 = vld [vmem:[#allocation16 + $0x7b0] ss:$8 sps:$4 sm:$0xff]  }
 0xce8   :  { %v7343_v14 = vpop.eup %7342 }
 0xce9   :  { %v7345_v15 = vpop.eup %7344  ;;  %v3073_v18 = vmul.f32 %v7343_v14, %v3059_v51  ;;  %v7141_v14 = vld [vmem:[#allocation16 + $0x7a4] ss:$8 sps:$4 sm:$0xff]  }
 0xcea   :  { %v3072_v20 = vmul.f32 %v7345_v15, %v3058_v60  ;;  %v7139_v15 = vld [vmem:[#allocation16 + $0x7a0] ss:$8 sps:$4 sm:$0xff]  }
 0xceb   :  { %v3075_v47 = vpack.c.bf16 %v3073_v18, %v3073_v18  ;;  %v7144_v18 = vld [vmem:[#allocation16 + $0x794] ss:$8 sps:$4 sm:$0xff]  }
 0xcec   :  { %v3074_v13 = vpack.c.bf16 %v3072_v20, %v3072_v20  ;;  %v7142_v20 = vld [vmem:[#allocation16 + $0x790] ss:$8 sps:$4 sm:$0xff]  }
 0xced   :  { %3455 = vmatprep.mubr.bf16.mxu1 %v3075_v47  ;;  %v7147_v47 = vld [vmem:[#allocation16 + $0x784] ss:$8 sps:$4 sm:$0xff]  }
 0xcee   :  { %3456 = vmatmul.mubr.bf16.vlgmr.msra.gmra.mxu1 %v3074_v13  ;;  %v7145_v13 = vld [vmem:[#allocation16 + $0x780] ss:$8 sps:$4 sm:$0xff]  }
 0xcef   :  { %4010 = vmatpush1.bf16.msra.mxu1 %v7124_v33 }
 0xcf0   :  { %4011 = vmatprep.subr.bf16.mxu1 %v7129_v5 }
 0xdae   :  { %v3457_v32 = vpop.f32.mrf.mxu1 }
 0xdaf   :  { %v3458_v41 = vadd.f32 %v3457_v32, %v7931_v45  ;;  %v7127_v45 = vld [vmem:[#allocation16 + $0x7e0] ss:$8 sps:$4 sm:$0xff]   ;;  %v7162_v32 = vld [vmem:[#allocation16 + $0x834] ss:$8 sps:$4 sm:$0xff]  }
 0xdb0   :  { %v3459_v23 = vpop.f32.mrf.mxu1  ;;  %4012 = vmatpush1.bf16.msra.mxu1 %v7127_v45 }
 0xdb1   :  { %v3485_v43 = vadd.f32 %v3480_v31, %v3458_v41  ;;  %v3460_v36 = vadd.f32 %v3459_v23, %v7934_v48  ;;  %4013 = vmatprep.subr.bf16.mxu1 %v7132_v56  ;;  %v7157_v31 = vld [vmem:[#allocation16 + $0x840] ss:$8 sps:$4 sm:$0xff]   ;;  %v7166_v23 = vld [vmem:[#allocation16 + $0x810] ss:$8 sps:$4 sm:$0xff]  }
 0xdb2   :  { %v3461_v55 = vpop.f32.mrf.mxu1  ;;  %v7163_v41 = vld [vmem:[#allocation16 + $0x820] ss:$8 sps:$4 sm:$0xff]  }
 0xdb3   :  { %v3486_v46 = vadd.f32 %v3484_v42, %v3460_v36  ;;  %v3628_v49 = vmul.f32 %v3626_v40, %v3485_v43  ;;  %v7168_v42 = vld [vmem:[#allocation16 + $0x814] ss:$8 sps:$4 sm:$0xff]   ;;  %v7171_v43 = vld [vmem:[#allocation16 + $0x804] ss:$8 sps:$4 sm:$0xff]   ;;  %v7169_v36 = vld [vmem:[#allocation16 + $0x800] ss:$8 sps:$4 sm:$0xff]  }
 0xdb4   :  { %v3462_v54 = vpop.f32.mrf.mxu1  ;;  %4014 = vmatpush1.bf16.msra.mxu1 %v7130_v58 }
 0xdb5   :  { %v3629_v53 = vmul.f32 %v3627_v8, %v3486_v46  ;;  %4015 = vmatprep.subr.bf16.mxu1 %v7135_v57 }
 0xdb7   :  { %v3630_v59 = vadd.f32 %v3629_v53, %v3628_v49 }
 0xdb8   :  { %4016 = vmatpush1.bf16.msra.mxu1 %v7133_v19 }
 0xdb9   :  { %3631 = vadd.xlane.f32.xlu0 %v3630_v59  ;;  %4017 = vmatprep.subr.bf16.mxu1 %v7138_v44 }
 0xdbc   :  { %4018 = vmatpush1.bf16.msra.mxu1 %v7136_v9 }
 0xdbd   :  { %4019 = vmatprep.subr.bf16.mxu1 %v7141_v14 }
 0xdc0   :  { %4020 = vmatpush1.bf16.msra.mxu1 %v7139_v15 }
 0xdc1   :  { %4021 = vmatprep.subr.bf16.mxu1 %v7144_v18 }
 0xdc4   :  { %4022 = vmatpush1.bf16.msra.mxu1 %v7142_v20 }
 0xdc5   :  { %4023 = vmatprep.subr.bf16.mxu1 %v7147_v47 }
 0xdc8   :  { %4024 = vmatpush1.bf16.msra.mxu1 %v7145_v13 }
 0xdc9   :  { %4025 = vmatprep.subr.bf16.mxu1 %v7150_v1 }
 0xdcc   :  { %4026 = vmatpush2.bf16.msra.mxu1 %v7148_v4 }
 0xdcd   :  { %4027 = vmatprep.subr.bf16.mxu1 %v7153_v21 }
 0xdd0   :  { %4028 = vmatpush2.bf16.msra.mxu1 %v7151_v25 }
 0xdd1   :  { %4029 = vmatprep.subr.bf16.mxu1 %v7156_v27 }
 0xdd4   :  { %4030 = vmatpush2.bf16.msra.mxu1 %v7154_v38 }
 0xdd5   :  { %4031 = vmatprep.subr.bf16.mxu1 %v7159_v62 }
 0xdd8   :  { %4032 = vmatpush2.bf16.msra.mxu1 %v7157_v31 }
 0xdd9   :  { %4033 = vmatprep.subr.bf16.mxu1 %v7162_v32 }
 0xddc   :  { %4034 = vmatpush2.bf16.msra.mxu1 %v7160_v34 }
 0xddd   :  { %4035 = vmatprep.subr.bf16.mxu1 %v7165_v37 }
 0xde0   :  { %4036 = vmatpush2.bf16.msra.mxu1 %v7163_v41  ;;  %v7174_v41 = vld [vmem:[#allocation16 + $0x974] ss:$8 sps:$4 sm:$0xff]  }
 0xde1   :  { %4037 = vmatprep.subr.bf16.mxu1 %v7168_v42 }
 0xde4   :  { %4038 = vmatpush2.bf16.msra.mxu1 %v7166_v23 }
 0xde5   :  { %4039 = vmatprep.subr.bf16.mxu1 %v7171_v43 }
 0xde8   :  { %4040 = vmatpush2.bf16.msra.mxu1 %v7169_v36 }
 0xde9   :  { %4595 = vmatprep.subr.bf16.mxu1 %v7174_v41 }
 0xe42   :  { %v3632_v11 = vpop.xlane.xlu0 %3631 }
 0xe43   :  { %v3633_v22 = vmul.f32 0.00390625, %v3632_v11 }
 0xe45   :  { %v8076_v48 = vsub.f32 %v3628_v49, %v3633_v22  ;;  %v8078_v3 = vsub.f32 %v3629_v53, %v3633_v22 }
 0xe47   :  { %v3636_v26 = vmul.f32 %v8076_v48, %v8076_v48  ;;  %v3637_v51 = vmul.f32 %v8078_v3, %v8078_v3 }
 0xe49   :  { %v3638_v60 = vadd.f32 %v3637_v51, %v3636_v26 }
 0xe4b   :  { %3639 = vadd.xlane.f32.xlu1 %v3638_v60 }
 0xed4   :  { %v3640_v55 = vpop.xlane.xlu1 %3639 }
 0xed5   :  { %v3641_v40 = vmul.f32 0.00390625, %v3640_v55 }
 0xed7   :  { %v3642_v8 = vadd.f32 1e-05, %v3641_v40 }
 0xed9   :  { %7346 = vrsqrt.f32 %v3642_v8  ;;  %v7180_v8 = vld [vmem:[#allocation16 + $0x954] ss:$8 sps:$4 sm:$0xff]  }
 0xee6   :  { %v7347_v46 = vpop.eup %7346 }
 0xee7   :  { %v3645_v54 = vmul.f32 %v7347_v46, %v8078_v3  ;;  %v3644_v49 = vmul.f32 %v7347_v46, %v8076_v48  ;;  %v4051_v3 = vld [vmem:[#allocation19 + $0x14] sm:$0xf]  ;;  %v7178_v46 = vld [vmem:[#allocation16 + $0x950] ss:$8 sps:$4 sm:$0xff]  }
 0xee8   :  { %v4076_v48 = vrot.slane %v4051_v3, %v7864_v29  ;;  %v4080_v58 = vrot.slane %v4051_v3, %v7971_v16  ;;  %v4056_v19 = vrot.slane %v4051_v3, %v7861_v24  ;;  %v4060_v9 = vrot.slane %v4051_v3, %v7976_v39  ;;  %v7204_v3 = vld [vmem:[#allocation16 + $0x9d4] ss:$8 sps:$4 sm:$0xff]  }
 0xee9   :  { %v6099_v53 = vmul.f32 -1.442695, %v3645_v54  ;;  %v6098_v59 = vmul.f32 -1.442695, %v3644_v49 }
 0xeea   :  { %v4086_v57 = vrot.slane %v4076_v48, %v7864_v29  ;;  %v4090_v44 = vrot.slane %v4080_v58, %v7864_v29  ;;  %v4066_v14 = vrot.slane %v4056_v19, %v7861_v24  ;;  %v4070_v13 = vrot.slane %v4060_v9, %v7861_v24  ;;  %v7202_v48 = vld [vmem:[#allocation16 + $0x9d0] ss:$8 sps:$4 sm:$0xff]   ;;  %v7207_v58 = vld [vmem:[#allocation16 + $0x9c4] ss:$8 sps:$4 sm:$0xff]   ;;  %v7205_v19 = vld [vmem:[#allocation16 + $0x9c0] ss:$8 sps:$4 sm:$0xff]  }
 0xeeb   :  { %7348 = vpow2.f32 %v6099_v53  ;;  %v7186_v53 = vld [vmem:[#allocation16 + $0x934] ss:$8 sps:$4 sm:$0xff]   ;;  %v7213_v9 = vld [vmem:[#allocation16 + $0x9a4] ss:$8 sps:$4 sm:$0xff]  }
 0xeec   :  { %7350 = vpow2.f32 %v6098_v59  ;;  %v4206_v18 = vadd.f32 %v7950_v28, %v4086_v57  ;;  %v4208_v20 = vadd.f32 %v7952_v30, %v4090_v44  ;;  %v7172_v28 = vld [vmem:[#allocation16 + $0x970] ss:$8 sps:$4 sm:$0xff]   ;;  %v7177_v30 = vld [vmem:[#allocation16 + $0x964] ss:$8 sps:$4 sm:$0xff]   ;;  %v7210_v57 = vld [vmem:[#allocation16 + $0x9b4] ss:$8 sps:$4 sm:$0xff]  }
 0xeed   :  { %v7184_v59 = vld [vmem:[#allocation16 + $0x930] ss:$8 sps:$4 sm:$0xff]  }
 0xeee   :  { %v4212_v27 = vadd.f32 1.0, %v4206_v18  ;;  %v4213_v38 = vadd.f32 1.0, %v4208_v20  ;;  %v7208_v44 = vld [vmem:[#allocation16 + $0x9b0] ss:$8 sps:$4 sm:$0xff]   ;;  %v7219_v20 = vld [vmem:[#allocation16 + $0x984] ss:$8 sps:$4 sm:$0xff]  }
 0xeef   :  { %v7214_v18 = vld [vmem:[#allocation16 + $0x990] ss:$8 sps:$4 sm:$0xff]  }
 0xef8   :  { %v7349_v33 = vpop.eup %7348 }
 0xef9   :  { %v7351_v17 = vpop.eup %7350  ;;  %v3653_v5 = vadd.f32 1.0, %v7349_v33  ;;  %v7189_v33 = vld [vmem:[#allocation16 + $0x924] ss:$8 sps:$4 sm:$0xff]  }
 0xefa   :  { %v3652_v45 = vadd.f32 1.0, %v7351_v17  ;;  %v7187_v17 = vld [vmem:[#allocation16 + $0x920] ss:$8 sps:$4 sm:$0xff]  }
 0xefb   :  { %7352 = vrcp.f32 %v3653_v5  ;;  %v7192_v5 = vld [vmem:[#allocation16 + $0x914] ss:$8 sps:$4 sm:$0xff]  }
 0xefc   :  { %7354 = vrcp.f32 %v3652_v45  ;;  %v7190_v45 = vld [vmem:[#allocation16 + $0x910] ss:$8 sps:$4 sm:$0xff]  }
 0xf08   :  { %v7353_v11 = vpop.eup %7352 }
 0xf09   :  { %v7355_v22 = vpop.eup %7354  ;;  %v3659_v26 = vmul.f32 %v7353_v11, %v3645_v54  ;;  %v7181_v54 = vld [vmem:[#allocation16 + $0x940] ss:$8 sps:$4 sm:$0xff]   ;;  %v7195_v11 = vld [vmem:[#allocation16 + $0x904] ss:$8 sps:$4 sm:$0xff]  }
 0xf0a   :  { %v3658_v51 = vmul.f32 %v7355_v22, %v3644_v49  ;;  %v7183_v49 = vld [vmem:[#allocation16 + $0x944] ss:$8 sps:$4 sm:$0xff]   ;;  %v7193_v22 = vld [vmem:[#allocation16 + $0x900] ss:$8 sps:$4 sm:$0xff]  }
 0xf0b   :  { %v3661_v60 = vpack.c.bf16 %v3659_v26, %v3659_v26  ;;  %v7198_v26 = vld [vmem:[#allocation16 + $0x9f4] ss:$8 sps:$4 sm:$0xff]  }
 0xf0c   :  { %v3660_v56 = vpack.c.bf16 %v3658_v51, %v3658_v51  ;;  %v7196_v51 = vld [vmem:[#allocation16 + $0x9f0] ss:$8 sps:$4 sm:$0xff]  }
 0xf0d   :  { %4041 = vmatprep.mubr.bf16.mxu1 %v3661_v60  ;;  %v7201_v60 = vld [vmem:[#allocation16 + $0x9e4] ss:$8 sps:$4 sm:$0xff]  }
 0xf0e   :  { %4042 = vmatmul.mubr.bf16.vlgmr.msra.gmra.mxu1 %v3660_v56  ;;  %v7199_v56 = vld [vmem:[#allocation16 + $0x9e0] ss:$8 sps:$4 sm:$0xff]  }
 0xf0f   :  { %4596 = vmatpush1.bf16.msra.mxu1 %v7172_v28 }
 0xf10   :  { %4597 = vmatprep.subr.bf16.mxu1 %v7177_v30 }
 0xfce   :  { %v4043_v15 = vpop.f32.mrf.mxu1 }
 0xfcf   :  { %v4044_v47 = vadd.f32 %v4043_v15, %v7944_v10  ;;  %v7175_v10 = vld [vmem:[#allocation16 + $0x960] ss:$8 sps:$4 sm:$0xff]   ;;  %v7216_v15 = vld [vmem:[#allocation16 + $0x994] ss:$8 sps:$4 sm:$0xff]  }
 0xfd0   :  { %v4045_v1 = vpop.f32.mrf.mxu1  ;;  %4598 = vmatpush1.bf16.msra.mxu1 %v7175_v10 }
 0xfd1   :  { %v4071_v4 = vadd.f32 %v4066_v14, %v4044_v47  ;;  %v4046_v21 = vadd.f32 %v4045_v1, %v7946_v12  ;;  %4599 = vmatprep.subr.bf16.mxu1 %v7180_v8  ;;  %v7211_v14 = vld [vmem:[#allocation16 + $0x9a0] ss:$8 sps:$4 sm:$0xff]  }
 0xfd2   :  { %v4047_v25 = vpop.f32.mrf.mxu1  ;;  %v7217_v47 = vld [vmem:[#allocation16 + $0x980] ss:$8 sps:$4 sm:$0xff]  }
 0xfd3   :  { %v4072_v62 = vadd.f32 %v4070_v13, %v4046_v21  ;;  %v4214_v32 = vmul.f32 %v4212_v27, %v4071_v4 }
 0xfd4   :  { %v4048_v31 = vpop.f32.mrf.mxu1  ;;  %4600 = vmatpush1.bf16.msra.mxu1 %v7178_v46 }
 0xfd5   :  { %v4215_v34 = vmul.f32 %v4213_v38, %v4072_v62  ;;  %4601 = vmatprep.subr.bf16.mxu1 %v7183_v49 }
 0xfd7   :  { %v4216_v37 = vadd.f32 %v4215_v34, %v4214_v32 }
 0xfd8   :  { %4602 = vmatpush1.bf16.msra.mxu1 %v7181_v54 }
 0xfd9   :  { %4217 = vadd.xlane.f32.xlu0 %v4216_v37  ;;  %4603 = vmatprep.subr.bf16.mxu1 %v7186_v53 }
 0xfdc   :  { %4604 = vmatpush1.bf16.msra.mxu1 %v7184_v59 }
 0xfdd   :  { %4605 = vmatprep.subr.bf16.mxu1 %v7189_v33 }
 0xfe0   :  { %4606 = vmatpush1.bf16.msra.mxu1 %v7187_v17 }
 0xfe1   :  { %4607 = vmatprep.subr.bf16.mxu1 %v7192_v5 }
 0xfe4   :  { %4608 = vmatpush1.bf16.msra.mxu1 %v7190_v45 }
 0xfe5   :  { %4609 = vmatprep.subr.bf16.mxu1 %v7195_v11 }
 0xfe8   :  { %4610 = vmatpush1.bf16.msra.mxu1 %v7193_v22 }
 0xfe9   :  { %4611 = vmatprep.subr.bf16.mxu1 %v7198_v26 }
 0xfec   :  { %4612 = vmatpush2.bf16.msra.mxu1 %v7196_v51 }
 0xfed   :  { %4613 = vmatprep.subr.bf16.mxu1 %v7201_v60 }
 0xff0   :  { %4614 = vmatpush2.bf16.msra.mxu1 %v7199_v56 }
 0xff1   :  { %4615 = vmatprep.subr.bf16.mxu1 %v7204_v3 }
 0xff4   :  { %4616 = vmatpush2.bf16.msra.mxu1 %v7202_v48 }
 0xff5   :  { %4617 = vmatprep.subr.bf16.mxu1 %v7207_v58 }
 0xff8   :  { %4618 = vmatpush2.bf16.msra.mxu1 %v7205_v19  ;;  %v7222_v19 = vld [vmem:[#allocation16 + $0xaf4] ss:$8 sps:$4 sm:$0xff]  }
 0xff9   :  { %4619 = vmatprep.subr.bf16.mxu1 %v7210_v57 }
 0xffc   :  { %4620 = vmatpush2.bf16.msra.mxu1 %v7208_v44 }
 0xffd   :  { %4621 = vmatprep.subr.bf16.mxu1 %v7213_v9 }
0x1000   :  { %4622 = vmatpush2.bf16.msra.mxu1 %v7211_v14 }
0x1001   :  { %4623 = vmatprep.subr.bf16.mxu1 %v7216_v15 }
0x1004   :  { %4624 = vmatpush2.bf16.msra.mxu1 %v7214_v18 }
0x1005   :  { %4625 = vmatprep.subr.bf16.mxu1 %v7219_v20  ;;  %v7228_v20 = vld [vmem:[#allocation16 + $0xad4] ss:$8 sps:$4 sm:$0xff]  }
0x1008   :  { %4626 = vmatpush2.bf16.msra.mxu1 %v7217_v47  ;;  %v7226_v47 = vld [vmem:[#allocation16 + $0xad0] ss:$8 sps:$4 sm:$0xff]  }
0x1009   :  { %5181 = vmatprep.subr.bf16.mxu1 %v7222_v19 }
0x1062   :  { %v4218_v42 = vpop.xlane.xlu0 %4217 }
0x1063   :  { %v4219_v23 = vmul.f32 0.00390625, %v4218_v42 }
0x1065   :  { %v8098_v12 = vsub.f32 %v4214_v32, %v4219_v23  ;;  %v8100_v43 = vsub.f32 %v4215_v34, %v4219_v23 }
0x1067   :  { %v4222_v36 = vmul.f32 %v8098_v12, %v8098_v12  ;;  %v4223_v55 = vmul.f32 %v8100_v43, %v8100_v43 }
0x1069   :  { %v4224_v40 = vadd.f32 %v4223_v55, %v4222_v36 }
0x106b   :  { %4225 = vadd.xlane.f32.xlu1 %v4224_v40 }
0x10f4   :  { %v4226_v13 = vpop.xlane.xlu1 %4225 }
0x10f5   :  { %v4227_v1 = vmul.f32 0.00390625, %v4226_v13  ;;  %v7229_v13 = vld [vmem:[#allocation16 + $0xac0] ss:$8 sps:$4 sm:$0xff]  }
0x10f7   :  { %v4228_v4 = vadd.f32 1e-05, %v4227_v1  ;;  %v7231_v1 = vld [vmem:[#allocation16 + $0xac4] ss:$8 sps:$4 sm:$0xff]  }
0x10f9   :  { %7356 = vrsqrt.f32 %v4228_v4  ;;  %v7234_v4 = vld [vmem:[#allocation16 + $0xab4] ss:$8 sps:$4 sm:$0xff]  }
0x1106   :  { %v7357_v21 = vpop.eup %7356 }
0x1107   :  { %v4231_v25 = vmul.f32 %v7357_v21, %v8100_v43  ;;  %v4230_v27 = vmul.f32 %v7357_v21, %v8098_v12  ;;  %v4637_v43 = vld [vmem:[#allocation19 + $0x18] sm:$0xf] }
0x1108   :  { %v4662_v12 = vrot.slane %v4637_v43, %v7864_v29  ;;  %v4666_v36 = vrot.slane %v4637_v43, %v7971_v16  ;;  %v4642_v55 = vrot.slane %v4637_v43, %v7861_v24  ;;  %v4646_v46 = vrot.slane %v4637_v43, %v7976_v39  ;;  %v7232_v21 = vld [vmem:[#allocation16 + $0xab0] ss:$8 sps:$4 sm:$0xff]   ;;  %v7258_v43 = vld [vmem:[#allocation16 + $0xb34] ss:$8 sps:$4 sm:$0xff]  }
0x1109   :  { %v6165_v38 = vmul.f32 -1.442695, %v4231_v25  ;;  %v6164_v62 = vmul.f32 -1.442695, %v4230_v27 }
0x110a   :  { %v4672_v40 = vrot.slane %v4662_v12, %v7864_v29  ;;  %v4676_v8 = vrot.slane %v4666_v36, %v7864_v29  ;;  %v4652_v54 = vrot.slane %v4642_v55, %v7861_v24  ;;  %v4656_v17 = vrot.slane %v4646_v46, %v7861_v24  ;;  %v7256_v12 = vld [vmem:[#allocation16 + $0xb30] ss:$8 sps:$4 sm:$0xff]   ;;  %v7261_v36 = vld [vmem:[#allocation16 + $0xb24] ss:$8 sps:$4 sm:$0xff]   ;;  %v7259_v55 = vld [vmem:[#allocation16 + $0xb20] ss:$8 sps:$4 sm:$0xff]  }
0x110b   :  { %7358 = vpow2.f32 %v6165_v38  ;;  %v7240_v38 = vld [vmem:[#allocation16 + $0xa94] ss:$8 sps:$4 sm:$0xff]   ;;  %v7267_v46 = vld [vmem:[#allocation16 + $0xb04] ss:$8 sps:$4 sm:$0xff]  }
0x110c   :  { %7360 = vpow2.f32 %v6164_v62  ;;  %v4792_v53 = vadd.f32 %v7958_v35, %v4672_v40  ;;  %v4794_v59 = vadd.f32 %v7960_v2, %v4676_v8  ;;  %v7220_v35 = vld [vmem:[#allocation16 + $0xaf0] ss:$8 sps:$4 sm:$0xff]   ;;  %v7225_v2 = vld [vmem:[#allocation16 + $0xae4] ss:$8 sps:$4 sm:$0xff]   ;;  %v7264_v40 = vld [vmem:[#allocation16 + $0xb14] ss:$8 sps:$4 sm:$0xff]  }
0x110d   :  { %v7238_v62 = vld [vmem:[#allocation16 + $0xa90] ss:$8 sps:$4 sm:$0xff]  }
0x110e   :  { %v4798_v26 = vadd.f32 1.0, %v4792_v53  ;;  %v4799_v51 = vadd.f32 1.0, %v4794_v59  ;;  %v7262_v8 = vld [vmem:[#allocation16 + $0xb10] ss:$8 sps:$4 sm:$0xff]  }
0x1118   :  { %v7359_v31 = vpop.eup %7358 }
0x1119   :  { %v7361_v32 = vpop.eup %7360  ;;  %v4239_v34 = vadd.f32 1.0, %v7359_v31  ;;  %v7243_v31 = vld [vmem:[#allocation16 + $0xa84] ss:$8 sps:$4 sm:$0xff]  }
0x111a   :  { %v4238_v37 = vadd.f32 1.0, %v7361_v32  ;;  %v7241_v32 = vld [vmem:[#allocation16 + $0xa80] ss:$8 sps:$4 sm:$0xff]  }
0x111b   :  { %7362 = vrcp.f32 %v4239_v34  ;;  %v7246_v34 = vld [vmem:[#allocation16 + $0xb74] ss:$8 sps:$4 sm:$0xff]  }
0x111c   :  { %7364 = vrcp.f32 %v4238_v37  ;;  %v7244_v37 = vld [vmem:[#allocation16 + $0xb70] ss:$8 sps:$4 sm:$0xff]  }
0x1128   :  { %v7363_v28 = vpop.eup %7362 }
0x1129   :  { %v7365_v41 = vpop.eup %7364  ;;  %v4245_v30 = vmul.f32 %v7363_v28, %v4231_v25  ;;  %v7237_v25 = vld [vmem:[#allocation16 + $0xaa4] ss:$8 sps:$4 sm:$0xff]  }
0x112a   :  { %v4244_v10 = vmul.f32 %v7365_v41, %v4230_v27  ;;  %v7235_v27 = vld [vmem:[#allocation16 + $0xaa0] ss:$8 sps:$4 sm:$0xff]   ;;  %v7249_v28 = vld [vmem:[#allocation16 + $0xb64] ss:$8 sps:$4 sm:$0xff]  }
0x112b   :  { %v4247_v42 = vpack.c.bf16 %v4245_v30, %v4245_v30  ;;  %v7247_v41 = vld [vmem:[#allocation16 + $0xb60] ss:$8 sps:$4 sm:$0xff]   ;;  %v7252_v30 = vld [vmem:[#allocation16 + $0xb54] ss:$8 sps:$4 sm:$0xff]  }
0x112c   :  { %v4246_v23 = vpack.c.bf16 %v4244_v10, %v4244_v10  ;;  %v7250_v10 = vld [vmem:[#allocation16 + $0xb50] ss:$8 sps:$4 sm:$0xff]  }
0x112d   :  { %4627 = vmatprep.mubr.bf16.mxu1 %v4247_v42  ;;  %v7255_v42 = vld [vmem:[#allocation16 + $0xb44] ss:$8 sps:$4 sm:$0xff]  }
0x112e   :  { %4628 = vmatmul.mubr.bf16.vlgmr.msra.gmra.mxu1 %v4246_v23  ;;  %v7253_v23 = vld [vmem:[#allocation16 + $0xb40] ss:$8 sps:$4 sm:$0xff]  }
0x112f   :  { %5182 = vmatpush1.bf16.msra.mxu1 %v7220_v35 }
0x1130   :  { %5183 = vmatprep.subr.bf16.mxu1 %v7225_v2  ;;  %v5223_v2 = vld [vmem:[#allocation19 + $0x1c] sm:$0xf] }
0x11ee   :  { %v4629_v49 = vpop.f32.mrf.mxu1 }
0x11ef   :  { %v4630_v33 = vadd.f32 %v4629_v49, %v7954_v50  ;;  %v7223_v50 = vld [vmem:[#allocation16 + $0xae0] ss:$8 sps:$4 sm:$0xff]  }
0x11f0   :  { %v4631_v5 = vpop.f32.mrf.mxu1  ;;  %5184 = vmatpush1.bf16.msra.mxu1 %v7223_v50  ;;  %v5248_v50 = vrot.slane %v5223_v2, %v7864_v29 }
0x11f1   :  { %v4657_v45 = vadd.f32 %v4652_v54, %v4630_v33  ;;  %v4632_v11 = vadd.f32 %v4631_v5, %v7956_v52  ;;  %5185 = vmatprep.subr.bf16.mxu1 %v7228_v20  ;;  %v7265_v54 = vld [vmem:[#allocation16 + $0xb00] ss:$8 sps:$4 sm:$0xff]  }
0x11f2   :  { %v4633_v22 = vpop.f32.mrf.mxu1 }
0x11f3   :  { %v4658_v60 = vadd.f32 %v4656_v17, %v4632_v11  ;;  %v4800_v3 = vmul.f32 %v4798_v26, %v4657_v45 }
0x11f4   :  { %v4634_v56 = vpop.f32.mrf.mxu1  ;;  %5186 = vmatpush1.bf16.msra.mxu1 %v7226_v47 }
0x11f5   :  { %v4801_v48 = vmul.f32 %v4799_v51, %v4658_v60  ;;  %5187 = vmatprep.subr.bf16.mxu1 %v7231_v1 }
0x11f7   :  { %v4802_v58 = vadd.f32 %v4801_v48, %v4800_v3 }
0x11f8   :  { %5188 = vmatpush1.bf16.msra.mxu1 %v7229_v13 }
0x11f9   :  { %4803 = vadd.xlane.f32.xlu0 %v4802_v58  ;;  %5189 = vmatprep.subr.bf16.mxu1 %v7234_v4 }
0x11fc   :  { %5190 = vmatpush1.bf16.msra.mxu1 %v7232_v21 }
0x11fd   :  { %5191 = vmatprep.subr.bf16.mxu1 %v7237_v25 }
0x1200   :  { %5192 = vmatpush1.bf16.msra.mxu1 %v7235_v27 }
0x1201   :  { %5193 = vmatprep.subr.bf16.mxu1 %v7240_v38 }
0x1204   :  { %5194 = vmatpush1.bf16.msra.mxu1 %v7238_v62 }
0x1205   :  { %5195 = vmatprep.subr.bf16.mxu1 %v7243_v31 }
0x1208   :  { %5196 = vmatpush1.bf16.msra.mxu1 %v7241_v32 }
0x1209   :  { %5197 = vmatprep.subr.bf16.mxu1 %v7246_v34 }
0x120c   :  { %5198 = vmatpush2.bf16.msra.mxu1 %v7244_v37 }
0x120d   :  { %5199 = vmatprep.subr.bf16.mxu1 %v7249_v28  ;;  %v7268_v28 = vld [vmem:[#allocation20 + $0xb8] sm:$0xff]  }
0x120e   :  { %6401 = vmatpush3.bf16.msra.mxu0 %v7268_v28 }
0x120f   :  { %6402 = vmatprep.subr.bf16.mxu0 %v7680_v0 }
0x1210   :  { %5200 = vmatpush2.bf16.msra.mxu1 %v7247_v41  ;;  %v7269_v41 = vld [vmem:[#allocation20 + $0x78] sm:$0xff]  }
0x1211   :  { %5201 = vmatprep.subr.bf16.mxu1 %v7252_v30  ;;  %v7270_v30 = vld [vmem:[#allocation20 + $0x38] sm:$0xff]  }
0x1214   :  { %5202 = vmatpush2.bf16.msra.mxu1 %v7250_v10  ;;  %v7272_v10 = vld [vmem:[#allocation20 + $0x70] sm:$0xff]  }
0x1215   :  { %5203 = vmatprep.subr.bf16.mxu1 %v7255_v42  ;;  %v7271_v42 = vld [vmem:[#allocation20 + $0xb0] sm:$0xff]  }
0x1216   :  { %6403 = vmatpush3.bf16.msra.mxu0 %v7271_v42 }
0x1217   :  { %6404 = vmatprep.subr.bf16.mxu0 %v7680_v0 }
0x1218   :  { %5204 = vmatpush2.bf16.msra.mxu1 %v7253_v23  ;;  %v7273_v23 = vld [vmem:[#allocation20 + $0x30] sm:$0xff]  }
0x1219   :  { %5205 = vmatprep.subr.bf16.mxu1 %v7258_v43  ;;  %v7275_v43 = vld [vmem:[#allocation20 + $0x68] sm:$0xff]  }
0x121c   :  { %5206 = vmatpush2.bf16.msra.mxu1 %v7256_v12  ;;  %v7274_v12 = vld [vmem:[#allocation20 + $0xa8] sm:$0xff]  }
0x121d   :  { %5207 = vmatprep.subr.bf16.mxu1 %v7261_v36  ;;  %v7276_v36 = vld [vmem:[#allocation20 + $0x28] sm:$0xff]   ;;  %6405 = vmatpush3.bf16.msra.mxu0 %v7274_v12 }
0x121e   :  { %6406 = vmatprep.subr.bf16.mxu0 %v7680_v0 }
0x1220   :  { %5208 = vmatpush2.bf16.msra.mxu1 %v7259_v55  ;;  %v7278_v55 = vld [vmem:[#allocation20 + $0x60] sm:$0xff]  }
0x1221   :  { %5209 = vmatprep.subr.bf16.mxu1 %v7264_v40  ;;  %v7277_v40 = vld [vmem:[#allocation20 + $0xa0] sm:$0xff]  }
0x1222   :  { %6407 = vmatpush3.bf16.msra.mxu0 %v7277_v40 }
0x1223   :  { %6408 = vmatprep.subr.bf16.mxu0 %v7680_v0 }
0x1224   :  { %5210 = vmatpush2.bf16.msra.mxu1 %v7262_v8  ;;  %v7279_v8 = vld [vmem:[#allocation20 + $0x20] sm:$0xff]  }
0x1225   :  { %5211 = vmatprep.subr.bf16.mxu1 %v7267_v46  ;;  %v7281_v46 = vld [vmem:[#allocation20 + $0x58] sm:$0xff]  }
0x1228   :  { %5212 = vmatpush2.bf16.msra.mxu1 %v7265_v54  ;;  %v7280_v54 = vld [vmem:[#allocation20 + $0x98] sm:$0xff]  }
0x1229   :  { %6346 = vmatprep.subr.bf16.mxu1 %v7269_v41  ;;  %6409 = vmatpush3.bf16.msra.mxu0 %v7280_v54 }
0x122a   :  { %6410 = vmatprep.subr.bf16.mxu0 %v7680_v0 }
0x1282   :  { %v4804_v57 = vpop.xlane.xlu0 %4803 }
0x1283   :  { %v4805_v44 = vmul.f32 0.00390625, %v4804_v57  ;;  %v5252_v57 = vrot.slane %v5223_v2, %v7971_v16 }
0x1285   :  { %v8120_v52 = vsub.f32 %v4800_v3, %v4805_v44  ;;  %v8122_v9 = vsub.f32 %v4801_v48, %v4805_v44  ;;  %v5228_v44 = vrot.slane %v5223_v2, %v7861_v24 }
0x1287   :  { %v4808_v14 = vmul.f32 %v8120_v52, %v8120_v52  ;;  %v4809_v15 = vmul.f32 %v8122_v9, %v8122_v9 }
0x1289   :  { %v4810_v18 = vadd.f32 %v4809_v15, %v4808_v14  ;;  %v5232_v14 = vrot.slane %v5223_v2, %v7976_v39  ;;  %v5238_v15 = vrot.slane %v5228_v44, %v7861_v24 }
0x128b   :  { %4811 = vadd.xlane.f32.xlu1 %v4810_v18  ;;  %v5242_v1 = vrot.slane %v5232_v14, %v7861_v24 }
0x1314   :  { %v4812_v49 = vpop.xlane.xlu1 %4811 }
0x1315   :  { %v4813_v53 = vmul.f32 0.00390625, %v4812_v49  ;;  %v7282_v49 = vld [vmem:[#allocation20 + $0x18] sm:$0xff]  }
0x1317   :  { %v4814_v59 = vadd.f32 1e-05, %v4813_v53  ;;  %v7284_v53 = vld [vmem:[#allocation20 + $0x50] sm:$0xff]  }
0x1319   :  { %7366 = vrsqrt.f32 %v4814_v59  ;;  %v7283_v59 = vld [vmem:[#allocation20 + $0x90] sm:$0xff]  }
0x131a   :  { %6411 = vmatpush3.bf16.msra.mxu0 %v7283_v59 }
0x131b   :  { %6412 = vmatprep.subr.bf16.mxu0 %v7680_v0 }
0x1326   :  { %v7367_v33 = vpop.eup %7366 }
0x1327   :  { %v4817_v17 = vmul.f32 %v7367_v33, %v8122_v9  ;;  %v4816_v5 = vmul.f32 %v7367_v33, %v8120_v52  ;;  %v5258_v52 = vrot.slane %v5248_v50, %v7864_v29  ;;  %v5262_v9 = vrot.slane %v5252_v57, %v7864_v29  ;;  %v7285_v33 = vld [vmem:[#allocation20 + $0x10] sm:$0xff]  }
0x1329   :  { %v6231_v45 = vmul.f32 -1.442695, %v4817_v17  ;;  %v6230_v11 = vmul.f32 -1.442695, %v4816_v5  ;;  %v5378_v20 = vadd.f32 %v7966_v6, %v5258_v52  ;;  %v5380_v47 = vadd.f32 %v7968_v7, %v5262_v9 }
0x132b   :  { %7368 = vpow2.f32 %v6231_v45  ;;  %v5384_v27 = vadd.f32 1.0, %v5378_v20  ;;  %v5385_v29 = vadd.f32 1.0, %v5380_v47  ;;  %v7288_v45 = vld [vmem:[#allocation20 + $0x8] sm:$0xff]  }
0x132c   :  { %7370 = vpow2.f32 %v6230_v11  ;;  %v7290_v11 = vld [vmem:[#allocation20 + $0x40] sm:$0xff]  }
0x1338   :  { %v7369_v22 = vpop.eup %7368 }
0x1339   :  { %v7371_v26 = vpop.eup %7370  ;;  %v4825_v51 = vadd.f32 1.0, %v7369_v22  ;;  %v7289_v22 = vld [vmem:[#allocation20 + $0x80] sm:$0xff]  }
0x133a   :  { %v4824_v60 = vadd.f32 1.0, %v7371_v26  ;;  %v7291_v26 = vld [vmem:[#allocation20] sm:$0xff]  }
0x133b   :  { %7372 = vrcp.f32 %v4825_v51  ;;  %v7387_v51 = vld [vmem:[#allocation5] sm:$0xf] }
0x133c   :  { %7374 = vrcp.f32 %v4824_v60 }
0x1348   :  { %v7373_v56 = vpop.eup %7372 }
0x1349   :  { %v7375_v3 = vpop.eup %7374  ;;  %v4831_v48 = vmul.f32 %v7373_v56, %v4817_v17  ;;  %v7287_v17 = vld [vmem:[#allocation20 + $0x48] sm:$0xff]  }
0x134a   :  { %v4830_v58 = vmul.f32 %v7375_v3, %v4816_v5  ;;  %v7286_v5 = vld [vmem:[#allocation20 + $0x88] sm:$0xff]  }
0x134b   :  { %v4833_v35 = vpack.c.bf16 %v4831_v48, %v4831_v48  ;;  %6413 = vmatpush3.bf16.msra.mxu0 %v7286_v5 }
0x134c   :  { %v4832_v19 = vpack.c.bf16 %v4830_v58, %v4830_v58  ;;  %6414 = vmatprep.subr.bf16.mxu0 %v7680_v0 }
0x134d   :  { %5213 = vmatprep.mubr.bf16.mxu1 %v4833_v35 }
0x134e   :  { %5214 = vmatmul.mubr.bf16.vlgmr.msra.gmra.mxu1 %v4832_v19 }
0x134f   :  { %6347 = vmatpush3.bf16.msra.mxu1 %v7270_v30  ;;  %6415 = vmatpush3.bf16.msra.mxu0 %v7289_v22 }
0x1350   :  { %6348 = vmatprep.subr.bf16.mxu1 %v7272_v10 }
0x1352   :  { %6417 = vmatmul.mubr.bf16.vlgmr.msra.gmra.mxu0 %v7387_v51 }
0x1353   :  { %6349 = vmatpush3.bf16.msra.mxu1 %v7273_v23 }
0x1354   :  { %6350 = vmatprep.subr.bf16.mxu1 %v7275_v43 }
0x1357   :  { %6351 = vmatpush3.bf16.msra.mxu1 %v7276_v36 }
0x1358   :  { %6352 = vmatprep.subr.bf16.mxu1 %v7278_v55 }
0x135b   :  { %6353 = vmatpush3.bf16.msra.mxu1 %v7279_v8 }
0x135c   :  { %6354 = vmatprep.subr.bf16.mxu1 %v7281_v46 }
0x135f   :  { %6355 = vmatpush3.bf16.msra.mxu1 %v7282_v49 }
0x1360   :  { %6356 = vmatprep.subr.bf16.mxu1 %v7284_v53 }
0x1363   :  { %6357 = vmatpush3.bf16.msra.mxu1 %v7285_v33 }
0x1364   :  { %6358 = vmatprep.subr.bf16.mxu1 %v7287_v17 }
0x1367   :  { %6359 = vmatpush3.bf16.msra.mxu1 %v7288_v45 }
0x1368   :  { %6360 = vmatprep.subr.bf16.mxu1 %v7290_v11 }
0x136b   :  { %6361 = vmatpush3.bf16.msra.mxu1 %v7291_v26 }
0x140e   :  { %v5215_v18 = vpop.f32.mrf.mxu1 }
0x140f   :  { %v5216_v13 = vadd.f32 %v5215_v18, %v7962_v61 }
0x1410   :  { %v5217_v16 = vpop.f32.mrf.mxu1 }
0x1411   :  { %v5243_v4 = vadd.f32 %v5238_v15, %v5216_v13  ;;  %v5218_v21 = vadd.f32 %v5217_v16, %v7964_v63 }
0x1412   :  { %v5219_v25 = vpop.f32.mrf.mxu1  ;;  %v5550_v47 = vpop.f32.mrf.mxu0 }
0x1413   :  { %v5244_v38 = vadd.f32 %v5242_v1, %v5218_v21  ;;  %v5386_v62 = vmul.f32 %v5384_v27, %v5243_v4 }
0x1414   :  { %v5220_v39 = vpop.f32.mrf.mxu1  ;;  %v6418_v13 = vpop.f32.mrf.mxu0 }
0x1415   :  { %v5387_v31 = vmul.f32 %v5385_v29, %v5244_v38  ;;  %v6322_v29 = vld [vmem:[#allocation10 + $0x2] ss:$0 sm:$0xff] }
0x1416   :  { %v5553_v1 = vpop.f32.mrf.mxu0 }
0x1417   :  { %v5388_v32 = vadd.f32 %v5387_v31, %v5386_v62 }
0x1418   :  { %v6419_v16 = vpop.f32.mrf.mxu0 }
0x1419   :  { %5389 = vadd.xlane.f32.xlu0 %v5388_v32 }
0x14a2   :  { %v5390_v6 = vpop.xlane.xlu0 %5389 }
0x14a3   :  { %v5391_v34 = vmul.f32 0.00390625, %v5390_v6 }
0x14a5   :  { %v8142_v7 = vsub.f32 %v5386_v62, %v5391_v34  ;;  %v8144_v61 = vsub.f32 %v5387_v31, %v5391_v34 }
0x14a7   :  { %v5394_v24 = vmul.f32 %v8142_v7, %v8142_v7  ;;  %v5395_v63 = vmul.f32 %v8144_v61, %v8144_v61 }
0x14a9   :  { %v5396_v37 = vadd.f32 %v5395_v63, %v5394_v24 }
0x14ab   :  { %5397 = vadd.xlane.f32.xlu1 %v5396_v37 }
0x1534   :  { %v5398_v60 = vpop.xlane.xlu1 %5397 }
0x1535   :  { %v5399_v56 = vmul.f32 0.00390625, %v5398_v60 }
0x1537   :  { %v5400_v3 = vadd.f32 1e-05, %v5399_v56 }
0x1539   :  { %7376 = vrsqrt.f32 %v5400_v3 }
0x1546   :  { %v7377_v48 = vpop.eup %7376 }
0x1547   :  { %v5403_v58 = vmul.f32 %v7377_v48, %v8144_v61  ;;  %v5402_v35 = vmul.f32 %v7377_v48, %v8142_v7 }
0x1549   :  { %v6297_v19 = vmul.f32 -1.442695, %v5403_v58  ;;  %v6296_v2 = vmul.f32 -1.442695, %v5402_v35 }
0x154b   :  { %7378 = vpow2.f32 %v6297_v19 }
0x154c   :  { %7380 = vpow2.f32 %v6296_v2 }
0x1558   :  { %v7379_v0 = vpop.eup %7378 }
0x1559   :  { %v7381_v50 = vpop.eup %7380  ;;  %v5411_v57 = vadd.f32 1.0, %v7379_v0 }
0x155a   :  { %v5410_v44 = vadd.f32 1.0, %v7381_v50 }
0x155b   :  { %7382 = vrcp.f32 %v5411_v57 }
0x155c   :  { %7384 = vrcp.f32 %v5410_v44 }
0x1568   :  { %v7383_v52 = vpop.eup %7382 }
0x1569   :  { %v7385_v9 = vpop.eup %7384  ;;  %v5417_v14 = vmul.f32 %v7383_v52, %v5403_v58 }
0x156a   :  { %v5416_v15 = vmul.f32 %v7385_v9, %v5402_v35 }
0x156b   :  { %v5419_v18 = vpack.c.bf16 %v5417_v14, %v5417_v14 }
0x156c   :  { %v5418_v20 = vpack.c.bf16 %v5416_v15, %v5416_v15 }
0x156d   :  { %5684 = vmatprep.mubr.bf16.mxu1 %v5419_v18 }
0x156e   :  { %5685 = vmatmul.mubr.bf16.vlgmr.msra.gmra.mxu1 %v5418_v20 }
0x162e   :  { %v6362_v4 = vpop.f32.mrf.mxu1 }
0x1630   :  { %v6363_v21 = vpop.f32.mrf.mxu1 }
0x1631   :  { %v6364_v25 = vadd.f32 %v6363_v21, %v6362_v4 }
0x1632   :  { %v6365_v27 = vpop.f32.mrf.mxu1 }
0x1633   :  { %v5687_v38 = vadd.f32 %v6364_v25, %v5550_v47 }
0x1634   :  { %v6366_v39 = vpop.f32.mrf.mxu1 }
0x1635   :  { %v5697_v62 = vadd.f32 %v6322_v29, %v5687_v38 }
0x1637   :  { %5698 = vst [vmem:[#allocation22] sm:$0xff] %v5697_v62 }
0x1638   :  { %7639 = shalt.err (!%p7636_p8)
}
0x1639   :  { %5708 = dma.vmem_to_hbm [thread:$0]  %s5706_s11, 128, %s8174_s12, [#allocation4]  }
0x163a   :  { %7662 = dma.done.wait [#allocation4], 128  }
0x163b   :  { %7663 = vsyncadd [#allocation4], 4294967168 }
0x163c   :  { %5712 = vsyncpa [#allocation3], 1 }
0x163d   :  { %5713 = vsyncpa [#allocation6], 1 }
0x163e   :  { %5714 = vsyncpa [#allocation9], 1 }
0x163f   :  { %5715 = vsyncpa [#allocation12], 1 }
0x1640   :  { %5716 = vsyncpa [#allocation15], 1 }
0x1641   :  { %5717 = vsyncpa [#allocation18], 1 }
0x1642   :  { %5718 = vsyncpa [#allocation21], 1 }
0x1643   :  { %5719 = vsyncpa [#allocation4], 1 }

</bundles_post_ra>
